<compile_context>
chip_gen: v7x
topology: tpu7x:2x2x1
jax: 0.10.0
libtpu: 0.0.40
codegen_flags: <defaults>
</compile_context>

<pallas_src>
import functools

import jax
import jax.numpy as jnp
from jax.experimental import pallas as pl
from jax.experimental.pallas import tpu as pltpu  # noqa: F401  (TPU backend)


# ---------------------------------------------------------------------------
# Fused Pallas kernel: n_layers LSTM (wavefronted) + folded fc1
# ---------------------------------------------------------------------------

def fused_lstm_kernel(x_ref, *args, n_layers, seq_len):
    """Fused multi-layer LSTM + fc1.

    x_ref : (T*Bp, E)  time-major, batch padded to a sublane multiple.
    layer 0      : w_ih0 (E, 4H), w_hh0 (H, 4H), b0 (1, 4H)
    layer l >= 1 : w_cat_l (2H, 4H)  [= vstack(W_ih_l, W_hh_l)], b_l (1, 4H)
    fc_w  : (T, O)   (T == hidden_size, required by output[:, :, -1])
    fc_b  : (1, O)
    out   : (Bp, O)
    Gate lane order is PyTorch's i, f, g, o; the g columns of every weight /
    bias were pre-scaled by 2 so tanh(x) == 2*sigmoid(2x) - 1 applies.
    """
    n_w = 3 + 2 * (n_layers - 1)
    w_ih0_ref, w_hh0_ref, b0_ref = args[0], args[1], args[2]
    deep_refs = args[3:n_w]
    fc_w_ref, fc_b_ref, out_ref = args[n_w], args[n_w + 1], args[n_w + 2]

    T = seq_len
    TB = x_ref.shape[0]
    Bp = TB // T
    H4 = w_hh0_ref.shape[-1]
    H = H4 // 4
    O = out_ref.shape[-1]

    # Hoisted layer-0 input projection: one full-sequence matmul, completely
    # off the recurrent critical path.
    gx0 = (jnp.dot(x_ref[...], w_ih0_ref[...],
                   preferred_element_type=jnp.float32)
           + b0_ref[...])                                    # (T*Bp, 4H)

    w_hh0 = w_hh0_ref[...]
    w_cats = [deep_refs[2 * i][...] for i in range(n_layers - 1)]
    biases = [deep_refs[2 * i + 1][...] for i in range(n_layers - 1)]
    fc_w = fc_w_ref[...]                                     # (T, O)

    h = [jnp.zeros((Bp, H), jnp.float32) for _ in range(n_layers)]
    c = [jnp.zeros((Bp, H), jnp.float32) for _ in range(n_layers)]
    out_acc = jnp.zeros((Bp, O), jnp.float32)

    def lstm_cell(preact, c_prev):
        # Single EUP pass over the whole (Bp, 4H) tile.
        s = jax.nn.sigmoid(preact)
        i_g = s[:, 0:H]
        f_g = s[:, H:2 * H]
        g_g = 2.0 * s[:, 2 * H:3 * H] - 1.0    # tanh via pre-scaled sigmoid
        o_g = s[:, 3 * H:4 * H]
        c_new = f_g * c_prev + i_g * g_g
        h_new = o_g * jnp.tanh(c_new)
        return h_new, c_new

    # Statically unrolled, step-major (wavefront) loop.  Bp % 8 == 0 keeps the
    # gx0 row windows sublane-aligned.
    for t in range(T):
        r0 = t * Bp
        # Layer 0: hoisted input term + one fused (Bp, H) @ (H, 4H) dot.
        pre0 = gx0[r0:r0 + Bp] + jnp.dot(
            h[0], w_hh0, preferred_element_type=jnp.float32)
        h[0], c[0] = lstm_cell(pre0, c[0])

        # Deeper layers: input projection fused with the recurrence as a
        # single (Bp, 2H) @ (2H, 4H) dot.
        for l in range(1, n_layers):
            xin = jnp.concatenate([h[l - 1], h[l]], axis=-1)   # (Bp, 2H)
            pre = jnp.dot(xin, w_cats[l - 1],
                          preferred_element_type=jnp.float32) + biases[l - 1]
            h[l], c[l] = lstm_cell(pre, c[l])

        # Folded fc1: feat[b, t] = h_last[b, H-1]; accumulate its outer
        # product with fc_w row t (VPU fma, hidden under MXU/EUP slack).
        out_acc = out_acc + h[n_layers - 1][:, H - 1:H] * fc_w[t:t + 1, :]

    out_ref[...] = out_acc + fc_b_ref[...]


def lstm_fused_forward(x_flat, packed_layers, fc_w, fc_b, *, seq_len):
    """x_flat: (T*Bp, E); returns (Bp, O)."""
    TB = x_flat.shape[0]
    Bp = TB // seq_len
    out_features = fc_w.shape[-1]
    n_layers = len(packed_layers)

    flat_weights = []
    for l, layer in enumerate(packed_layers):
        if l == 0:
            flat_weights += [layer["w_ih"], layer["w_hh"], layer["b"]]
        else:
            flat_weights += [layer["w_cat"], layer["b"]]

    kernel = functools.partial(
        fused_lstm_kernel, n_layers=n_layers, seq_len=seq_len)

    # Single program, no grid: every operand fits comfortably in VMEM at these
    # sizes and is loaded whole (default whole-array blocks).
    return pl.pallas_call(
        kernel,
        out_shape=jax.ShapeDtypeStruct((Bp, out_features), jnp.float32),
    )(x_flat, *flat_weights, fc_w, fc_b)


# ---------------------------------------------------------------------------
# Weight packing: per-gate canonical params -> fused kernel layout
# ---------------------------------------------------------------------------

def pack_lstm_params(lstm_layers):
    """(4,in,H)/(4,H,H)/(4,1,H) per-gate params -> gate-fused, g-gate x2."""
    packed = []
    for l, layer in enumerate(lstm_layers):
        H = layer["w_hh"].shape[-1]
        w_ih = jnp.concatenate([layer["w_ih"][g] for g in range(4)], axis=-1)
        w_hh = jnp.concatenate([layer["w_hh"][g] for g in range(4)], axis=-1)
        b = jnp.concatenate([layer["bias"][g] for g in range(4)], axis=-1)
        # Pre-scale the g-gate columns by 2 so tanh(x) = 2*sigmoid(2x) - 1.
        scale = jnp.concatenate(
            [jnp.ones((1, 2 * H), jnp.float32),
             2.0 * jnp.ones((1, H), jnp.float32),
             jnp.ones((1, H), jnp.float32)], axis=-1)
        w_ih = w_ih * scale
        w_hh = w_hh * scale
        b = b * scale
        if l == 0:
            packed.append({"w_ih": w_ih, "w_hh": w_hh, "b": b})
        else:
            packed.append({"w_cat": jnp.concatenate([w_ih, w_hh], axis=0),
                           "b": b})
    return packed


# ---------------------------------------------------------------------------
# Model forward (JAX glue: embedding gather + batch padding + packing)
# ---------------------------------------------------------------------------

@jax.jit
def lstm_model_forward(params, tokens):
    B, T = tokens.shape
    H = params["lstm"][0]["w_hh"].shape[-1]
    # fc1(output[:, :, -1]) only type-checks when seq_len == hidden_size.
    assert T == H, f"forward() requires seq_len ({T}) == hidden_size ({H})"

    Bp = max(8, ((B + 7) // 8) * 8)          # pad batch to a sublane multiple

    # Gather embeddings directly into time-major (T, B, E).
    # TODO(synk): move the gather in-kernel via PrefetchScalarGridSpec once
    # E/T grow enough for the HBM round-trip of the embedded slab to matter.
    emb = params["embedding"][tokens.T]      # (T, B, E)
    if Bp != B:
        emb = jnp.pad(emb, ((0, 0), (0, Bp - B), (0, 0)))
    x_flat = emb.reshape(T * Bp, emb.shape[-1])

    packed = pack_lstm_params(params["lstm"])
    out = lstm_fused_forward(
        x_flat, packed, params["fc_w"], params["fc_b"], seq_len=T)
    return jnp.squeeze(out[:B])              # matches .squeeze() in the module


# ---------------------------------------------------------------------------
# Deterministic parameter init (synthetic; mirrors PyTorch parameter shapes,
# stored per gate; packed for the kernel at call time)
# ---------------------------------------------------------------------------

def init_params(key, vocab_size, embedding_dim, hidden_size, n_layers,
                output_size):
    n_keys = 1 + 4 * n_layers + 2
    keys = iter(jax.random.split(key, n_keys))
    scale = 1.0 / jnp.sqrt(hidden_size)

    params = {
        "embedding": jax.random.normal(
            next(keys), (vocab_size, embedding_dim), jnp.float32),
        "lstm": [],
    }
    in_dim = embedding_dim
    for _ in range(n_layers):
        w_ih = jax.random.uniform(next(keys), (4, in_dim, hidden_size),
                                  jnp.float32, -scale, scale)
        w_hh = jax.random.uniform(next(keys), (4, hidden_size, hidden_size),
                                  jnp.float32, -scale, scale)
        b_ih = jax.random.uniform(next(keys), (4, 1, hidden_size),
                                  jnp.float32, -scale, scale)
        b_hh = jax.random.uniform(next(keys), (4, 1, hidden_size),
                                  jnp.float32, -scale, scale)
        params["lstm"].append(
            {"w_ih": w_ih, "w_hh": w_hh, "bias": b_ih + b_hh})
        in_dim = hidden_size

    # fc1: Linear(hidden_size, output_size); input feature dim == T == hidden.
    params["fc_w"] = jax.random.uniform(next(keys), (hidden_size, output_size),
                                        jnp.float32, -scale, scale)
    params["fc_b"] = jax.random.uniform(next(keys), (1, output_size),
                                        jnp.float32, -scale, scale)
    return params


# ---------------------------------------------------------------------------
# Pure-JAX reference (for correctness check only)
# ---------------------------------------------------------------------------

def lstm_model_reference(params, tokens):
    x = params["embedding"][tokens]             # (B, T, E)
    B, T, _ = x.shape
    for layer in params["lstm"]:
        w_ih, w_hh, b = layer["w_ih"], layer["w_hh"], layer["bias"]
        H = w_hh.shape[-1]

        def step(carry, xt, w_ih=w_ih, w_hh=w_hh, b=b):
            h, c = carry
            g = [xt @ w_ih[k] + h @ w_hh[k] + b[k] for k in range(4)]
            i = jax.nn.sigmoid(g[0])
            f = jax.nn.sigmoid(g[1])
            gg = jnp.tanh(g[2])
            o = jax.nn.sigmoid(g[3])
            c = f * c + i * gg
            h = o * jnp.tanh(c)
            return (h, c), h

        init = (jnp.zeros((B, H), jnp.float32), jnp.zeros((B, H), jnp.float32))
        _, ys = jax.lax.scan(step, init, jnp.transpose(x, (1, 0, 2)))
        x = jnp.transpose(ys, (1, 0, 2))
    feat = x[:, :, -1]                           # (B, T); requires T == hidden
    return jnp.squeeze(feat @ params["fc_w"] + params["fc_b"][0])


# ---------------------------------------------------------------------------

if __name__ == "__main__":
    VOCAB = 50
    EMBED_DIM = 16
    HIDDEN = 16        # == SEQ_LEN, as required by the original forward()
    N_LAYERS = 2
    OUTPUT = 4
    BATCH = 2
    SEQ_LEN = HIDDEN

    root = jax.random.PRNGKey(0)
    k_params, k_tok = jax.random.split(root)
    params = init_params(k_params, VOCAB, EMBED_DIM, HIDDEN, N_LAYERS, OUTPUT)
    tokens = jax.random.randint(k_tok, (BATCH, SEQ_LEN), 0, VOCAB, jnp.int32)

    out = lstm_model_forward(params, tokens)
    out = jax.block_until_ready(out)

    ref = lstm_model_reference(params, tokens)
    assert out.shape == ref.shape, (out.shape, ref.shape)
    # Slightly relaxed tolerance: tanh is computed as 2*sigmoid(2x) - 1 in the
    # kernel, which rounds a few ULPs differently from a native tanh.
    assert jnp.allclose(out, ref, atol=2e-4, rtol=2e-4), (out, ref)

    print("KERNEL_OK")
</pallas_src>

<mosaic_0001>
module attributes {stable_mosaic.version = 11 : i64} {
  func.func @fused_lstm_kernel(%arg0: memref<128x16xf32, #tpu.memory_space<vmem>>, %arg1: memref<16x64xf32, #tpu.memory_space<vmem>>, %arg2: memref<16x64xf32, #tpu.memory_space<vmem>>, %arg3: memref<1x64xf32, #tpu.memory_space<vmem>>, %arg4: memref<32x64xf32, #tpu.memory_space<vmem>>, %arg5: memref<1x64xf32, #tpu.memory_space<vmem>>, %arg6: memref<16x4xf32, #tpu.memory_space<vmem>>, %arg7: memref<1x4xf32, #tpu.memory_space<vmem>>, %arg8: memref<8x4xf32, #tpu.memory_space<vmem>>) attributes {dimension_semantics = [], scalar_prefetch = 0 : i64, scratch_operands = 0 : i64, tpu.core_type = #tpu.core_type<tc>} {
    %c0 = arith.constant 0 : index
    %c0_0 = arith.constant 0 : index
    %0 = vector.load %arg0[%c0, %c0_0] : memref<128x16xf32, #tpu.memory_space<vmem>>, vector<128x16xf32>
    %c0_1 = arith.constant 0 : index
    %c0_2 = arith.constant 0 : index
    %1 = vector.load %arg1[%c0_1, %c0_2] : memref<16x64xf32, #tpu.memory_space<vmem>>, vector<16x64xf32>
    %cst = arith.constant dense<0.000000e+00> : vector<128x64xf32>
    %2 = tpu.matmul %0, %1, %cst {dimension_numbers = #tpu.dot_dimension_numbers<[1], [0], [0], [1], [0, 0, 1, 1], [], []>} : vector<128x16xf32>, vector<16x64xf32>, vector<128x64xf32> -> vector<128x64xf32>
    %c0_3 = arith.constant 0 : index
    %c0_4 = arith.constant 0 : index
    %3 = vector.load %arg3[%c0_3, %c0_4] : memref<1x64xf32, #tpu.memory_space<vmem>>, vector<1x64xf32>
    %4 = vector.broadcast %3 : vector<1x64xf32> to vector<128x64xf32>
    %5 = arith.addf %2, %4 : vector<128x64xf32>
    %c0_5 = arith.constant 0 : index
    %c0_6 = arith.constant 0 : index
    %6 = vector.load %arg2[%c0_5, %c0_6] : memref<16x64xf32, #tpu.memory_space<vmem>>, vector<16x64xf32>
    %c0_7 = arith.constant 0 : index
    %c0_8 = arith.constant 0 : index
    %7 = vector.load %arg4[%c0_7, %c0_8] : memref<32x64xf32, #tpu.memory_space<vmem>>, vector<32x64xf32>
    %c0_9 = arith.constant 0 : index
    %c0_10 = arith.constant 0 : index
    %8 = vector.load %arg5[%c0_9, %c0_10] : memref<1x64xf32, #tpu.memory_space<vmem>>, vector<1x64xf32>
    %c0_11 = arith.constant 0 : index
    %c0_12 = arith.constant 0 : index
    %9 = vector.load %arg6[%c0_11, %c0_12] : memref<16x4xf32, #tpu.memory_space<vmem>>, vector<16x4xf32>
    %cst_13 = arith.constant 0.000000e+00 : f32
    %10 = vector.broadcast %cst_13 : f32 to vector<8x16xf32>
    %cst_14 = arith.constant 0.000000e+00 : f32
    %11 = vector.broadcast %cst_14 : f32 to vector<8x16xf32>
    %cst_15 = arith.constant 0.000000e+00 : f32
    %12 = vector.broadcast %cst_15 : f32 to vector<8x16xf32>
    %cst_16 = arith.constant 0.000000e+00 : f32
    %13 = vector.broadcast %cst_16 : f32 to vector<8x16xf32>
    %cst_17 = arith.constant 0.000000e+00 : f32
    %14 = vector.broadcast %cst_17 : f32 to vector<8x4xf32>
    %15 = vector.extract_strided_slice %5 {offsets = [0, 0], sizes = [8, 64], strides = [1, 1]} : vector<128x64xf32> to vector<8x64xf32>
    %cst_18 = arith.constant dense<0.000000e+00> : vector<8x64xf32>
    %16 = tpu.matmul %10, %6, %cst_18 {dimension_numbers = #tpu.dot_dimension_numbers<[1], [0], [0], [1], [0, 0, 1, 1], [], []>} : vector<8x16xf32>, vector<16x64xf32>, vector<8x64xf32> -> vector<8x64xf32>
    %17 = arith.addf %15, %16 : vector<8x64xf32>
    %18 = arith.negf %17 : vector<8x64xf32>
    %19 = math.exp %18 : vector<8x64xf32>
    %cst_19 = arith.constant 1.000000e+00 : f32
    %20 = vector.broadcast %cst_19 : f32 to vector<8x64xf32>
    %21 = arith.addf %20, %19 : vector<8x64xf32>
    %22 = arith.divf %20, %21 : vector<8x64xf32>
    %23 = vector.extract_strided_slice %22 {offsets = [0, 0], sizes = [8, 16], strides = [1, 1]} : vector<8x64xf32> to vector<8x16xf32>
    %24 = vector.extract_strided_slice %22 {offsets = [0, 16], sizes = [8, 16], strides = [1, 1]} : vector<8x64xf32> to vector<8x16xf32>
    %25 = vector.extract_strided_slice %22 {offsets = [0, 32], sizes = [8, 16], strides = [1, 1]} : vector<8x64xf32> to vector<8x16xf32>
    %cst_20 = arith.constant 2.000000e+00 : f32
    %26 = vector.broadcast %cst_20 : f32 to vector<8x16xf32>
    %27 = arith.mulf %26, %25 : vector<8x16xf32>
    %cst_21 = arith.constant 1.000000e+00 : f32
    %28 = vector.broadcast %cst_21 : f32 to vector<8x16xf32>
    %29 = arith.subf %27, %28 : vector<8x16xf32>
    %30 = vector.extract_strided_slice %22 {offsets = [0, 48], sizes = [8, 16], strides = [1, 1]} : vector<8x64xf32> to vector<8x16xf32>
    %31 = arith.mulf %24, %12 : vector<8x16xf32>
    %32 = arith.mulf %23, %29 : vector<8x16xf32>
    %33 = arith.addf %31, %32 : vector<8x16xf32>
    %34 = math.tanh %33 : vector<8x16xf32>
    %35 = arith.mulf %30, %34 : vector<8x16xf32>
    %36 = tpu.concatenate %35, %11 in 1 : vector<8x16xf32>, vector<8x16xf32> -> vector<8x32xf32>
    %cst_22 = arith.constant dense<0.000000e+00> : vector<8x64xf32>
    %37 = tpu.matmul %36, %7, %cst_22 {dimension_numbers = #tpu.dot_dimension_numbers<[1], [0], [0], [1], [0, 0, 1, 1], [], []>} : vector<8x32xf32>, vector<32x64xf32>, vector<8x64xf32> -> vector<8x64xf32>
    %38 = vector.broadcast %8 : vector<1x64xf32> to vector<8x64xf32>
    %39 = arith.addf %37, %38 : vector<8x64xf32>
    %40 = arith.negf %39 : vector<8x64xf32>
    %41 = math.exp %40 : vector<8x64xf32>
    %cst_23 = arith.constant 1.000000e+00 : f32
    %42 = vector.broadcast %cst_23 : f32 to vector<8x64xf32>
    %43 = arith.addf %42, %41 : vector<8x64xf32>
    %44 = arith.divf %42, %43 : vector<8x64xf32>
    %45 = vector.extract_strided_slice %44 {offsets = [0, 0], sizes = [8, 16], strides = [1, 1]} : vector<8x64xf32> to vector<8x16xf32>
    %46 = vector.extract_strided_slice %44 {offsets = [0, 16], sizes = [8, 16], strides = [1, 1]} : vector<8x64xf32> to vector<8x16xf32>
    %47 = vector.extract_strided_slice %44 {offsets = [0, 32], sizes = [8, 16], strides = [1, 1]} : vector<8x64xf32> to vector<8x16xf32>
    %cst_24 = arith.constant 2.000000e+00 : f32
    %48 = vector.broadcast %cst_24 : f32 to vector<8x16xf32>
    %49 = arith.mulf %48, %47 : vector<8x16xf32>
    %cst_25 = arith.constant 1.000000e+00 : f32
    %50 = vector.broadcast %cst_25 : f32 to vector<8x16xf32>
    %51 = arith.subf %49, %50 : vector<8x16xf32>
    %52 = vector.extract_strided_slice %44 {offsets = [0, 48], sizes = [8, 16], strides = [1, 1]} : vector<8x64xf32> to vector<8x16xf32>
    %53 = arith.mulf %46, %13 : vector<8x16xf32>
    %54 = arith.mulf %45, %51 : vector<8x16xf32>
    %55 = arith.addf %53, %54 : vector<8x16xf32>
    %56 = math.tanh %55 : vector<8x16xf32>
    %57 = arith.mulf %52, %56 : vector<8x16xf32>
    %58 = vector.extract_strided_slice %57 {offsets = [0, 15], sizes = [8, 1], strides = [1, 1]} : vector<8x16xf32> to vector<8x1xf32>
    %59 = vector.extract_strided_slice %9 {offsets = [0, 0], sizes = [1, 4], strides = [1, 1]} : vector<16x4xf32> to vector<1x4xf32>
    %60 = vector.broadcast %58 : vector<8x1xf32> to vector<8x4xf32>
    %61 = vector.broadcast %59 : vector<1x4xf32> to vector<8x4xf32>
    %62 = arith.mulf %60, %61 : vector<8x4xf32>
    %63 = arith.addf %14, %62 : vector<8x4xf32>
    %64 = vector.extract_strided_slice %5 {offsets = [8, 0], sizes = [8, 64], strides = [1, 1]} : vector<128x64xf32> to vector<8x64xf32>
    %cst_26 = arith.constant dense<0.000000e+00> : vector<8x64xf32>
    %65 = tpu.matmul %35, %6, %cst_26 {dimension_numbers = #tpu.dot_dimension_numbers<[1], [0], [0], [1], [0, 0, 1, 1], [], []>} : vector<8x16xf32>, vector<16x64xf32>, vector<8x64xf32> -> vector<8x64xf32>
    %66 = arith.addf %64, %65 : vector<8x64xf32>
    %67 = arith.negf %66 : vector<8x64xf32>
    %68 = math.exp %67 : vector<8x64xf32>
    %cst_27 = arith.constant 1.000000e+00 : f32
    %69 = vector.broadcast %cst_27 : f32 to vector<8x64xf32>
    %70 = arith.addf %69, %68 : vector<8x64xf32>
    %71 = arith.divf %69, %70 : vector<8x64xf32>
    %72 = vector.extract_strided_slice %71 {offsets = [0, 0], sizes = [8, 16], strides = [1, 1]} : vector<8x64xf32> to vector<8x16xf32>
    %73 = vector.extract_strided_slice %71 {offsets = [0, 16], sizes = [8, 16], strides = [1, 1]} : vector<8x64xf32> to vector<8x16xf32>
    %74 = vector.extract_strided_slice %71 {offsets = [0, 32], sizes = [8, 16], strides = [1, 1]} : vector<8x64xf32> to vector<8x16xf32>
    %cst_28 = arith.constant 2.000000e+00 : f32
    %75 = vector.broadcast %cst_28 : f32 to vector<8x16xf32>
    %76 = arith.mulf %75, %74 : vector<8x16xf32>
    %cst_29 = arith.constant 1.000000e+00 : f32
    %77 = vector.broadcast %cst_29 : f32 to vector<8x16xf32>
    %78 = arith.subf %76, %77 : vector<8x16xf32>
    %79 = vector.extract_strided_slice %71 {offsets = [0, 48], sizes = [8, 16], strides = [1, 1]} : vector<8x64xf32> to vector<8x16xf32>
    %80 = arith.mulf %73, %33 : vector<8x16xf32>
    %81 = arith.mulf %72, %78 : vector<8x16xf32>
    %82 = arith.addf %80, %81 : vector<8x16xf32>
    %83 = math.tanh %82 : vector<8x16xf32>
    %84 = arith.mulf %79, %83 : vector<8x16xf32>
    %85 = tpu.concatenate %84, %57 in 1 : vector<8x16xf32>, vector<8x16xf32> -> vector<8x32xf32>
    %cst_30 = arith.constant dense<0.000000e+00> : vector<8x64xf32>
    %86 = tpu.matmul %85, %7, %cst_30 {dimension_numbers = #tpu.dot_dimension_numbers<[1], [0], [0], [1], [0, 0, 1, 1], [], []>} : vector<8x32xf32>, vector<32x64xf32>, vector<8x64xf32> -> vector<8x64xf32>
    %87 = vector.broadcast %8 : vector<1x64xf32> to vector<8x64xf32>
    %88 = arith.addf %86, %87 : vector<8x64xf32>
    %89 = arith.negf %88 : vector<8x64xf32>
    %90 = math.exp %89 : vector<8x64xf32>
    %cst_31 = arith.constant 1.000000e+00 : f32
    %91 = vector.broadcast %cst_31 : f32 to vector<8x64xf32>
    %92 = arith.addf %91, %90 : vector<8x64xf32>
    %93 = arith.divf %91, %92 : vector<8x64xf32>
    %94 = vector.extract_strided_slice %93 {offsets = [0, 0], sizes = [8, 16], strides = [1, 1]} : vector<8x64xf32> to vector<8x16xf32>
    %95 = vector.extract_strided_slice %93 {offsets = [0, 16], sizes = [8, 16], strides = [1, 1]} : vector<8x64xf32> to vector<8x16xf32>
    %96 = vector.extract_strided_slice %93 {offsets = [0, 32], sizes = [8, 16], strides = [1, 1]} : vector<8x64xf32> to vector<8x16xf32>
    %cst_32 = arith.constant 2.000000e+00 : f32
    %97 = vector.broadcast %cst_32 : f32 to vector<8x16xf32>
    %98 = arith.mulf %97, %96 : vector<8x16xf32>
    %cst_33 = arith.constant 1.000000e+00 : f32
    %99 = vector.broadcast %cst_33 : f32 to vector<8x16xf32>
    %100 = arith.subf %98, %99 : vector<8x16xf32>
    %101 = vector.extract_strided_slice %93 {offsets = [0, 48], sizes = [8, 16], strides = [1, 1]} : vector<8x64xf32> to vector<8x16xf32>
    %102 = arith.mulf %95, %55 : vector<8x16xf32>
    %103 = arith.mulf %94, %100 : vector<8x16xf32>
    %104 = arith.addf %102, %103 : vector<8x16xf32>
    %105 = math.tanh %104 : vector<8x16xf32>
    %106 = arith.mulf %101, %105 : vector<8x16xf32>
    %107 = vector.extract_strided_slice %106 {offsets = [0, 15], sizes = [8, 1], strides = [1, 1]} : vector<8x16xf32> to vector<8x1xf32>
    %108 = vector.extract_strided_slice %9 {offsets = [1, 0], sizes = [1, 4], strides = [1, 1]} : vector<16x4xf32> to vector<1x4xf32>
    %109 = vector.broadcast %107 : vector<8x1xf32> to vector<8x4xf32>
    %110 = vector.broadcast %108 : vector<1x4xf32> to vector<8x4xf32>
    %111 = arith.mulf %109, %110 : vector<8x4xf32>
    %112 = arith.addf %63, %111 : vector<8x4xf32>
    %113 = vector.extract_strided_slice %5 {offsets = [16, 0], sizes = [8, 64], strides = [1, 1]} : vector<128x64xf32> to vector<8x64xf32>
    %cst_34 = arith.constant dense<0.000000e+00> : vector<8x64xf32>
    %114 = tpu.matmul %84, %6, %cst_34 {dimension_numbers = #tpu.dot_dimension_numbers<[1], [0], [0], [1], [0, 0, 1, 1], [], []>} : vector<8x16xf32>, vector<16x64xf32>, vector<8x64xf32> -> vector<8x64xf32>
    %115 = arith.addf %113, %114 : vector<8x64xf32>
    %116 = arith.negf %115 : vector<8x64xf32>
    %117 = math.exp %116 : vector<8x64xf32>
    %cst_35 = arith.constant 1.000000e+00 : f32
    %118 = vector.broadcast %cst_35 : f32 to vector<8x64xf32>
    %119 = arith.addf %118, %117 : vector<8x64xf32>
    %120 = arith.divf %118, %119 : vector<8x64xf32>
    %121 = vector.extract_strided_slice %120 {offsets = [0, 0], sizes = [8, 16], strides = [1, 1]} : vector<8x64xf32> to vector<8x16xf32>
    %122 = vector.extract_strided_slice %120 {offsets = [0, 16], sizes = [8, 16], strides = [1, 1]} : vector<8x64xf32> to vector<8x16xf32>
    %123 = vector.extract_strided_slice %120 {offsets = [0, 32], sizes = [8, 16], strides = [1, 1]} : vector<8x64xf32> to vector<8x16xf32>
    %cst_36 = arith.constant 2.000000e+00 : f32
    %124 = vector.broadcast %cst_36 : f32 to vector<8x16xf32>
    %125 = arith.mulf %124, %123 : vector<8x16xf32>
    %cst_37 = arith.constant 1.000000e+00 : f32
    %126 = vector.broadcast %cst_37 : f32 to vector<8x16xf32>
    %127 = arith.subf %125, %126 : vector<8x16xf32>
    %128 = vector.extract_strided_slice %120 {offsets = [0, 48], sizes = [8, 16], strides = [1, 1]} : vector<8x64xf32> to vector<8x16xf32>
    %129 = arith.mulf %122, %82 : vector<8x16xf32>
    %130 = arith.mulf %121, %127 : vector<8x16xf32>
    %131 = arith.addf %129, %130 : vector<8x16xf32>
    %132 = math.tanh %131 : vector<8x16xf32>
    %133 = arith.mulf %128, %132 : vector<8x16xf32>
    %134 = tpu.concatenate %133, %106 in 1 : vector<8x16xf32>, vector<8x16xf32> -> vector<8x32xf32>
    %cst_38 = arith.constant dense<0.000000e+00> : vector<8x64xf32>
    %135 = tpu.matmul %134, %7, %cst_38 {dimension_numbers = #tpu.dot_dimension_numbers<[1], [0], [0], [1], [0, 0, 1, 1], [], []>} : vector<8x32xf32>, vector<32x64xf32>, vector<8x64xf32> -> vector<8x64xf32>
    %136 = vector.broadcast %8 : vector<1x64xf32> to vector<8x64xf32>
    %137 = arith.addf %135, %136 : vector<8x64xf32>
    %138 = arith.negf %137 : vector<8x64xf32>
    %139 = math.exp %138 : vector<8x64xf32>
    %cst_39 = arith.constant 1.000000e+00 : f32
    %140 = vector.broadcast %cst_39 : f32 to vector<8x64xf32>
    %141 = arith.addf %140, %139 : vector<8x64xf32>
    %142 = arith.divf %140, %141 : vector<8x64xf32>
    %143 = vector.extract_strided_slice %142 {offsets = [0, 0], sizes = [8, 16], strides = [1, 1]} : vector<8x64xf32> to vector<8x16xf32>
    %144 = vector.extract_strided_slice %142 {offsets = [0, 16], sizes = [8, 16], strides = [1, 1]} : vector<8x64xf32> to vector<8x16xf32>
    %145 = vector.extract_strided_slice %142 {offsets = [0, 32], sizes = [8, 16], strides = [1, 1]} : vector<8x64xf32> to vector<8x16xf32>
    %cst_40 = arith.constant 2.000000e+00 : f32
    %146 = vector.broadcast %cst_40 : f32 to vector<8x16xf32>
    %147 = arith.mulf %146, %145 : vector<8x16xf32>
    %cst_41 = arith.constant 1.000000e+00 : f32
    %148 = vector.broadcast %cst_41 : f32 to vector<8x16xf32>
    %149 = arith.subf %147, %148 : vector<8x16xf32>
    %150 = vector.extract_strided_slice %142 {offsets = [0, 48], sizes = [8, 16], strides = [1, 1]} : vector<8x64xf32> to vector<8x16xf32>
    %151 = arith.mulf %144, %104 : vector<8x16xf32>
    %152 = arith.mulf %143, %149 : vector<8x16xf32>
    %153 = arith.addf %151, %152 : vector<8x16xf32>
    %154 = math.tanh %153 : vector<8x16xf32>
    %155 = arith.mulf %150, %154 : vector<8x16xf32>
    %156 = vector.extract_strided_slice %155 {offsets = [0, 15], sizes = [8, 1], strides = [1, 1]} : vector<8x16xf32> to vector<8x1xf32>
    %157 = vector.extract_strided_slice %9 {offsets = [2, 0], sizes = [1, 4], strides = [1, 1]} : vector<16x4xf32> to vector<1x4xf32>
    %158 = vector.broadcast %156 : vector<8x1xf32> to vector<8x4xf32>
    %159 = vector.broadcast %157 : vector<1x4xf32> to vector<8x4xf32>
    %160 = arith.mulf %158, %159 : vector<8x4xf32>
    %161 = arith.addf %112, %160 : vector<8x4xf32>
    %162 = vector.extract_strided_slice %5 {offsets = [24, 0], sizes = [8, 64], strides = [1, 1]} : vector<128x64xf32> to vector<8x64xf32>
    %cst_42 = arith.constant dense<0.000000e+00> : vector<8x64xf32>
    %163 = tpu.matmul %133, %6, %cst_42 {dimension_numbers = #tpu.dot_dimension_numbers<[1], [0], [0], [1], [0, 0, 1, 1], [], []>} : vector<8x16xf32>, vector<16x64xf32>, vector<8x64xf32> -> vector<8x64xf32>
    %164 = arith.addf %162, %163 : vector<8x64xf32>
    %165 = arith.negf %164 : vector<8x64xf32>
    %166 = math.exp %165 : vector<8x64xf32>
    %cst_43 = arith.constant 1.000000e+00 : f32
    %167 = vector.broadcast %cst_43 : f32 to vector<8x64xf32>
    %168 = arith.addf %167, %166 : vector<8x64xf32>
    %169 = arith.divf %167, %168 : vector<8x64xf32>
    %170 = vector.extract_strided_slice %169 {offsets = [0, 0], sizes = [8, 16], strides = [1, 1]} : vector<8x64xf32> to vector<8x16xf32>
    %171 = vector.extract_strided_slice %169 {offsets = [0, 16], sizes = [8, 16], strides = [1, 1]} : vector<8x64xf32> to vector<8x16xf32>
    %172 = vector.extract_strided_slice %169 {offsets = [0, 32], sizes = [8, 16], strides = [1, 1]} : vector<8x64xf32> to vector<8x16xf32>
    %cst_44 = arith.constant 2.000000e+00 : f32
    %173 = vector.broadcast %cst_44 : f32 to vector<8x16xf32>
    %174 = arith.mulf %173, %172 : vector<8x16xf32>
    %cst_45 = arith.constant 1.000000e+00 : f32
    %175 = vector.broadcast %cst_45 : f32 to vector<8x16xf32>
    %176 = arith.subf %174, %175 : vector<8x16xf32>
    %177 = vector.extract_strided_slice %169 {offsets = [0, 48], sizes = [8, 16], strides = [1, 1]} : vector<8x64xf32> to vector<8x16xf32>
    %178 = arith.mulf %171, %131 : vector<8x16xf32>
    %179 = arith.mulf %170, %176 : vector<8x16xf32>
    %180 = arith.addf %178, %179 : vector<8x16xf32>
    %181 = math.tanh %180 : vector<8x16xf32>
    %182 = arith.mulf %177, %181 : vector<8x16xf32>
    %183 = tpu.concatenate %182, %155 in 1 : vector<8x16xf32>, vector<8x16xf32> -> vector<8x32xf32>
    %cst_46 = arith.constant dense<0.000000e+00> : vector<8x64xf32>
    %184 = tpu.matmul %183, %7, %cst_46 {dimension_numbers = #tpu.dot_dimension_numbers<[1], [0], [0], [1], [0, 0, 1, 1], [], []>} : vector<8x32xf32>, vector<32x64xf32>, vector<8x64xf32> -> vector<8x64xf32>
    %185 = vector.broadcast %8 : vector<1x64xf32> to vector<8x64xf32>
    %186 = arith.addf %184, %185 : vector<8x64xf32>
    %187 = arith.negf %186 : vector<8x64xf32>
    %188 = math.exp %187 : vector<8x64xf32>
    %cst_47 = arith.constant 1.000000e+00 : f32
    %189 = vector.broadcast %cst_47 : f32 to vector<8x64xf32>
    %190 = arith.addf %189, %188 : vector<8x64xf32>
    %191 = arith.divf %189, %190 : vector<8x64xf32>
    %192 = vector.extract_strided_slice %191 {offsets = [0, 0], sizes = [8, 16], strides = [1, 1]} : vector<8x64xf32> to vector<8x16xf32>
    %193 = vector.extract_strided_slice %191 {offsets = [0, 16], sizes = [8, 16], strides = [1, 1]} : vector<8x64xf32> to vector<8x16xf32>
    %194 = vector.extract_strided_slice %191 {offsets = [0, 32], sizes = [8, 16], strides = [1, 1]} : vector<8x64xf32> to vector<8x16xf32>
    %cst_48 = arith.constant 2.000000e+00 : f32
    %195 = vector.broadcast %cst_48 : f32 to vector<8x16xf32>
    %196 = arith.mulf %195, %194 : vector<8x16xf32>
    %cst_49 = arith.constant 1.000000e+00 : f32
    %197 = vector.broadcast %cst_49 : f32 to vector<8x16xf32>
    %198 = arith.subf %196, %197 : vector<8x16xf32>
    %199 = vector.extract_strided_slice %191 {offsets = [0, 48], sizes = [8, 16], strides = [1, 1]} : vector<8x64xf32> to vector<8x16xf32>
    %200 = arith.mulf %193, %153 : vector<8x16xf32>
    %201 = arith.mulf %192, %198 : vector<8x16xf32>
    %202 = arith.addf %200, %201 : vector<8x16xf32>
    %203 = math.tanh %202 : vector<8x16xf32>
    %204 = arith.mulf %199, %203 : vector<8x16xf32>
    %205 = vector.extract_strided_slice %204 {offsets = [0, 15], sizes = [8, 1], strides = [1, 1]} : vector<8x16xf32> to vector<8x1xf32>
    %206 = vector.extract_strided_slice %9 {offsets = [3, 0], sizes = [1, 4], strides = [1, 1]} : vector<16x4xf32> to vector<1x4xf32>
    %207 = vector.broadcast %205 : vector<8x1xf32> to vector<8x4xf32>
    %208 = vector.broadcast %206 : vector<1x4xf32> to vector<8x4xf32>
    %209 = arith.mulf %207, %208 : vector<8x4xf32>
    %210 = arith.addf %161, %209 : vector<8x4xf32>
    %211 = vector.extract_strided_slice %5 {offsets = [32, 0], sizes = [8, 64], strides = [1, 1]} : vector<128x64xf32> to vector<8x64xf32>
    %cst_50 = arith.constant dense<0.000000e+00> : vector<8x64xf32>
    %212 = tpu.matmul %182, %6, %cst_50 {dimension_numbers = #tpu.dot_dimension_numbers<[1], [0], [0], [1], [0, 0, 1, 1], [], []>} : vector<8x16xf32>, vector<16x64xf32>, vector<8x64xf32> -> vector<8x64xf32>
    %213 = arith.addf %211, %212 : vector<8x64xf32>
    %214 = arith.negf %213 : vector<8x64xf32>
    %215 = math.exp %214 : vector<8x64xf32>
    %cst_51 = arith.constant 1.000000e+00 : f32
    %216 = vector.broadcast %cst_51 : f32 to vector<8x64xf32>
    %217 = arith.addf %216, %215 : vector<8x64xf32>
    %218 = arith.divf %216, %217 : vector<8x64xf32>
    %219 = vector.extract_strided_slice %218 {offsets = [0, 0], sizes = [8, 16], strides = [1, 1]} : vector<8x64xf32> to vector<8x16xf32>
    %220 = vector.extract_strided_slice %218 {offsets = [0, 16], sizes = [8, 16], strides = [1, 1]} : vector<8x64xf32> to vector<8x16xf32>
    %221 = vector.extract_strided_slice %218 {offsets = [0, 32], sizes = [8, 16], strides = [1, 1]} : vector<8x64xf32> to vector<8x16xf32>
    %cst_52 = arith.constant 2.000000e+00 : f32
    %222 = vector.broadcast %cst_52 : f32 to vector<8x16xf32>
    %223 = arith.mulf %222, %221 : vector<8x16xf32>
    %cst_53 = arith.constant 1.000000e+00 : f32
    %224 = vector.broadcast %cst_53 : f32 to vector<8x16xf32>
    %225 = arith.subf %223, %224 : vector<8x16xf32>
    %226 = vector.extract_strided_slice %218 {offsets = [0, 48], sizes = [8, 16], strides = [1, 1]} : vector<8x64xf32> to vector<8x16xf32>
    %227 = arith.mulf %220, %180 : vector<8x16xf32>
    %228 = arith.mulf %219, %225 : vector<8x16xf32>
    %229 = arith.addf %227, %228 : vector<8x16xf32>
    %230 = math.tanh %229 : vector<8x16xf32>
    %231 = arith.mulf %226, %230 : vector<8x16xf32>
    %232 = tpu.concatenate %231, %204 in 1 : vector<8x16xf32>, vector<8x16xf32> -> vector<8x32xf32>
    %cst_54 = arith.constant dense<0.000000e+00> : vector<8x64xf32>
    %233 = tpu.matmul %232, %7, %cst_54 {dimension_numbers = #tpu.dot_dimension_numbers<[1], [0], [0], [1], [0, 0, 1, 1], [], []>} : vector<8x32xf32>, vector<32x64xf32>, vector<8x64xf32> -> vector<8x64xf32>
    %234 = vector.broadcast %8 : vector<1x64xf32> to vector<8x64xf32>
    %235 = arith.addf %233, %234 : vector<8x64xf32>
    %236 = arith.negf %235 : vector<8x64xf32>
    %237 = math.exp %236 : vector<8x64xf32>
    %cst_55 = arith.constant 1.000000e+00 : f32
    %238 = vector.broadcast %cst_55 : f32 to vector<8x64xf32>
    %239 = arith.addf %238, %237 : vector<8x64xf32>
    %240 = arith.divf %238, %239 : vector<8x64xf32>
    %241 = vector.extract_strided_slice %240 {offsets = [0, 0], sizes = [8, 16], strides = [1, 1]} : vector<8x64xf32> to vector<8x16xf32>
    %242 = vector.extract_strided_slice %240 {offsets = [0, 16], sizes = [8, 16], strides = [1, 1]} : vector<8x64xf32> to vector<8x16xf32>
    %243 = vector.extract_strided_slice %240 {offsets = [0, 32], sizes = [8, 16], strides = [1, 1]} : vector<8x64xf32> to vector<8x16xf32>
    %cst_56 = arith.constant 2.000000e+00 : f32
    %244 = vector.broadcast %cst_56 : f32 to vector<8x16xf32>
    %245 = arith.mulf %244, %243 : vector<8x16xf32>
    %cst_57 = arith.constant 1.000000e+00 : f32
    %246 = vector.broadcast %cst_57 : f32 to vector<8x16xf32>
    %247 = arith.subf %245, %246 : vector<8x16xf32>
    %248 = vector.extract_strided_slice %240 {offsets = [0, 48], sizes = [8, 16], strides = [1, 1]} : vector<8x64xf32> to vector<8x16xf32>
    %249 = arith.mulf %242, %202 : vector<8x16xf32>
    %250 = arith.mulf %241, %247 : vector<8x16xf32>
    %251 = arith.addf %249, %250 : vector<8x16xf32>
    %252 = math.tanh %251 : vector<8x16xf32>
    %253 = arith.mulf %248, %252 : vector<8x16xf32>
    %254 = vector.extract_strided_slice %253 {offsets = [0, 15], sizes = [8, 1], strides = [1, 1]} : vector<8x16xf32> to vector<8x1xf32>
    %255 = vector.extract_strided_slice %9 {offsets = [4, 0], sizes = [1, 4], strides = [1, 1]} : vector<16x4xf32> to vector<1x4xf32>
    %256 = vector.broadcast %254 : vector<8x1xf32> to vector<8x4xf32>
    %257 = vector.broadcast %255 : vector<1x4xf32> to vector<8x4xf32>
    %258 = arith.mulf %256, %257 : vector<8x4xf32>
    %259 = arith.addf %210, %258 : vector<8x4xf32>
    %260 = vector.extract_strided_slice %5 {offsets = [40, 0], sizes = [8, 64], strides = [1, 1]} : vector<128x64xf32> to vector<8x64xf32>
    %cst_58 = arith.constant dense<0.000000e+00> : vector<8x64xf32>
    %261 = tpu.matmul %231, %6, %cst_58 {dimension_numbers = #tpu.dot_dimension_numbers<[1], [0], [0], [1], [0, 0, 1, 1], [], []>} : vector<8x16xf32>, vector<16x64xf32>, vector<8x64xf32> -> vector<8x64xf32>
    %262 = arith.addf %260, %261 : vector<8x64xf32>
    %263 = arith.negf %262 : vector<8x64xf32>
    %264 = math.exp %263 : vector<8x64xf32>
    %cst_59 = arith.constant 1.000000e+00 : f32
    %265 = vector.broadcast %cst_59 : f32 to vector<8x64xf32>
    %266 = arith.addf %265, %264 : vector<8x64xf32>
    %267 = arith.divf %265, %266 : vector<8x64xf32>
    %268 = vector.extract_strided_slice %267 {offsets = [0, 0], sizes = [8, 16], strides = [1, 1]} : vector<8x64xf32> to vector<8x16xf32>
    %269 = vector.extract_strided_slice %267 {offsets = [0, 16], sizes = [8, 16], strides = [1, 1]} : vector<8x64xf32> to vector<8x16xf32>
    %270 = vector.extract_strided_slice %267 {offsets = [0, 32], sizes = [8, 16], strides = [1, 1]} : vector<8x64xf32> to vector<8x16xf32>
    %cst_60 = arith.constant 2.000000e+00 : f32
    %271 = vector.broadcast %cst_60 : f32 to vector<8x16xf32>
    %272 = arith.mulf %271, %270 : vector<8x16xf32>
    %cst_61 = arith.constant 1.000000e+00 : f32
    %273 = vector.broadcast %cst_61 : f32 to vector<8x16xf32>
    %274 = arith.subf %272, %273 : vector<8x16xf32>
    %275 = vector.extract_strided_slice %267 {offsets = [0, 48], sizes = [8, 16], strides = [1, 1]} : vector<8x64xf32> to vector<8x16xf32>
    %276 = arith.mulf %269, %229 : vector<8x16xf32>
    %277 = arith.mulf %268, %274 : vector<8x16xf32>
    %278 = arith.addf %276, %277 : vector<8x16xf32>
    %279 = math.tanh %278 : vector<8x16xf32>
    %280 = arith.mulf %275, %279 : vector<8x16xf32>
    %281 = tpu.concatenate %280, %253 in 1 : vector<8x16xf32>, vector<8x16xf32> -> vector<8x32xf32>
    %cst_62 = arith.constant dense<0.000000e+00> : vector<8x64xf32>
    %282 = tpu.matmul %281, %7, %cst_62 {dimension_numbers = #tpu.dot_dimension_numbers<[1], [0], [0], [1], [0, 0, 1, 1], [], []>} : vector<8x32xf32>, vector<32x64xf32>, vector<8x64xf32> -> vector<8x64xf32>
    %283 = vector.broadcast %8 : vector<1x64xf32> to vector<8x64xf32>
    %284 = arith.addf %282, %283 : vector<8x64xf32>
    %285 = arith.negf %284 : vector<8x64xf32>
    %286 = math.exp %285 : vector<8x64xf32>
    %cst_63 = arith.constant 1.000000e+00 : f32
    %287 = vector.broadcast %cst_63 : f32 to vector<8x64xf32>
    %288 = arith.addf %287, %286 : vector<8x64xf32>
    %289 = arith.divf %287, %288 : vector<8x64xf32>
    %290 = vector.extract_strided_slice %289 {offsets = [0, 0], sizes = [8, 16], strides = [1, 1]} : vector<8x64xf32> to vector<8x16xf32>
    %291 = vector.extract_strided_slice %289 {offsets = [0, 16], sizes = [8, 16], strides = [1, 1]} : vector<8x64xf32> to vector<8x16xf32>
    %292 = vector.extract_strided_slice %289 {offsets = [0, 32], sizes = [8, 16], strides = [1, 1]} : vector<8x64xf32> to vector<8x16xf32>
    %cst_64 = arith.constant 2.000000e+00 : f32
    %293 = vector.broadcast %cst_64 : f32 to vector<8x16xf32>
    %294 = arith.mulf %293, %292 : vector<8x16xf32>
    %cst_65 = arith.constant 1.000000e+00 : f32
    %295 = vector.broadcast %cst_65 : f32 to vector<8x16xf32>
    %296 = arith.subf %294, %295 : vector<8x16xf32>
    %297 = vector.extract_strided_slice %289 {offsets = [0, 48], sizes = [8, 16], strides = [1, 1]} : vector<8x64xf32> to vector<8x16xf32>
    %298 = arith.mulf %291, %251 : vector<8x16xf32>
    %299 = arith.mulf %290, %296 : vector<8x16xf32>
    %300 = arith.addf %298, %299 : vector<8x16xf32>
    %301 = math.tanh %300 : vector<8x16xf32>
    %302 = arith.mulf %297, %301 : vector<8x16xf32>
    %303 = vector.extract_strided_slice %302 {offsets = [0, 15], sizes = [8, 1], strides = [1, 1]} : vector<8x16xf32> to vector<8x1xf32>
    %304 = vector.extract_strided_slice %9 {offsets = [5, 0], sizes = [1, 4], strides = [1, 1]} : vector<16x4xf32> to vector<1x4xf32>
    %305 = vector.broadcast %303 : vector<8x1xf32> to vector<8x4xf32>
    %306 = vector.broadcast %304 : vector<1x4xf32> to vector<8x4xf32>
    %307 = arith.mulf %305, %306 : vector<8x4xf32>
    %308 = arith.addf %259, %307 : vector<8x4xf32>
    %309 = vector.extract_strided_slice %5 {offsets = [48, 0], sizes = [8, 64], strides = [1, 1]} : vector<128x64xf32> to vector<8x64xf32>
    %cst_66 = arith.constant dense<0.000000e+00> : vector<8x64xf32>
    %310 = tpu.matmul %280, %6, %cst_66 {dimension_numbers = #tpu.dot_dimension_numbers<[1], [0], [0], [1], [0, 0, 1, 1], [], []>} : vector<8x16xf32>, vector<16x64xf32>, vector<8x64xf32> -> vector<8x64xf32>
    %311 = arith.addf %309, %310 : vector<8x64xf32>
    %312 = arith.negf %311 : vector<8x64xf32>
    %313 = math.exp %312 : vector<8x64xf32>
    %cst_67 = arith.constant 1.000000e+00 : f32
    %314 = vector.broadcast %cst_67 : f32 to vector<8x64xf32>
    %315 = arith.addf %314, %313 : vector<8x64xf32>
    %316 = arith.divf %314, %315 : vector<8x64xf32>
    %317 = vector.extract_strided_slice %316 {offsets = [0, 0], sizes = [8, 16], strides = [1, 1]} : vector<8x64xf32> to vector<8x16xf32>
    %318 = vector.extract_strided_slice %316 {offsets = [0, 16], sizes = [8, 16], strides = [1, 1]} : vector<8x64xf32> to vector<8x16xf32>
    %319 = vector.extract_strided_slice %316 {offsets = [0, 32], sizes = [8, 16], strides = [1, 1]} : vector<8x64xf32> to vector<8x16xf32>
    %cst_68 = arith.constant 2.000000e+00 : f32
    %320 = vector.broadcast %cst_68 : f32 to vector<8x16xf32>
    %321 = arith.mulf %320, %319 : vector<8x16xf32>
    %cst_69 = arith.constant 1.000000e+00 : f32
    %322 = vector.broadcast %cst_69 : f32 to vector<8x16xf32>
    %323 = arith.subf %321, %322 : vector<8x16xf32>
    %324 = vector.extract_strided_slice %316 {offsets = [0, 48], sizes = [8, 16], strides = [1, 1]} : vector<8x64xf32> to vector<8x16xf32>
    %325 = arith.mulf %318, %278 : vector<8x16xf32>
    %326 = arith.mulf %317, %323 : vector<8x16xf32>
    %327 = arith.addf %325, %326 : vector<8x16xf32>
    %328 = math.tanh %327 : vector<8x16xf32>
    %329 = arith.mulf %324, %328 : vector<8x16xf32>
    %330 = tpu.concatenate %329, %302 in 1 : vector<8x16xf32>, vector<8x16xf32> -> vector<8x32xf32>
    %cst_70 = arith.constant dense<0.000000e+00> : vector<8x64xf32>
    %331 = tpu.matmul %330, %7, %cst_70 {dimension_numbers = #tpu.dot_dimension_numbers<[1], [0], [0], [1], [0, 0, 1, 1], [], []>} : vector<8x32xf32>, vector<32x64xf32>, vector<8x64xf32> -> vector<8x64xf32>
    %332 = vector.broadcast %8 : vector<1x64xf32> to vector<8x64xf32>
    %333 = arith.addf %331, %332 : vector<8x64xf32>
    %334 = arith.negf %333 : vector<8x64xf32>
    %335 = math.exp %334 : vector<8x64xf32>
    %cst_71 = arith.constant 1.000000e+00 : f32
    %336 = vector.broadcast %cst_71 : f32 to vector<8x64xf32>
    %337 = arith.addf %336, %335 : vector<8x64xf32>
    %338 = arith.divf %336, %337 : vector<8x64xf32>
    %339 = vector.extract_strided_slice %338 {offsets = [0, 0], sizes = [8, 16], strides = [1, 1]} : vector<8x64xf32> to vector<8x16xf32>
    %340 = vector.extract_strided_slice %338 {offsets = [0, 16], sizes = [8, 16], strides = [1, 1]} : vector<8x64xf32> to vector<8x16xf32>
    %341 = vector.extract_strided_slice %338 {offsets = [0, 32], sizes = [8, 16], strides = [1, 1]} : vector<8x64xf32> to vector<8x16xf32>
    %cst_72 = arith.constant 2.000000e+00 : f32
    %342 = vector.broadcast %cst_72 : f32 to vector<8x16xf32>
    %343 = arith.mulf %342, %341 : vector<8x16xf32>
    %cst_73 = arith.constant 1.000000e+00 : f32
    %344 = vector.broadcast %cst_73 : f32 to vector<8x16xf32>
    %345 = arith.subf %343, %344 : vector<8x16xf32>
    %346 = vector.extract_strided_slice %338 {offsets = [0, 48], sizes = [8, 16], strides = [1, 1]} : vector<8x64xf32> to vector<8x16xf32>
    %347 = arith.mulf %340, %300 : vector<8x16xf32>
    %348 = arith.mulf %339, %345 : vector<8x16xf32>
    %349 = arith.addf %347, %348 : vector<8x16xf32>
    %350 = math.tanh %349 : vector<8x16xf32>
    %351 = arith.mulf %346, %350 : vector<8x16xf32>
    %352 = vector.extract_strided_slice %351 {offsets = [0, 15], sizes = [8, 1], strides = [1, 1]} : vector<8x16xf32> to vector<8x1xf32>
    %353 = vector.extract_strided_slice %9 {offsets = [6, 0], sizes = [1, 4], strides = [1, 1]} : vector<16x4xf32> to vector<1x4xf32>
    %354 = vector.broadcast %352 : vector<8x1xf32> to vector<8x4xf32>
    %355 = vector.broadcast %353 : vector<1x4xf32> to vector<8x4xf32>
    %356 = arith.mulf %354, %355 : vector<8x4xf32>
    %357 = arith.addf %308, %356 : vector<8x4xf32>
    %358 = vector.extract_strided_slice %5 {offsets = [56, 0], sizes = [8, 64], strides = [1, 1]} : vector<128x64xf32> to vector<8x64xf32>
    %cst_74 = arith.constant dense<0.000000e+00> : vector<8x64xf32>
    %359 = tpu.matmul %329, %6, %cst_74 {dimension_numbers = #tpu.dot_dimension_numbers<[1], [0], [0], [1], [0, 0, 1, 1], [], []>} : vector<8x16xf32>, vector<16x64xf32>, vector<8x64xf32> -> vector<8x64xf32>
    %360 = arith.addf %358, %359 : vector<8x64xf32>
    %361 = arith.negf %360 : vector<8x64xf32>
    %362 = math.exp %361 : vector<8x64xf32>
    %cst_75 = arith.constant 1.000000e+00 : f32
    %363 = vector.broadcast %cst_75 : f32 to vector<8x64xf32>
    %364 = arith.addf %363, %362 : vector<8x64xf32>
    %365 = arith.divf %363, %364 : vector<8x64xf32>
    %366 = vector.extract_strided_slice %365 {offsets = [0, 0], sizes = [8, 16], strides = [1, 1]} : vector<8x64xf32> to vector<8x16xf32>
    %367 = vector.extract_strided_slice %365 {offsets = [0, 16], sizes = [8, 16], strides = [1, 1]} : vector<8x64xf32> to vector<8x16xf32>
    %368 = vector.extract_strided_slice %365 {offsets = [0, 32], sizes = [8, 16], strides = [1, 1]} : vector<8x64xf32> to vector<8x16xf32>
    %cst_76 = arith.constant 2.000000e+00 : f32
    %369 = vector.broadcast %cst_76 : f32 to vector<8x16xf32>
    %370 = arith.mulf %369, %368 : vector<8x16xf32>
    %cst_77 = arith.constant 1.000000e+00 : f32
    %371 = vector.broadcast %cst_77 : f32 to vector<8x16xf32>
    %372 = arith.subf %370, %371 : vector<8x16xf32>
    %373 = vector.extract_strided_slice %365 {offsets = [0, 48], sizes = [8, 16], strides = [1, 1]} : vector<8x64xf32> to vector<8x16xf32>
    %374 = arith.mulf %367, %327 : vector<8x16xf32>
    %375 = arith.mulf %366, %372 : vector<8x16xf32>
    %376 = arith.addf %374, %375 : vector<8x16xf32>
    %377 = math.tanh %376 : vector<8x16xf32>
    %378 = arith.mulf %373, %377 : vector<8x16xf32>
    %379 = tpu.concatenate %378, %351 in 1 : vector<8x16xf32>, vector<8x16xf32> -> vector<8x32xf32>
    %cst_78 = arith.constant dense<0.000000e+00> : vector<8x64xf32>
    %380 = tpu.matmul %379, %7, %cst_78 {dimension_numbers = #tpu.dot_dimension_numbers<[1], [0], [0], [1], [0, 0, 1, 1], [], []>} : vector<8x32xf32>, vector<32x64xf32>, vector<8x64xf32> -> vector<8x64xf32>
    %381 = vector.broadcast %8 : vector<1x64xf32> to vector<8x64xf32>
    %382 = arith.addf %380, %381 : vector<8x64xf32>
    %383 = arith.negf %382 : vector<8x64xf32>
    %384 = math.exp %383 : vector<8x64xf32>
    %cst_79 = arith.constant 1.000000e+00 : f32
    %385 = vector.broadcast %cst_79 : f32 to vector<8x64xf32>
    %386 = arith.addf %385, %384 : vector<8x64xf32>
    %387 = arith.divf %385, %386 : vector<8x64xf32>
    %388 = vector.extract_strided_slice %387 {offsets = [0, 0], sizes = [8, 16], strides = [1, 1]} : vector<8x64xf32> to vector<8x16xf32>
    %389 = vector.extract_strided_slice %387 {offsets = [0, 16], sizes = [8, 16], strides = [1, 1]} : vector<8x64xf32> to vector<8x16xf32>
    %390 = vector.extract_strided_slice %387 {offsets = [0, 32], sizes = [8, 16], strides = [1, 1]} : vector<8x64xf32> to vector<8x16xf32>
    %cst_80 = arith.constant 2.000000e+00 : f32
    %391 = vector.broadcast %cst_80 : f32 to vector<8x16xf32>
    %392 = arith.mulf %391, %390 : vector<8x16xf32>
    %cst_81 = arith.constant 1.000000e+00 : f32
    %393 = vector.broadcast %cst_81 : f32 to vector<8x16xf32>
    %394 = arith.subf %392, %393 : vector<8x16xf32>
    %395 = vector.extract_strided_slice %387 {offsets = [0, 48], sizes = [8, 16], strides = [1, 1]} : vector<8x64xf32> to vector<8x16xf32>
    %396 = arith.mulf %389, %349 : vector<8x16xf32>
    %397 = arith.mulf %388, %394 : vector<8x16xf32>
    %398 = arith.addf %396, %397 : vector<8x16xf32>
    %399 = math.tanh %398 : vector<8x16xf32>
    %400 = arith.mulf %395, %399 : vector<8x16xf32>
    %401 = vector.extract_strided_slice %400 {offsets = [0, 15], sizes = [8, 1], strides = [1, 1]} : vector<8x16xf32> to vector<8x1xf32>
    %402 = vector.extract_strided_slice %9 {offsets = [7, 0], sizes = [1, 4], strides = [1, 1]} : vector<16x4xf32> to vector<1x4xf32>
    %403 = vector.broadcast %401 : vector<8x1xf32> to vector<8x4xf32>
    %404 = vector.broadcast %402 : vector<1x4xf32> to vector<8x4xf32>
    %405 = arith.mulf %403, %404 : vector<8x4xf32>
    %406 = arith.addf %357, %405 : vector<8x4xf32>
    %407 = vector.extract_strided_slice %5 {offsets = [64, 0], sizes = [8, 64], strides = [1, 1]} : vector<128x64xf32> to vector<8x64xf32>
    %cst_82 = arith.constant dense<0.000000e+00> : vector<8x64xf32>
    %408 = tpu.matmul %378, %6, %cst_82 {dimension_numbers = #tpu.dot_dimension_numbers<[1], [0], [0], [1], [0, 0, 1, 1], [], []>} : vector<8x16xf32>, vector<16x64xf32>, vector<8x64xf32> -> vector<8x64xf32>
    %409 = arith.addf %407, %408 : vector<8x64xf32>
    %410 = arith.negf %409 : vector<8x64xf32>
    %411 = math.exp %410 : vector<8x64xf32>
    %cst_83 = arith.constant 1.000000e+00 : f32
    %412 = vector.broadcast %cst_83 : f32 to vector<8x64xf32>
    %413 = arith.addf %412, %411 : vector<8x64xf32>
    %414 = arith.divf %412, %413 : vector<8x64xf32>
    %415 = vector.extract_strided_slice %414 {offsets = [0, 0], sizes = [8, 16], strides = [1, 1]} : vector<8x64xf32> to vector<8x16xf32>
    %416 = vector.extract_strided_slice %414 {offsets = [0, 16], sizes = [8, 16], strides = [1, 1]} : vector<8x64xf32> to vector<8x16xf32>
    %417 = vector.extract_strided_slice %414 {offsets = [0, 32], sizes = [8, 16], strides = [1, 1]} : vector<8x64xf32> to vector<8x16xf32>
    %cst_84 = arith.constant 2.000000e+00 : f32
    %418 = vector.broadcast %cst_84 : f32 to vector<8x16xf32>
    %419 = arith.mulf %418, %417 : vector<8x16xf32>
    %cst_85 = arith.constant 1.000000e+00 : f32
    %420 = vector.broadcast %cst_85 : f32 to vector<8x16xf32>
    %421 = arith.subf %419, %420 : vector<8x16xf32>
    %422 = vector.extract_strided_slice %414 {offsets = [0, 48], sizes = [8, 16], strides = [1, 1]} : vector<8x64xf32> to vector<8x16xf32>
    %423 = arith.mulf %416, %376 : vector<8x16xf32>
    %424 = arith.mulf %415, %421 : vector<8x16xf32>
    %425 = arith.addf %423, %424 : vector<8x16xf32>
    %426 = math.tanh %425 : vector<8x16xf32>
    %427 = arith.mulf %422, %426 : vector<8x16xf32>
    %428 = tpu.concatenate %427, %400 in 1 : vector<8x16xf32>, vector<8x16xf32> -> vector<8x32xf32>
    %cst_86 = arith.constant dense<0.000000e+00> : vector<8x64xf32>
    %429 = tpu.matmul %428, %7, %cst_86 {dimension_numbers = #tpu.dot_dimension_numbers<[1], [0], [0], [1], [0, 0, 1, 1], [], []>} : vector<8x32xf32>, vector<32x64xf32>, vector<8x64xf32> -> vector<8x64xf32>
    %430 = vector.broadcast %8 : vector<1x64xf32> to vector<8x64xf32>
    %431 = arith.addf %429, %430 : vector<8x64xf32>
    %432 = arith.negf %431 : vector<8x64xf32>
    %433 = math.exp %432 : vector<8x64xf32>
    %cst_87 = arith.constant 1.000000e+00 : f32
    %434 = vector.broadcast %cst_87 : f32 to vector<8x64xf32>
    %435 = arith.addf %434, %433 : vector<8x64xf32>
    %436 = arith.divf %434, %435 : vector<8x64xf32>
    %437 = vector.extract_strided_slice %436 {offsets = [0, 0], sizes = [8, 16], strides = [1, 1]} : vector<8x64xf32> to vector<8x16xf32>
    %438 = vector.extract_strided_slice %436 {offsets = [0, 16], sizes = [8, 16], strides = [1, 1]} : vector<8x64xf32> to vector<8x16xf32>
    %439 = vector.extract_strided_slice %436 {offsets = [0, 32], sizes = [8, 16], strides = [1, 1]} : vector<8x64xf32> to vector<8x16xf32>
    %cst_88 = arith.constant 2.000000e+00 : f32
    %440 = vector.broadcast %cst_88 : f32 to vector<8x16xf32>
    %441 = arith.mulf %440, %439 : vector<8x16xf32>
    %cst_89 = arith.constant 1.000000e+00 : f32
    %442 = vector.broadcast %cst_89 : f32 to vector<8x16xf32>
    %443 = arith.subf %441, %442 : vector<8x16xf32>
    %444 = vector.extract_strided_slice %436 {offsets = [0, 48], sizes = [8, 16], strides = [1, 1]} : vector<8x64xf32> to vector<8x16xf32>
    %445 = arith.mulf %438, %398 : vector<8x16xf32>
    %446 = arith.mulf %437, %443 : vector<8x16xf32>
    %447 = arith.addf %445, %446 : vector<8x16xf32>
    %448 = math.tanh %447 : vector<8x16xf32>
    %449 = arith.mulf %444, %448 : vector<8x16xf32>
    %450 = vector.extract_strided_slice %449 {offsets = [0, 15], sizes = [8, 1], strides = [1, 1]} : vector<8x16xf32> to vector<8x1xf32>
    %451 = vector.extract_strided_slice %9 {offsets = [8, 0], sizes = [1, 4], strides = [1, 1]} : vector<16x4xf32> to vector<1x4xf32>
    %452 = vector.broadcast %450 : vector<8x1xf32> to vector<8x4xf32>
    %453 = vector.broadcast %451 : vector<1x4xf32> to vector<8x4xf32>
    %454 = arith.mulf %452, %453 : vector<8x4xf32>
    %455 = arith.addf %406, %454 : vector<8x4xf32>
    %456 = vector.extract_strided_slice %5 {offsets = [72, 0], sizes = [8, 64], strides = [1, 1]} : vector<128x64xf32> to vector<8x64xf32>
    %cst_90 = arith.constant dense<0.000000e+00> : vector<8x64xf32>
    %457 = tpu.matmul %427, %6, %cst_90 {dimension_numbers = #tpu.dot_dimension_numbers<[1], [0], [0], [1], [0, 0, 1, 1], [], []>} : vector<8x16xf32>, vector<16x64xf32>, vector<8x64xf32> -> vector<8x64xf32>
    %458 = arith.addf %456, %457 : vector<8x64xf32>
    %459 = arith.negf %458 : vector<8x64xf32>
    %460 = math.exp %459 : vector<8x64xf32>
    %cst_91 = arith.constant 1.000000e+00 : f32
    %461 = vector.broadcast %cst_91 : f32 to vector<8x64xf32>
    %462 = arith.addf %461, %460 : vector<8x64xf32>
    %463 = arith.divf %461, %462 : vector<8x64xf32>
    %464 = vector.extract_strided_slice %463 {offsets = [0, 0], sizes = [8, 16], strides = [1, 1]} : vector<8x64xf32> to vector<8x16xf32>
    %465 = vector.extract_strided_slice %463 {offsets = [0, 16], sizes = [8, 16], strides = [1, 1]} : vector<8x64xf32> to vector<8x16xf32>
    %466 = vector.extract_strided_slice %463 {offsets = [0, 32], sizes = [8, 16], strides = [1, 1]} : vector<8x64xf32> to vector<8x16xf32>
    %cst_92 = arith.constant 2.000000e+00 : f32
    %467 = vector.broadcast %cst_92 : f32 to vector<8x16xf32>
    %468 = arith.mulf %467, %466 : vector<8x16xf32>
    %cst_93 = arith.constant 1.000000e+00 : f32
    %469 = vector.broadcast %cst_93 : f32 to vector<8x16xf32>
    %470 = arith.subf %468, %469 : vector<8x16xf32>
    %471 = vector.extract_strided_slice %463 {offsets = [0, 48], sizes = [8, 16], strides = [1, 1]} : vector<8x64xf32> to vector<8x16xf32>
    %472 = arith.mulf %465, %425 : vector<8x16xf32>
    %473 = arith.mulf %464, %470 : vector<8x16xf32>
    %474 = arith.addf %472, %473 : vector<8x16xf32>
    %475 = math.tanh %474 : vector<8x16xf32>
    %476 = arith.mulf %471, %475 : vector<8x16xf32>
    %477 = tpu.concatenate %476, %449 in 1 : vector<8x16xf32>, vector<8x16xf32> -> vector<8x32xf32>
    %cst_94 = arith.constant dense<0.000000e+00> : vector<8x64xf32>
    %478 = tpu.matmul %477, %7, %cst_94 {dimension_numbers = #tpu.dot_dimension_numbers<[1], [0], [0], [1], [0, 0, 1, 1], [], []>} : vector<8x32xf32>, vector<32x64xf32>, vector<8x64xf32> -> vector<8x64xf32>
    %479 = vector.broadcast %8 : vector<1x64xf32> to vector<8x64xf32>
    %480 = arith.addf %478, %479 : vector<8x64xf32>
    %481 = arith.negf %480 : vector<8x64xf32>
    %482 = math.exp %481 : vector<8x64xf32>
    %cst_95 = arith.constant 1.000000e+00 : f32
    %483 = vector.broadcast %cst_95 : f32 to vector<8x64xf32>
    %484 = arith.addf %483, %482 : vector<8x64xf32>
    %485 = arith.divf %483, %484 : vector<8x64xf32>
    %486 = vector.extract_strided_slice %485 {offsets = [0, 0], sizes = [8, 16], strides = [1, 1]} : vector<8x64xf32> to vector<8x16xf32>
    %487 = vector.extract_strided_slice %485 {offsets = [0, 16], sizes = [8, 16], strides = [1, 1]} : vector<8x64xf32> to vector<8x16xf32>
    %488 = vector.extract_strided_slice %485 {offsets = [0, 32], sizes = [8, 16], strides = [1, 1]} : vector<8x64xf32> to vector<8x16xf32>
    %cst_96 = arith.constant 2.000000e+00 : f32
    %489 = vector.broadcast %cst_96 : f32 to vector<8x16xf32>
    %490 = arith.mulf %489, %488 : vector<8x16xf32>
    %cst_97 = arith.constant 1.000000e+00 : f32
    %491 = vector.broadcast %cst_97 : f32 to vector<8x16xf32>
    %492 = arith.subf %490, %491 : vector<8x16xf32>
    %493 = vector.extract_strided_slice %485 {offsets = [0, 48], sizes = [8, 16], strides = [1, 1]} : vector<8x64xf32> to vector<8x16xf32>
    %494 = arith.mulf %487, %447 : vector<8x16xf32>
    %495 = arith.mulf %486, %492 : vector<8x16xf32>
    %496 = arith.addf %494, %495 : vector<8x16xf32>
    %497 = math.tanh %496 : vector<8x16xf32>
    %498 = arith.mulf %493, %497 : vector<8x16xf32>
    %499 = vector.extract_strided_slice %498 {offsets = [0, 15], sizes = [8, 1], strides = [1, 1]} : vector<8x16xf32> to vector<8x1xf32>
    %500 = vector.extract_strided_slice %9 {offsets = [9, 0], sizes = [1, 4], strides = [1, 1]} : vector<16x4xf32> to vector<1x4xf32>
    %501 = vector.broadcast %499 : vector<8x1xf32> to vector<8x4xf32>
    %502 = vector.broadcast %500 : vector<1x4xf32> to vector<8x4xf32>
    %503 = arith.mulf %501, %502 : vector<8x4xf32>
    %504 = arith.addf %455, %503 : vector<8x4xf32>
    %505 = vector.extract_strided_slice %5 {offsets = [80, 0], sizes = [8, 64], strides = [1, 1]} : vector<128x64xf32> to vector<8x64xf32>
    %cst_98 = arith.constant dense<0.000000e+00> : vector<8x64xf32>
    %506 = tpu.matmul %476, %6, %cst_98 {dimension_numbers = #tpu.dot_dimension_numbers<[1], [0], [0], [1], [0, 0, 1, 1], [], []>} : vector<8x16xf32>, vector<16x64xf32>, vector<8x64xf32> -> vector<8x64xf32>
    %507 = arith.addf %505, %506 : vector<8x64xf32>
    %508 = arith.negf %507 : vector<8x64xf32>
    %509 = math.exp %508 : vector<8x64xf32>
    %cst_99 = arith.constant 1.000000e+00 : f32
    %510 = vector.broadcast %cst_99 : f32 to vector<8x64xf32>
    %511 = arith.addf %510, %509 : vector<8x64xf32>
    %512 = arith.divf %510, %511 : vector<8x64xf32>
    %513 = vector.extract_strided_slice %512 {offsets = [0, 0], sizes = [8, 16], strides = [1, 1]} : vector<8x64xf32> to vector<8x16xf32>
    %514 = vector.extract_strided_slice %512 {offsets = [0, 16], sizes = [8, 16], strides = [1, 1]} : vector<8x64xf32> to vector<8x16xf32>
    %515 = vector.extract_strided_slice %512 {offsets = [0, 32], sizes = [8, 16], strides = [1, 1]} : vector<8x64xf32> to vector<8x16xf32>
    %cst_100 = arith.constant 2.000000e+00 : f32
    %516 = vector.broadcast %cst_100 : f32 to vector<8x16xf32>
    %517 = arith.mulf %516, %515 : vector<8x16xf32>
    %cst_101 = arith.constant 1.000000e+00 : f32
    %518 = vector.broadcast %cst_101 : f32 to vector<8x16xf32>
    %519 = arith.subf %517, %518 : vector<8x16xf32>
    %520 = vector.extract_strided_slice %512 {offsets = [0, 48], sizes = [8, 16], strides = [1, 1]} : vector<8x64xf32> to vector<8x16xf32>
    %521 = arith.mulf %514, %474 : vector<8x16xf32>
    %522 = arith.mulf %513, %519 : vector<8x16xf32>
    %523 = arith.addf %521, %522 : vector<8x16xf32>
    %524 = math.tanh %523 : vector<8x16xf32>
    %525 = arith.mulf %520, %524 : vector<8x16xf32>
    %526 = tpu.concatenate %525, %498 in 1 : vector<8x16xf32>, vector<8x16xf32> -> vector<8x32xf32>
    %cst_102 = arith.constant dense<0.000000e+00> : vector<8x64xf32>
    %527 = tpu.matmul %526, %7, %cst_102 {dimension_numbers = #tpu.dot_dimension_numbers<[1], [0], [0], [1], [0, 0, 1, 1], [], []>} : vector<8x32xf32>, vector<32x64xf32>, vector<8x64xf32> -> vector<8x64xf32>
    %528 = vector.broadcast %8 : vector<1x64xf32> to vector<8x64xf32>
    %529 = arith.addf %527, %528 : vector<8x64xf32>
    %530 = arith.negf %529 : vector<8x64xf32>
    %531 = math.exp %530 : vector<8x64xf32>
    %cst_103 = arith.constant 1.000000e+00 : f32
    %532 = vector.broadcast %cst_103 : f32 to vector<8x64xf32>
    %533 = arith.addf %532, %531 : vector<8x64xf32>
    %534 = arith.divf %532, %533 : vector<8x64xf32>
    %535 = vector.extract_strided_slice %534 {offsets = [0, 0], sizes = [8, 16], strides = [1, 1]} : vector<8x64xf32> to vector<8x16xf32>
    %536 = vector.extract_strided_slice %534 {offsets = [0, 16], sizes = [8, 16], strides = [1, 1]} : vector<8x64xf32> to vector<8x16xf32>
    %537 = vector.extract_strided_slice %534 {offsets = [0, 32], sizes = [8, 16], strides = [1, 1]} : vector<8x64xf32> to vector<8x16xf32>
    %cst_104 = arith.constant 2.000000e+00 : f32
    %538 = vector.broadcast %cst_104 : f32 to vector<8x16xf32>
    %539 = arith.mulf %538, %537 : vector<8x16xf32>
    %cst_105 = arith.constant 1.000000e+00 : f32
    %540 = vector.broadcast %cst_105 : f32 to vector<8x16xf32>
    %541 = arith.subf %539, %540 : vector<8x16xf32>
    %542 = vector.extract_strided_slice %534 {offsets = [0, 48], sizes = [8, 16], strides = [1, 1]} : vector<8x64xf32> to vector<8x16xf32>
    %543 = arith.mulf %536, %496 : vector<8x16xf32>
    %544 = arith.mulf %535, %541 : vector<8x16xf32>
    %545 = arith.addf %543, %544 : vector<8x16xf32>
    %546 = math.tanh %545 : vector<8x16xf32>
    %547 = arith.mulf %542, %546 : vector<8x16xf32>
    %548 = vector.extract_strided_slice %547 {offsets = [0, 15], sizes = [8, 1], strides = [1, 1]} : vector<8x16xf32> to vector<8x1xf32>
    %549 = vector.extract_strided_slice %9 {offsets = [10, 0], sizes = [1, 4], strides = [1, 1]} : vector<16x4xf32> to vector<1x4xf32>
    %550 = vector.broadcast %548 : vector<8x1xf32> to vector<8x4xf32>
    %551 = vector.broadcast %549 : vector<1x4xf32> to vector<8x4xf32>
    %552 = arith.mulf %550, %551 : vector<8x4xf32>
    %553 = arith.addf %504, %552 : vector<8x4xf32>
    %554 = vector.extract_strided_slice %5 {offsets = [88, 0], sizes = [8, 64], strides = [1, 1]} : vector<128x64xf32> to vector<8x64xf32>
    %cst_106 = arith.constant dense<0.000000e+00> : vector<8x64xf32>
    %555 = tpu.matmul %525, %6, %cst_106 {dimension_numbers = #tpu.dot_dimension_numbers<[1], [0], [0], [1], [0, 0, 1, 1], [], []>} : vector<8x16xf32>, vector<16x64xf32>, vector<8x64xf32> -> vector<8x64xf32>
    %556 = arith.addf %554, %555 : vector<8x64xf32>
    %557 = arith.negf %556 : vector<8x64xf32>
    %558 = math.exp %557 : vector<8x64xf32>
    %cst_107 = arith.constant 1.000000e+00 : f32
    %559 = vector.broadcast %cst_107 : f32 to vector<8x64xf32>
    %560 = arith.addf %559, %558 : vector<8x64xf32>
    %561 = arith.divf %559, %560 : vector<8x64xf32>
    %562 = vector.extract_strided_slice %561 {offsets = [0, 0], sizes = [8, 16], strides = [1, 1]} : vector<8x64xf32> to vector<8x16xf32>
    %563 = vector.extract_strided_slice %561 {offsets = [0, 16], sizes = [8, 16], strides = [1, 1]} : vector<8x64xf32> to vector<8x16xf32>
    %564 = vector.extract_strided_slice %561 {offsets = [0, 32], sizes = [8, 16], strides = [1, 1]} : vector<8x64xf32> to vector<8x16xf32>
    %cst_108 = arith.constant 2.000000e+00 : f32
    %565 = vector.broadcast %cst_108 : f32 to vector<8x16xf32>
    %566 = arith.mulf %565, %564 : vector<8x16xf32>
    %cst_109 = arith.constant 1.000000e+00 : f32
    %567 = vector.broadcast %cst_109 : f32 to vector<8x16xf32>
    %568 = arith.subf %566, %567 : vector<8x16xf32>
    %569 = vector.extract_strided_slice %561 {offsets = [0, 48], sizes = [8, 16], strides = [1, 1]} : vector<8x64xf32> to vector<8x16xf32>
    %570 = arith.mulf %563, %523 : vector<8x16xf32>
    %571 = arith.mulf %562, %568 : vector<8x16xf32>
    %572 = arith.addf %570, %571 : vector<8x16xf32>
    %573 = math.tanh %572 : vector<8x16xf32>
    %574 = arith.mulf %569, %573 : vector<8x16xf32>
    %575 = tpu.concatenate %574, %547 in 1 : vector<8x16xf32>, vector<8x16xf32> -> vector<8x32xf32>
    %cst_110 = arith.constant dense<0.000000e+00> : vector<8x64xf32>
    %576 = tpu.matmul %575, %7, %cst_110 {dimension_numbers = #tpu.dot_dimension_numbers<[1], [0], [0], [1], [0, 0, 1, 1], [], []>} : vector<8x32xf32>, vector<32x64xf32>, vector<8x64xf32> -> vector<8x64xf32>
    %577 = vector.broadcast %8 : vector<1x64xf32> to vector<8x64xf32>
    %578 = arith.addf %576, %577 : vector<8x64xf32>
    %579 = arith.negf %578 : vector<8x64xf32>
    %580 = math.exp %579 : vector<8x64xf32>
    %cst_111 = arith.constant 1.000000e+00 : f32
    %581 = vector.broadcast %cst_111 : f32 to vector<8x64xf32>
    %582 = arith.addf %581, %580 : vector<8x64xf32>
    %583 = arith.divf %581, %582 : vector<8x64xf32>
    %584 = vector.extract_strided_slice %583 {offsets = [0, 0], sizes = [8, 16], strides = [1, 1]} : vector<8x64xf32> to vector<8x16xf32>
    %585 = vector.extract_strided_slice %583 {offsets = [0, 16], sizes = [8, 16], strides = [1, 1]} : vector<8x64xf32> to vector<8x16xf32>
    %586 = vector.extract_strided_slice %583 {offsets = [0, 32], sizes = [8, 16], strides = [1, 1]} : vector<8x64xf32> to vector<8x16xf32>
    %cst_112 = arith.constant 2.000000e+00 : f32
    %587 = vector.broadcast %cst_112 : f32 to vector<8x16xf32>
    %588 = arith.mulf %587, %586 : vector<8x16xf32>
    %cst_113 = arith.constant 1.000000e+00 : f32
    %589 = vector.broadcast %cst_113 : f32 to vector<8x16xf32>
    %590 = arith.subf %588, %589 : vector<8x16xf32>
    %591 = vector.extract_strided_slice %583 {offsets = [0, 48], sizes = [8, 16], strides = [1, 1]} : vector<8x64xf32> to vector<8x16xf32>
    %592 = arith.mulf %585, %545 : vector<8x16xf32>
    %593 = arith.mulf %584, %590 : vector<8x16xf32>
    %594 = arith.addf %592, %593 : vector<8x16xf32>
    %595 = math.tanh %594 : vector<8x16xf32>
    %596 = arith.mulf %591, %595 : vector<8x16xf32>
    %597 = vector.extract_strided_slice %596 {offsets = [0, 15], sizes = [8, 1], strides = [1, 1]} : vector<8x16xf32> to vector<8x1xf32>
    %598 = vector.extract_strided_slice %9 {offsets = [11, 0], sizes = [1, 4], strides = [1, 1]} : vector<16x4xf32> to vector<1x4xf32>
    %599 = vector.broadcast %597 : vector<8x1xf32> to vector<8x4xf32>
    %600 = vector.broadcast %598 : vector<1x4xf32> to vector<8x4xf32>
    %601 = arith.mulf %599, %600 : vector<8x4xf32>
    %602 = arith.addf %553, %601 : vector<8x4xf32>
    %603 = vector.extract_strided_slice %5 {offsets = [96, 0], sizes = [8, 64], strides = [1, 1]} : vector<128x64xf32> to vector<8x64xf32>
    %cst_114 = arith.constant dense<0.000000e+00> : vector<8x64xf32>
    %604 = tpu.matmul %574, %6, %cst_114 {dimension_numbers = #tpu.dot_dimension_numbers<[1], [0], [0], [1], [0, 0, 1, 1], [], []>} : vector<8x16xf32>, vector<16x64xf32>, vector<8x64xf32> -> vector<8x64xf32>
    %605 = arith.addf %603, %604 : vector<8x64xf32>
    %606 = arith.negf %605 : vector<8x64xf32>
    %607 = math.exp %606 : vector<8x64xf32>
    %cst_115 = arith.constant 1.000000e+00 : f32
    %608 = vector.broadcast %cst_115 : f32 to vector<8x64xf32>
    %609 = arith.addf %608, %607 : vector<8x64xf32>
    %610 = arith.divf %608, %609 : vector<8x64xf32>
    %611 = vector.extract_strided_slice %610 {offsets = [0, 0], sizes = [8, 16], strides = [1, 1]} : vector<8x64xf32> to vector<8x16xf32>
    %612 = vector.extract_strided_slice %610 {offsets = [0, 16], sizes = [8, 16], strides = [1, 1]} : vector<8x64xf32> to vector<8x16xf32>
    %613 = vector.extract_strided_slice %610 {offsets = [0, 32], sizes = [8, 16], strides = [1, 1]} : vector<8x64xf32> to vector<8x16xf32>
    %cst_116 = arith.constant 2.000000e+00 : f32
    %614 = vector.broadcast %cst_116 : f32 to vector<8x16xf32>
    %615 = arith.mulf %614, %613 : vector<8x16xf32>
    %cst_117 = arith.constant 1.000000e+00 : f32
    %616 = vector.broadcast %cst_117 : f32 to vector<8x16xf32>
    %617 = arith.subf %615, %616 : vector<8x16xf32>
    %618 = vector.extract_strided_slice %610 {offsets = [0, 48], sizes = [8, 16], strides = [1, 1]} : vector<8x64xf32> to vector<8x16xf32>
    %619 = arith.mulf %612, %572 : vector<8x16xf32>
    %620 = arith.mulf %611, %617 : vector<8x16xf32>
    %621 = arith.addf %619, %620 : vector<8x16xf32>
    %622 = math.tanh %621 : vector<8x16xf32>
    %623 = arith.mulf %618, %622 : vector<8x16xf32>
    %624 = tpu.concatenate %623, %596 in 1 : vector<8x16xf32>, vector<8x16xf32> -> vector<8x32xf32>
    %cst_118 = arith.constant dense<0.000000e+00> : vector<8x64xf32>
    %625 = tpu.matmul %624, %7, %cst_118 {dimension_numbers = #tpu.dot_dimension_numbers<[1], [0], [0], [1], [0, 0, 1, 1], [], []>} : vector<8x32xf32>, vector<32x64xf32>, vector<8x64xf32> -> vector<8x64xf32>
    %626 = vector.broadcast %8 : vector<1x64xf32> to vector<8x64xf32>
    %627 = arith.addf %625, %626 : vector<8x64xf32>
    %628 = arith.negf %627 : vector<8x64xf32>
    %629 = math.exp %628 : vector<8x64xf32>
    %cst_119 = arith.constant 1.000000e+00 : f32
    %630 = vector.broadcast %cst_119 : f32 to vector<8x64xf32>
    %631 = arith.addf %630, %629 : vector<8x64xf32>
    %632 = arith.divf %630, %631 : vector<8x64xf32>
    %633 = vector.extract_strided_slice %632 {offsets = [0, 0], sizes = [8, 16], strides = [1, 1]} : vector<8x64xf32> to vector<8x16xf32>
    %634 = vector.extract_strided_slice %632 {offsets = [0, 16], sizes = [8, 16], strides = [1, 1]} : vector<8x64xf32> to vector<8x16xf32>
    %635 = vector.extract_strided_slice %632 {offsets = [0, 32], sizes = [8, 16], strides = [1, 1]} : vector<8x64xf32> to vector<8x16xf32>
    %cst_120 = arith.constant 2.000000e+00 : f32
    %636 = vector.broadcast %cst_120 : f32 to vector<8x16xf32>
    %637 = arith.mulf %636, %635 : vector<8x16xf32>
    %cst_121 = arith.constant 1.000000e+00 : f32
    %638 = vector.broadcast %cst_121 : f32 to vector<8x16xf32>
    %639 = arith.subf %637, %638 : vector<8x16xf32>
    %640 = vector.extract_strided_slice %632 {offsets = [0, 48], sizes = [8, 16], strides = [1, 1]} : vector<8x64xf32> to vector<8x16xf32>
    %641 = arith.mulf %634, %594 : vector<8x16xf32>
    %642 = arith.mulf %633, %639 : vector<8x16xf32>
    %643 = arith.addf %641, %642 : vector<8x16xf32>
    %644 = math.tanh %643 : vector<8x16xf32>
    %645 = arith.mulf %640, %644 : vector<8x16xf32>
    %646 = vector.extract_strided_slice %645 {offsets = [0, 15], sizes = [8, 1], strides = [1, 1]} : vector<8x16xf32> to vector<8x1xf32>
    %647 = vector.extract_strided_slice %9 {offsets = [12, 0], sizes = [1, 4], strides = [1, 1]} : vector<16x4xf32> to vector<1x4xf32>
    %648 = vector.broadcast %646 : vector<8x1xf32> to vector<8x4xf32>
    %649 = vector.broadcast %647 : vector<1x4xf32> to vector<8x4xf32>
    %650 = arith.mulf %648, %649 : vector<8x4xf32>
    %651 = arith.addf %602, %650 : vector<8x4xf32>
    %652 = vector.extract_strided_slice %5 {offsets = [104, 0], sizes = [8, 64], strides = [1, 1]} : vector<128x64xf32> to vector<8x64xf32>
    %cst_122 = arith.constant dense<0.000000e+00> : vector<8x64xf32>
    %653 = tpu.matmul %623, %6, %cst_122 {dimension_numbers = #tpu.dot_dimension_numbers<[1], [0], [0], [1], [0, 0, 1, 1], [], []>} : vector<8x16xf32>, vector<16x64xf32>, vector<8x64xf32> -> vector<8x64xf32>
    %654 = arith.addf %652, %653 : vector<8x64xf32>
    %655 = arith.negf %654 : vector<8x64xf32>
    %656 = math.exp %655 : vector<8x64xf32>
    %cst_123 = arith.constant 1.000000e+00 : f32
    %657 = vector.broadcast %cst_123 : f32 to vector<8x64xf32>
    %658 = arith.addf %657, %656 : vector<8x64xf32>
    %659 = arith.divf %657, %658 : vector<8x64xf32>
    %660 = vector.extract_strided_slice %659 {offsets = [0, 0], sizes = [8, 16], strides = [1, 1]} : vector<8x64xf32> to vector<8x16xf32>
    %661 = vector.extract_strided_slice %659 {offsets = [0, 16], sizes = [8, 16], strides = [1, 1]} : vector<8x64xf32> to vector<8x16xf32>
    %662 = vector.extract_strided_slice %659 {offsets = [0, 32], sizes = [8, 16], strides = [1, 1]} : vector<8x64xf32> to vector<8x16xf32>
    %cst_124 = arith.constant 2.000000e+00 : f32
    %663 = vector.broadcast %cst_124 : f32 to vector<8x16xf32>
    %664 = arith.mulf %663, %662 : vector<8x16xf32>
    %cst_125 = arith.constant 1.000000e+00 : f32
    %665 = vector.broadcast %cst_125 : f32 to vector<8x16xf32>
    %666 = arith.subf %664, %665 : vector<8x16xf32>
    %667 = vector.extract_strided_slice %659 {offsets = [0, 48], sizes = [8, 16], strides = [1, 1]} : vector<8x64xf32> to vector<8x16xf32>
    %668 = arith.mulf %661, %621 : vector<8x16xf32>
    %669 = arith.mulf %660, %666 : vector<8x16xf32>
    %670 = arith.addf %668, %669 : vector<8x16xf32>
    %671 = math.tanh %670 : vector<8x16xf32>
    %672 = arith.mulf %667, %671 : vector<8x16xf32>
    %673 = tpu.concatenate %672, %645 in 1 : vector<8x16xf32>, vector<8x16xf32> -> vector<8x32xf32>
    %cst_126 = arith.constant dense<0.000000e+00> : vector<8x64xf32>
    %674 = tpu.matmul %673, %7, %cst_126 {dimension_numbers = #tpu.dot_dimension_numbers<[1], [0], [0], [1], [0, 0, 1, 1], [], []>} : vector<8x32xf32>, vector<32x64xf32>, vector<8x64xf32> -> vector<8x64xf32>
    %675 = vector.broadcast %8 : vector<1x64xf32> to vector<8x64xf32>
    %676 = arith.addf %674, %675 : vector<8x64xf32>
    %677 = arith.negf %676 : vector<8x64xf32>
    %678 = math.exp %677 : vector<8x64xf32>
    %cst_127 = arith.constant 1.000000e+00 : f32
    %679 = vector.broadcast %cst_127 : f32 to vector<8x64xf32>
    %680 = arith.addf %679, %678 : vector<8x64xf32>
    %681 = arith.divf %679, %680 : vector<8x64xf32>
    %682 = vector.extract_strided_slice %681 {offsets = [0, 0], sizes = [8, 16], strides = [1, 1]} : vector<8x64xf32> to vector<8x16xf32>
    %683 = vector.extract_strided_slice %681 {offsets = [0, 16], sizes = [8, 16], strides = [1, 1]} : vector<8x64xf32> to vector<8x16xf32>
    %684 = vector.extract_strided_slice %681 {offsets = [0, 32], sizes = [8, 16], strides = [1, 1]} : vector<8x64xf32> to vector<8x16xf32>
    %cst_128 = arith.constant 2.000000e+00 : f32
    %685 = vector.broadcast %cst_128 : f32 to vector<8x16xf32>
    %686 = arith.mulf %685, %684 : vector<8x16xf32>
    %cst_129 = arith.constant 1.000000e+00 : f32
    %687 = vector.broadcast %cst_129 : f32 to vector<8x16xf32>
    %688 = arith.subf %686, %687 : vector<8x16xf32>
    %689 = vector.extract_strided_slice %681 {offsets = [0, 48], sizes = [8, 16], strides = [1, 1]} : vector<8x64xf32> to vector<8x16xf32>
    %690 = arith.mulf %683, %643 : vector<8x16xf32>
    %691 = arith.mulf %682, %688 : vector<8x16xf32>
    %692 = arith.addf %690, %691 : vector<8x16xf32>
    %693 = math.tanh %692 : vector<8x16xf32>
    %694 = arith.mulf %689, %693 : vector<8x16xf32>
    %695 = vector.extract_strided_slice %694 {offsets = [0, 15], sizes = [8, 1], strides = [1, 1]} : vector<8x16xf32> to vector<8x1xf32>
    %696 = vector.extract_strided_slice %9 {offsets = [13, 0], sizes = [1, 4], strides = [1, 1]} : vector<16x4xf32> to vector<1x4xf32>
    %697 = vector.broadcast %695 : vector<8x1xf32> to vector<8x4xf32>
    %698 = vector.broadcast %696 : vector<1x4xf32> to vector<8x4xf32>
    %699 = arith.mulf %697, %698 : vector<8x4xf32>
    %700 = arith.addf %651, %699 : vector<8x4xf32>
    %701 = vector.extract_strided_slice %5 {offsets = [112, 0], sizes = [8, 64], strides = [1, 1]} : vector<128x64xf32> to vector<8x64xf32>
    %cst_130 = arith.constant dense<0.000000e+00> : vector<8x64xf32>
    %702 = tpu.matmul %672, %6, %cst_130 {dimension_numbers = #tpu.dot_dimension_numbers<[1], [0], [0], [1], [0, 0, 1, 1], [], []>} : vector<8x16xf32>, vector<16x64xf32>, vector<8x64xf32> -> vector<8x64xf32>
    %703 = arith.addf %701, %702 : vector<8x64xf32>
    %704 = arith.negf %703 : vector<8x64xf32>
    %705 = math.exp %704 : vector<8x64xf32>
    %cst_131 = arith.constant 1.000000e+00 : f32
    %706 = vector.broadcast %cst_131 : f32 to vector<8x64xf32>
    %707 = arith.addf %706, %705 : vector<8x64xf32>
    %708 = arith.divf %706, %707 : vector<8x64xf32>
    %709 = vector.extract_strided_slice %708 {offsets = [0, 0], sizes = [8, 16], strides = [1, 1]} : vector<8x64xf32> to vector<8x16xf32>
    %710 = vector.extract_strided_slice %708 {offsets = [0, 16], sizes = [8, 16], strides = [1, 1]} : vector<8x64xf32> to vector<8x16xf32>
    %711 = vector.extract_strided_slice %708 {offsets = [0, 32], sizes = [8, 16], strides = [1, 1]} : vector<8x64xf32> to vector<8x16xf32>
    %cst_132 = arith.constant 2.000000e+00 : f32
    %712 = vector.broadcast %cst_132 : f32 to vector<8x16xf32>
    %713 = arith.mulf %712, %711 : vector<8x16xf32>
    %cst_133 = arith.constant 1.000000e+00 : f32
    %714 = vector.broadcast %cst_133 : f32 to vector<8x16xf32>
    %715 = arith.subf %713, %714 : vector<8x16xf32>
    %716 = vector.extract_strided_slice %708 {offsets = [0, 48], sizes = [8, 16], strides = [1, 1]} : vector<8x64xf32> to vector<8x16xf32>
    %717 = arith.mulf %710, %670 : vector<8x16xf32>
    %718 = arith.mulf %709, %715 : vector<8x16xf32>
    %719 = arith.addf %717, %718 : vector<8x16xf32>
    %720 = math.tanh %719 : vector<8x16xf32>
    %721 = arith.mulf %716, %720 : vector<8x16xf32>
    %722 = tpu.concatenate %721, %694 in 1 : vector<8x16xf32>, vector<8x16xf32> -> vector<8x32xf32>
    %cst_134 = arith.constant dense<0.000000e+00> : vector<8x64xf32>
    %723 = tpu.matmul %722, %7, %cst_134 {dimension_numbers = #tpu.dot_dimension_numbers<[1], [0], [0], [1], [0, 0, 1, 1], [], []>} : vector<8x32xf32>, vector<32x64xf32>, vector<8x64xf32> -> vector<8x64xf32>
    %724 = vector.broadcast %8 : vector<1x64xf32> to vector<8x64xf32>
    %725 = arith.addf %723, %724 : vector<8x64xf32>
    %726 = arith.negf %725 : vector<8x64xf32>
    %727 = math.exp %726 : vector<8x64xf32>
    %cst_135 = arith.constant 1.000000e+00 : f32
    %728 = vector.broadcast %cst_135 : f32 to vector<8x64xf32>
    %729 = arith.addf %728, %727 : vector<8x64xf32>
    %730 = arith.divf %728, %729 : vector<8x64xf32>
    %731 = vector.extract_strided_slice %730 {offsets = [0, 0], sizes = [8, 16], strides = [1, 1]} : vector<8x64xf32> to vector<8x16xf32>
    %732 = vector.extract_strided_slice %730 {offsets = [0, 16], sizes = [8, 16], strides = [1, 1]} : vector<8x64xf32> to vector<8x16xf32>
    %733 = vector.extract_strided_slice %730 {offsets = [0, 32], sizes = [8, 16], strides = [1, 1]} : vector<8x64xf32> to vector<8x16xf32>
    %cst_136 = arith.constant 2.000000e+00 : f32
    %734 = vector.broadcast %cst_136 : f32 to vector<8x16xf32>
    %735 = arith.mulf %734, %733 : vector<8x16xf32>
    %cst_137 = arith.constant 1.000000e+00 : f32
    %736 = vector.broadcast %cst_137 : f32 to vector<8x16xf32>
    %737 = arith.subf %735, %736 : vector<8x16xf32>
    %738 = vector.extract_strided_slice %730 {offsets = [0, 48], sizes = [8, 16], strides = [1, 1]} : vector<8x64xf32> to vector<8x16xf32>
    %739 = arith.mulf %732, %692 : vector<8x16xf32>
    %740 = arith.mulf %731, %737 : vector<8x16xf32>
    %741 = arith.addf %739, %740 : vector<8x16xf32>
    %742 = math.tanh %741 : vector<8x16xf32>
    %743 = arith.mulf %738, %742 : vector<8x16xf32>
    %744 = vector.extract_strided_slice %743 {offsets = [0, 15], sizes = [8, 1], strides = [1, 1]} : vector<8x16xf32> to vector<8x1xf32>
    %745 = vector.extract_strided_slice %9 {offsets = [14, 0], sizes = [1, 4], strides = [1, 1]} : vector<16x4xf32> to vector<1x4xf32>
    %746 = vector.broadcast %744 : vector<8x1xf32> to vector<8x4xf32>
    %747 = vector.broadcast %745 : vector<1x4xf32> to vector<8x4xf32>
    %748 = arith.mulf %746, %747 : vector<8x4xf32>
    %749 = arith.addf %700, %748 : vector<8x4xf32>
    %750 = vector.extract_strided_slice %5 {offsets = [120, 0], sizes = [8, 64], strides = [1, 1]} : vector<128x64xf32> to vector<8x64xf32>
    %cst_138 = arith.constant dense<0.000000e+00> : vector<8x64xf32>
    %751 = tpu.matmul %721, %6, %cst_138 {dimension_numbers = #tpu.dot_dimension_numbers<[1], [0], [0], [1], [0, 0, 1, 1], [], []>} : vector<8x16xf32>, vector<16x64xf32>, vector<8x64xf32> -> vector<8x64xf32>
    %752 = arith.addf %750, %751 : vector<8x64xf32>
    %753 = arith.negf %752 : vector<8x64xf32>
    %754 = math.exp %753 : vector<8x64xf32>
    %cst_139 = arith.constant 1.000000e+00 : f32
    %755 = vector.broadcast %cst_139 : f32 to vector<8x64xf32>
    %756 = arith.addf %755, %754 : vector<8x64xf32>
    %757 = arith.divf %755, %756 : vector<8x64xf32>
    %758 = vector.extract_strided_slice %757 {offsets = [0, 0], sizes = [8, 16], strides = [1, 1]} : vector<8x64xf32> to vector<8x16xf32>
    %759 = vector.extract_strided_slice %757 {offsets = [0, 16], sizes = [8, 16], strides = [1, 1]} : vector<8x64xf32> to vector<8x16xf32>
    %760 = vector.extract_strided_slice %757 {offsets = [0, 32], sizes = [8, 16], strides = [1, 1]} : vector<8x64xf32> to vector<8x16xf32>
    %cst_140 = arith.constant 2.000000e+00 : f32
    %761 = vector.broadcast %cst_140 : f32 to vector<8x16xf32>
    %762 = arith.mulf %761, %760 : vector<8x16xf32>
    %cst_141 = arith.constant 1.000000e+00 : f32
    %763 = vector.broadcast %cst_141 : f32 to vector<8x16xf32>
    %764 = arith.subf %762, %763 : vector<8x16xf32>
    %765 = vector.extract_strided_slice %757 {offsets = [0, 48], sizes = [8, 16], strides = [1, 1]} : vector<8x64xf32> to vector<8x16xf32>
    %766 = arith.mulf %759, %719 : vector<8x16xf32>
    %767 = arith.mulf %758, %764 : vector<8x16xf32>
    %768 = arith.addf %766, %767 : vector<8x16xf32>
    %769 = math.tanh %768 : vector<8x16xf32>
    %770 = arith.mulf %765, %769 : vector<8x16xf32>
    %771 = tpu.concatenate %770, %743 in 1 : vector<8x16xf32>, vector<8x16xf32> -> vector<8x32xf32>
    %cst_142 = arith.constant dense<0.000000e+00> : vector<8x64xf32>
    %772 = tpu.matmul %771, %7, %cst_142 {dimension_numbers = #tpu.dot_dimension_numbers<[1], [0], [0], [1], [0, 0, 1, 1], [], []>} : vector<8x32xf32>, vector<32x64xf32>, vector<8x64xf32> -> vector<8x64xf32>
    %773 = vector.broadcast %8 : vector<1x64xf32> to vector<8x64xf32>
    %774 = arith.addf %772, %773 : vector<8x64xf32>
    %775 = arith.negf %774 : vector<8x64xf32>
    %776 = math.exp %775 : vector<8x64xf32>
    %cst_143 = arith.constant 1.000000e+00 : f32
    %777 = vector.broadcast %cst_143 : f32 to vector<8x64xf32>
    %778 = arith.addf %777, %776 : vector<8x64xf32>
    %779 = arith.divf %777, %778 : vector<8x64xf32>
    %780 = vector.extract_strided_slice %779 {offsets = [0, 0], sizes = [8, 16], strides = [1, 1]} : vector<8x64xf32> to vector<8x16xf32>
    %781 = vector.extract_strided_slice %779 {offsets = [0, 16], sizes = [8, 16], strides = [1, 1]} : vector<8x64xf32> to vector<8x16xf32>
    %782 = vector.extract_strided_slice %779 {offsets = [0, 32], sizes = [8, 16], strides = [1, 1]} : vector<8x64xf32> to vector<8x16xf32>
    %cst_144 = arith.constant 2.000000e+00 : f32
    %783 = vector.broadcast %cst_144 : f32 to vector<8x16xf32>
    %784 = arith.mulf %783, %782 : vector<8x16xf32>
    %cst_145 = arith.constant 1.000000e+00 : f32
    %785 = vector.broadcast %cst_145 : f32 to vector<8x16xf32>
    %786 = arith.subf %784, %785 : vector<8x16xf32>
    %787 = vector.extract_strided_slice %779 {offsets = [0, 48], sizes = [8, 16], strides = [1, 1]} : vector<8x64xf32> to vector<8x16xf32>
    %788 = arith.mulf %781, %741 : vector<8x16xf32>
    %789 = arith.mulf %780, %786 : vector<8x16xf32>
    %790 = arith.addf %788, %789 : vector<8x16xf32>
    %791 = math.tanh %790 : vector<8x16xf32>
    %792 = arith.mulf %787, %791 : vector<8x16xf32>
    %793 = vector.extract_strided_slice %792 {offsets = [0, 15], sizes = [8, 1], strides = [1, 1]} : vector<8x16xf32> to vector<8x1xf32>
    %794 = vector.extract_strided_slice %9 {offsets = [15, 0], sizes = [1, 4], strides = [1, 1]} : vector<16x4xf32> to vector<1x4xf32>
    %795 = vector.broadcast %793 : vector<8x1xf32> to vector<8x4xf32>
    %796 = vector.broadcast %794 : vector<1x4xf32> to vector<8x4xf32>
    %797 = arith.mulf %795, %796 : vector<8x4xf32>
    %798 = arith.addf %749, %797 : vector<8x4xf32>
    %c0_146 = arith.constant 0 : index
    %c0_147 = arith.constant 0 : index
    %799 = vector.load %arg7[%c0_146, %c0_147] : memref<1x4xf32, #tpu.memory_space<vmem>>, vector<1x4xf32>
    %800 = vector.broadcast %799 : vector<1x4xf32> to vector<8x4xf32>
    %801 = arith.addf %798, %800 : vector<8x4xf32>
    %c0_148 = arith.constant 0 : index
    %c0_149 = arith.constant 0 : index
    %802 = vector.load %arg8[%c0_148, %c0_149] : memref<8x4xf32, #tpu.memory_space<vmem>>, vector<8x4xf32>
    tpu.vector_store %arg8[%c0_148, %c0_149], %801 {strides = array<i32>} : memref<8x4xf32, #tpu.memory_space<vmem>>, vector<8x4xf32>,
    return
  }
}

</mosaic_0001>

<bundles_post_ra>
// kernel: lstm_model_forward.1
= control target key start
LH: loop header
LB: loop body
LE: loop exit
PB: predicated region body
PF: predicated region fallthrough
CT: control target
= control target key end

     0   :  { %vm54_vm0 = vcmask 130048   ;;  %v4644_v2 = vmov 0.0|0.0   ;;  %vm4645_vm1 = vmmov 0   ;;  %v4646_v4 = vmov 0.0   ;;  %s4647_s17 = smov 96   ;;  %s4648_s18 = smov 16   ;;  %s5318_s1 = inlined_call_operand.vmem [shape: f32[16,64], index: 1, kind: input, shape index: {}]   ;;  %s5319_s0 = inlined_call_operand.vmem [shape: f32[128,16], index: 0, kind: input, shape index: {}]   ;;  %s5320_s2 = inlined_call_operand.vmem [shape: f32[16,64], index: 2, kind: input, shape index: {}]   ;;  %s5321_s3 = inlined_call_operand.vmem [shape: f32[1,64], index: 3, kind: input, shape index: {}]   ;;  %s5322_s4 = inlined_call_operand.vmem [shape: f32[32,64], index: 4, kind: input, shape index: {}]   ;;  %s5323_s5 = inlined_call_operand.vmem [shape: f32[1,64], index: 5, kind: input, shape index: {}]   ;;  %s5324_s6 = inlined_call_operand.vmem [shape: f32[16,4], index: 6, kind: input, shape index: {}]   ;;  %s5325_s7 = inlined_call_operand.vmem [shape: f32[1,4], index: 7, kind: input, shape index: {}]   ;;  %s5326_s8 = inlined_call_operand.vmem [shape: f32[8,4], index: 8, kind: output, shape index: {}]  }
   0x1   :  { %v45_v0 = vld [vmem:[%s5318_s1] sm:$0xff]  ;;  %v46_v1 = vld [vmem:[%s5318_s1 + $0x8] sm:$0xff]  ;;  %4296 = vmatprep.subr.bf16.mxu1 %v4644_v2  ;;  %4008 = vmatprep.mubr.msk.f32.mxu1 %vm4645_vm1, %v4646_v4  ;;  %v252_v30 = vld [vmem:[%s5322_s4 + $0x10] sm:$0xff]  ;;  %s4650_s27 = smov 80   ;;  %vm367_vm2 = vcmask 261120   ;;  %vm3710_vm3 = vcmask 31744  }
   0x2   :  { %v29_v3 = vld [vmem:[%s5319_s0] sm:$0xff]  ;;  %v4292_v5 = vpack.c.bf16 %v46_v1, %v45_v0  ;;  %v249_v7 = vld [vmem:[%s5320_s2 + $0x8] sm:$0xff]  ;;  %v253_v32 = vld [vmem:[%s5322_s4 + $0x18] sm:$0xff] }
   0x3   :  { %3980 = vmatprep.mubr.msk.f32.mxu0 %vm54_vm0, %v29_v3  ;;  %v248_v6 = vld [vmem:[%s5320_s2] sm:$0xff]  ;;  %v30_v9 = vld [vmem:[%s5319_s0 + $0x8] sm:$0xff]  ;;  %v4756_v33 = vpack.c.bf16 %v253_v32, %v252_v30 }
   0x4   :  { %v4716_v8 = vpack.c.bf16 %v249_v7, %v248_v6  ;;  %4293 = vmatprep.subr.bf16.mxu0 %v4292_v5  ;;  %v4731_v10 = vld [vmem:[%s5321_s3] ss:$0 sm:$0xff]  ;;  %v251_v29 = vld [vmem:[%s5322_s4 + $0x8] sm:$0xff] }
   0x5   :  { %4295 = vmatpush3.bf16.msra.mxu0 %v4292_v5  ;;  %v250_v28 = vld [vmem:[%s5322_s4] sm:$0xff]  ;;  %s4649_s4 = smov 32  }
   0x6   :  { %4298 = vmatpush3.bf16.msra.mxu1 %v4716_v8  ;;  %4317 = vmatprep.subr.bf16.mxu0 %v4644_v2  ;;  %v4750_v31 = vpack.c.bf16 %v251_v29, %v250_v28  ;;  %v4783_v39 = vld [vmem:[%s5323_s5] ss:$0 sm:$0xff] }
   0x7   :  { %4299 = vmatprep.subr.bf16.mxu1 %v4644_v2 }
   0x8   :  { %3981 = vmatmul.mubr.msk.f32.vlgmr.msra.gmra.mrb[0].mxu0 %vm54_vm0, %v30_v9 }
   0x9   :  { %4009 = vmatmul.mubr.f32.vlgmr.msra.gmra.mrb[0].mxu1 %v4646_v4  ;;  %4319 = vmatpush3.bf16.msra.mxu0 %v4750_v31 }
   0xa   :  { %4019 = vmatprep.mubr.msk.f32.mxu1 %vm4645_vm1, %v4646_v4  ;;  %4301 = vmatpush3.bf16.msra.mxu1 %v4750_v31 }
   0xb   :  { %4302 = vmatprep.subr.bf16.mxu1 %v4644_v2  ;;  %4320 = vmatprep.subr.bf16.mxu0 %v4644_v2 }
   0xd   :  { %4322 = vmatpush3.bf16.msra.mxu0 %v4756_v33 }
   0xe   :  { %4304 = vmatpush3.bf16.msra.mxu1 %v4756_v33  ;;  %4332 = vmatprep.subr.bf16.mxu0 %v4644_v2 }
   0xf   :  { %4305 = vmatprep.subr.bf16.mxu1 %v4644_v2 }
  0xdb   :  { %v4733_v11 = vpop.f32.mrb[0].mxu0 }
  0xdc   :  { %v326_v12 = vpop.f32.mrb[0].mxu1  ;;  %v169_v13 = vpop.f32.mrb[1].mxu0  ;;  %v175_v43 = vadd.f32 %v4733_v11, %v4731_v10  ;;  %v31_v11 = vld [vmem:[%s5319_s0 + $0x10] sm:$0xff] }
  0xdd   :  { %v4010_v14 = vpop.f32.mrb[1].mxu1  ;;  %v170_v15 = vadd.f32 %v4731_v10, %v169_v13  ;;  %3983 = vmatprep.mubr.msk.f32.mxu0 %vm54_vm0, %v31_v11 }
  0xdf   :  { %v330_v16 = vadd.f32 %v326_v12, %v170_v15  ;;  %v32_v12 = vld [vmem:[%s5319_s0 + $0x18] sm:$0xff] }
  0xe0   :  { %3984 = vmatmul.mubr.msk.f32.gmra.mrb[2].mxu0 %vm54_vm0, %v32_v12 }
  0xe1   :  { %v3733_v17 = vmul.f32 -1.442695, %v330_v16 }
  0xe3   :  { %4450 = vpow2.f32 %v3733_v17 }
  0xed   :  { %v4451_v18 = vpop.eup %4450 }
  0xee   :  { %v334_v19 = vadd.f32 1.0, %v4451_v18 }
  0xf0   :  { %4452 = vrcp.f32 %v334_v19 }
  0xfa   :  { %v4453_v20 = vpop.eup %4452 }
  0xfb   :  { %v337_v21 = vmul.f32 2.0, %v4453_v20  ;;  %v339_v25 = vmul.f32 0.0, %v4453_v20 }
  0xfd   :  { %v3734_v22 = vadd.f32 -1.0, %v337_v21 }
  0xff   :  { %341 = vrot.lane.b32.xlu0 %v3734_v22, %s4647_s17 }
 0x171   :  { %v342_v23 = vpop.permute.xlu0 %341 }
 0x172   :  { %v344_v24 = vmul.f32 %v4453_v20, %v342_v23 }
 0x174   :  { %346 = vrot.lane.b32.xlu0 %v344_v24, %s4648_s18 }
 0x1e6   :  { %v347_v26 = vpop.permute.xlu0 %346 }
 0x1e7   :  { %v4738_v27 = vadd.f32 %v347_v26, %v339_v25 }
 0x1e9   :  { %4454 = vtanh.f32 %v4738_v27 }
 0x1f3   :  { %v4455_v34 = vpop.eup %4454 }
 0x1f4   :  { %352 = vrot.lane.b32.xlu1 %v4455_v34, %s4649_s4 }
 0x266   :  { %v353_v35 = vpop.permute.xlu1 %352 }
 0x267   :  { %v355_v36 = vmul.f32 %v4453_v20, %v353_v35  ;;  %v4825_v20 = vpop.f32.mrb[2].mxu0 }
 0x268   :  { %v179_v21 = vpop.f32.mrb[3].mxu0 }
 0x269   :  { %357 = vrot.lane.b32.xlu1 %v355_v36, %s4650_s27  ;;  %v180_v24 = vadd.f32 %v4731_v10, %v179_v21 }
 0x2db   :  { %v358_v37 = vpop.permute.xlu1 %357 }
 0x2dc   :  { %v360_v38 = vsel %vm54_vm0, %v358_v37, 0.0 }
 0x2dd   :  { %4020 = vmatmul.mubr.msk.f32.vlgmr.msra.gmra.mrb[2].mxu1 %vm367_vm2, %v360_v38 }
 0x2de   :  { %4307 = vmatpush3.bf16.msra.mxu1 %v4716_v8  ;;  %4026 = vmatprep.mubr.msk.f32.mxu1 %vm4645_vm1, %v4646_v4 }
 0x2df   :  { %4308 = vmatprep.subr.bf16.mxu1 %v4644_v2 }
 0x2e1   :  { %4027 = vmatmul.mubr.msk.f32.vlgmr.msra.gmra.mrb[4].mxu1 %vm54_vm0, %v358_v37 }
 0x2e2   :  { %4310 = vmatpush3.bf16.msra.mxu1 %v4750_v31  ;;  %4037 = vmatprep.mubr.msk.f32.mxu1 %vm4645_vm1, %v4646_v4 }
 0x2e3   :  { %4311 = vmatprep.subr.bf16.mxu1 %v4644_v2 }
 0x2e6   :  { %4313 = vmatpush3.bf16.msra.mxu1 %v4756_v33 }
 0x2e7   :  { %4314 = vmatprep.subr.bf16.mxu1 %v4644_v2 }
 0x3b0   :  { %v437_v40 = vpop.f32.mrb[2].mxu1 }
 0x3b1   :  { %v438_v41 = vadd.f32 %v4783_v39, %v437_v40  ;;  %v4021_v42 = vpop.f32.mrb[3].mxu1 }
 0x3b3   :  { %v3737_v44 = vmul.f32 -1.442695, %v438_v41 }
 0x3b4   :  { %v545_v45 = vpop.f32.mrb[4].mxu1 }
 0x3b5   :  { %4456 = vpow2.f32 %v3737_v44  ;;  %v549_v46 = vadd.f32 %v545_v45, %v175_v43  ;;  %v4028_v47 = vpop.f32.mrb[5].mxu1 }
 0x3b7   :  { %v3740_v48 = vmul.f32 -1.442695, %v549_v46 }
 0x3b9   :  { %4458 = vpow2.f32 %v3740_v48 }
 0x3bf   :  { %v4457_v49 = vpop.eup %4456 }
 0x3c0   :  { %v444_v50 = vadd.f32 1.0, %v4457_v49 }
 0x3c2   :  { %4460 = vrcp.f32 %v444_v50 }
 0x3c3   :  { %v4459_v51 = vpop.eup %4458 }
 0x3c4   :  { %v553_v52 = vadd.f32 1.0, %v4459_v51 }
 0x3c6   :  { %4462 = vrcp.f32 %v553_v52 }
 0x3cc   :  { %v4461_v53 = vpop.eup %4460 }
 0x3cd   :  { %v447_v54 = vmul.f32 2.0, %v4461_v53  ;;  %v449_v63 = vmul.f32 0.0, %v4461_v53 }
 0x3cf   :  { %v3738_v55 = vadd.f32 -1.0, %v447_v54  ;;  %v33_v54 = vld [vmem:[%s5319_s0 + $0x20] sm:$0xff] }
 0x3d0   :  { %v4463_v56 = vpop.eup %4462  ;;  %3986 = vmatprep.mubr.msk.f32.mxu0 %vm54_vm0, %v33_v54 }
 0x3d1   :  { %451 = vrot.lane.b32.xlu0 %v3738_v55, %s4647_s17  ;;  %v556_v57 = vmul.f32 2.0, %v4463_v56  ;;  %v558_v3 = vmul.f32 %v4463_v56, %v4738_v27  ;;  %v34_v55 = vld [vmem:[%s5319_s0 + $0x28] sm:$0xff] }
 0x3d2   :  { %3987 = vmatmul.mubr.msk.f32.gmra.mrb[4].mxu0 %vm54_vm0, %v34_v55 }
 0x3d3   :  { %v3741_v58 = vadd.f32 -1.0, %v556_v57  ;;  %v36_v57 = vld [vmem:[%s5319_s0 + $0x38] sm:$0xff] }
 0x3d5   :  { %560 = vrot.lane.b32.xlu1 %v3741_v58, %s4647_s17  ;;  %v37_v58 = vld [vmem:[%s5319_s0 + $0x40] sm:$0xff] }
 0x443   :  { %v452_v59 = vpop.permute.xlu0 %451 }
 0x444   :  { %v454_v60 = vmul.f32 %v4461_v53, %v452_v59 }
 0x446   :  { %456 = vrot.lane.b32.xlu0 %v454_v60, %s4648_s18  ;;  %v38_v60 = vld [vmem:[%s5319_s0 + $0x48] sm:$0xff] }
 0x447   :  { %v561_v61 = vpop.permute.xlu1 %560 }
 0x448   :  { %v563_v62 = vmul.f32 %v4463_v56, %v561_v61  ;;  %v39_v61 = vld [vmem:[%s5319_s0 + $0x50] sm:$0xff] }
 0x44a   :  { %565 = vrot.lane.b32.xlu1 %v563_v62, %s4648_s18 }
 0x4a5   :  { %v4898_v12 = vpop.f32.mrb[4].mxu0 }
 0x4b8   :  { %v457_v0 = vpop.permute.xlu0 %456 }
 0x4b9   :  { %v4792_v1 = vadd.f32 %v457_v0, %v449_v63  ;;  %v40_v63 = vld [vmem:[%s5319_s0 + $0x58] sm:$0xff]  ;;  %v41_v0 = vld [vmem:[%s5319_s0 + $0x60] sm:$0xff] }
 0x4bb   :  { %4464 = vtanh.f32 %v4792_v1 }
 0x4bc   :  { %v566_v5 = vpop.permute.xlu1 %565 }
 0x4bd   :  { %v4796_v6 = vadd.f32 %v566_v5, %v558_v3  ;;  %v43_v3 = vld [vmem:[%s5319_s0 + $0x70] sm:$0xff]  ;;  %v44_v5 = vld [vmem:[%s5319_s0 + $0x78] sm:$0xff] }
 0x4bf   :  { %4466 = vtanh.f32 %v4796_v6 }
 0x4c5   :  { %v4465_v7 = vpop.eup %4464 }
 0x4c6   :  { %462 = vrot.lane.b32.xlu0 %v4465_v7, %s4649_s4 }
 0x4c9   :  { %v4467_v9 = vpop.eup %4466 }
 0x4ca   :  { %571 = vrot.lane.b32.xlu1 %v4467_v9, %s4649_s4 }
 0x538   :  { %v463_v13 = vpop.permute.xlu0 %462 }
 0x539   :  { %v4809_v14 = vmul.f32 %v4461_v53, %v463_v13  ;;  %v4900_v13 = vpop.f32.mrb[5].mxu0 }
 0x53b   :  { %579 = vrot.lane.b32.xlu1 %v4809_v14, %s4647_s17 }
 0x53c   :  { %v572_v15 = vpop.permute.xlu1 %571 }
 0x53d   :  { %v574_v16 = vmul.f32 %v4463_v56, %v572_v15  ;;  %v35_v56 = vld [vmem:[%s5319_s0 + $0x30] sm:$0xff] }
 0x53e   :  { %3989 = vmatprep.mubr.msk.f32.mxu0 %vm54_vm0, %v35_v56 }
 0x53f   :  { %576 = vrot.lane.b32.xlu0 %v574_v16, %s4650_s27  ;;  %3990 = vmatmul.mubr.msk.f32.gmra.mrb[6].mxu0 %vm54_vm0, %v36_v57 }
 0x540   :  { %3992 = vmatprep.mubr.msk.f32.mxu0 %vm54_vm0, %v37_v58 }
 0x543   :  { %3993 = vmatmul.mubr.msk.f32.gmra.mrb[8].mxu0 %vm54_vm0, %v38_v60 }
 0x544   :  { %3995 = vmatprep.mubr.msk.f32.mxu0 %vm54_vm0, %v39_v61 }
 0x547   :  { %3996 = vmatmul.mubr.msk.f32.gmra.mrb[10].mxu0 %vm54_vm0, %v40_v63 }
 0x548   :  { %3998 = vmatprep.mubr.msk.f32.mxu0 %vm54_vm0, %v41_v0 }
 0x5ad   :  { %v580_v17 = vpop.permute.xlu1 %579 }
 0x5b1   :  { %v577_v18 = vpop.permute.xlu0 %576 }
 0x5b2   :  { %v582_v19 = vsel %vm54_vm0, %v577_v18, %v580_v17 }
 0x5b3   :  { %4038 = vmatmul.mubr.msk.f32.vlgmr.msra.gmra.mrb[6].mxu1 %vm367_vm2, %v582_v19 }
 0x5b4   :  { %4316 = vmatpush3.bf16.msra.mxu1 %v4716_v8  ;;  %4044 = vmatprep.mubr.msk.f32.mxu1 %vm4645_vm1, %v4646_v4 }
 0x5b5   :  { %4323 = vmatprep.subr.bf16.mxu1 %v4644_v2 }
 0x5b7   :  { %4045 = vmatmul.mubr.msk.f32.vlgmr.msra.gmra.mrb[8].mxu1 %vm54_vm0, %v577_v18 }
 0x5b8   :  { %4325 = vmatpush3.bf16.msra.mxu1 %v4716_v8  ;;  %4062 = vmatprep.mubr.msk.f32.mxu1 %vm4645_vm1, %v4646_v4 }
 0x5b9   :  { %4326 = vmatprep.subr.bf16.mxu1 %v4644_v2 }
 0x612   :  { %v4902_v15 = vpop.f32.mrb[6].mxu0 }
 0x613   :  { %v4904_v16 = vpop.f32.mrb[7].mxu0 }
 0x616   :  { %v4906_v17 = vpop.f32.mrb[8].mxu0 }
 0x617   :  { %v4908_v18 = vpop.f32.mrb[9].mxu0 }
 0x61a   :  { %v4910_v19 = vpop.f32.mrb[10].mxu0 }
 0x61b   :  { %v4912_v21 = vpop.f32.mrb[11].mxu0 }
 0x686   :  { %v652_v22 = vpop.f32.mrb[6].mxu1 }
 0x687   :  { %v653_v23 = vadd.f32 %v4783_v39, %v652_v22  ;;  %v4039_v25 = vpop.f32.mrb[7].mxu1 }
 0x689   :  { %v3743_v26 = vmul.f32 -1.442695, %v653_v23 }
 0x68a   :  { %v760_v27 = vpop.f32.mrb[8].mxu1 }
 0x68b   :  { %4468 = vpow2.f32 %v3743_v26  ;;  %v764_v28 = vadd.f32 %v760_v27, %v180_v24  ;;  %v4046_v29 = vpop.f32.mrb[9].mxu1 }
 0x68c   :  { %v185_v29 = vadd.f32 %v4825_v20, %v4731_v10 }
 0x68d   :  { %v3746_v30 = vmul.f32 -1.442695, %v764_v28 }
 0x68f   :  { %4470 = vpow2.f32 %v3746_v30 }
 0x695   :  { %v4469_v32 = vpop.eup %4468 }
 0x696   :  { %v659_v34 = vadd.f32 1.0, %v4469_v32 }
 0x698   :  { %4472 = vrcp.f32 %v659_v34 }
 0x699   :  { %v4471_v35 = vpop.eup %4470 }
 0x69a   :  { %v768_v36 = vadd.f32 1.0, %v4471_v35 }
 0x69c   :  { %4474 = vrcp.f32 %v768_v36 }
 0x6a2   :  { %v4473_v37 = vpop.eup %4472 }
 0x6a3   :  { %v662_v38 = vmul.f32 2.0, %v4473_v37  ;;  %v664_v48 = vmul.f32 %v4473_v37, %v4792_v1  ;;  %v42_v1 = vld [vmem:[%s5319_s0 + $0x68] sm:$0xff] }
 0x6a4   :  { %3999 = vmatmul.mubr.msk.f32.gmra.mrb[12].mxu0 %vm54_vm0, %v42_v1 }
 0x6a5   :  { %v3744_v40 = vadd.f32 -1.0, %v662_v38  ;;  %4001 = vmatprep.mubr.msk.f32.mxu0 %vm54_vm0, %v43_v3 }
 0x6a6   :  { %v4475_v41 = vpop.eup %4474 }
 0x6a7   :  { %666 = vrot.lane.b32.xlu0 %v3744_v40, %s4647_s17  ;;  %v771_v42 = vmul.f32 2.0, %v4475_v41  ;;  %v773_v51 = vmul.f32 %v4475_v41, %v4796_v6 }
 0x6a8   :  { %4002 = vmatmul.mubr.msk.f32.gmra.mrb[14].mxu0 %vm54_vm0, %v44_v5 }
 0x6a9   :  { %v3747_v43 = vadd.f32 -1.0, %v771_v42  ;;  %4055 = vmatprep.mubr.msk.f32.mxu0 %vm4645_vm1, %v4646_v4 }
 0x6ab   :  { %775 = vrot.lane.b32.xlu1 %v3747_v43, %s4647_s17 }
 0x719   :  { %v667_v44 = vpop.permute.xlu0 %666 }
 0x71a   :  { %v669_v45 = vmul.f32 %v4473_v37, %v667_v44 }
 0x71c   :  { %671 = vrot.lane.b32.xlu0 %v669_v45, %s4648_s18 }
 0x71d   :  { %v776_v46 = vpop.permute.xlu1 %775 }
 0x71e   :  { %v778_v47 = vmul.f32 %v4475_v41, %v776_v46 }
 0x720   :  { %780 = vrot.lane.b32.xlu1 %v778_v47, %s4648_s18 }
 0x777   :  { %v4914_v22 = vpop.f32.mrb[12].mxu0 }
 0x778   :  { %v4916_v23 = vpop.f32.mrb[13].mxu0 }
 0x77b   :  { %v4931_v27 = vpop.f32.mrb[14].mxu0 }
 0x77c   :  { %v4933_v28 = vpop.f32.mrb[15].mxu0 }
 0x78e   :  { %v672_v49 = vpop.permute.xlu0 %671 }
 0x78f   :  { %v4834_v50 = vadd.f32 %v672_v49, %v664_v48 }
 0x791   :  { %4476 = vtanh.f32 %v4834_v50 }
 0x792   :  { %v781_v52 = vpop.permute.xlu1 %780 }
 0x793   :  { %v4838_v53 = vadd.f32 %v781_v52, %v773_v51 }
 0x795   :  { %4478 = vtanh.f32 %v4838_v53 }
 0x79b   :  { %v4477_v59 = vpop.eup %4476 }
 0x79c   :  { %677 = vrot.lane.b32.xlu0 %v4477_v59, %s4649_s4 }
 0x79f   :  { %v4479_v62 = vpop.eup %4478 }
 0x7a0   :  { %786 = vrot.lane.b32.xlu1 %v4479_v62, %s4649_s4 }
 0x80e   :  { %v678_v6 = vpop.permute.xlu0 %677 }
 0x80f   :  { %v4893_v7 = vmul.f32 %v4473_v37, %v678_v6 }
 0x811   :  { %794 = vrot.lane.b32.xlu1 %v4893_v7, %s4647_s17 }
 0x812   :  { %v787_v9 = vpop.permute.xlu1 %786 }
 0x813   :  { %v789_v11 = vmul.f32 %v4475_v41, %v787_v9  ;;  %v190_v9 = vadd.f32 %v4731_v10, %v4900_v13 }
 0x815   :  { %791 = vrot.lane.b32.xlu0 %v789_v11, %s4650_s27 }
 0x883   :  { %v795_v24 = vpop.permute.xlu1 %794 }
 0x887   :  { %v792_v25 = vpop.permute.xlu0 %791 }
 0x888   :  { %v797_v26 = vsel %vm54_vm0, %v792_v25, %v795_v24  ;;  %4063 = vmatmul.mubr.msk.f32.vlgmr.msra.gmra.mrb[10].mxu1 %vm54_vm0, %v792_v25 }
 0x889   :  { %4056 = vmatmul.mubr.msk.f32.vlgmr.msra.gmra.mrb[16].mxu0 %vm367_vm2, %v797_v26  ;;  %4328 = vmatpush3.bf16.msra.mxu1 %v4750_v31 }
 0x88a   :  { %4334 = vmatpush3.bf16.msra.mxu0 %v4716_v8  ;;  %4329 = vmatprep.subr.bf16.mxu1 %v4644_v2 }
 0x88b   :  { %4080 = vmatprep.mubr.msk.f32.mxu0 %vm4645_vm1, %v4646_v4  ;;  %4073 = vmatprep.mubr.msk.f32.mxu1 %vm4645_vm1, %v4646_v4 }
 0x88c   :  { %4335 = vmatprep.subr.bf16.mxu0 %v4644_v2 }
 0x88d   :  { %4331 = vmatpush3.bf16.msra.mxu1 %v4756_v33 }
 0x88e   :  { %4341 = vmatprep.subr.bf16.mxu1 %v4644_v2 }
 0x95b   :  { %v975_v30 = vpop.f32.mrb[10].mxu1 }
 0x95c   :  { %v979_v32 = vadd.f32 %v975_v30, %v185_v29  ;;  %v867_v34 = vpop.f32.mrb[16].mxu0  ;;  %v4064_v35 = vpop.f32.mrb[11].mxu1 }
 0x95d   :  { %v868_v36 = vadd.f32 %v4783_v39, %v867_v34  ;;  %v4057_v37 = vpop.f32.mrb[17].mxu0 }
 0x95e   :  { %v3752_v38 = vmul.f32 -1.442695, %v979_v32 }
 0x95f   :  { %v3749_v40 = vmul.f32 -1.442695, %v868_v36 }
 0x960   :  { %4480 = vpow2.f32 %v3752_v38 }
 0x961   :  { %4482 = vpow2.f32 %v3749_v40 }
 0x96a   :  { %v4481_v41 = vpop.eup %4480 }
 0x96b   :  { %v4483_v42 = vpop.eup %4482  ;;  %v983_v43 = vadd.f32 1.0, %v4481_v41 }
 0x96c   :  { %v874_v44 = vadd.f32 1.0, %v4483_v42 }
 0x96d   :  { %4484 = vrcp.f32 %v983_v43 }
 0x96e   :  { %4486 = vrcp.f32 %v874_v44 }
 0x977   :  { %v4485_v45 = vpop.eup %4484 }
 0x978   :  { %v4487_v46 = vpop.eup %4486  ;;  %v986_v20 = vmul.f32 2.0, %v4485_v45  ;;  %v988_v56 = vmul.f32 %v4485_v45, %v4838_v53 }
 0x979   :  { %v877_v47 = vmul.f32 2.0, %v4487_v46  ;;  %v879_v58 = vmul.f32 %v4487_v46, %v4834_v50 }
 0x97a   :  { %v3753_v48 = vadd.f32 -1.0, %v986_v20 }
 0x97b   :  { %v3750_v49 = vadd.f32 -1.0, %v877_v47 }
 0x97c   :  { %990 = vrot.lane.b32.xlu1 %v3753_v48, %s4647_s17 }
 0x97d   :  { %881 = vrot.lane.b32.xlu0 %v3750_v49, %s4647_s17 }
 0x9ee   :  { %v991_v51 = vpop.permute.xlu1 %990 }
 0x9ef   :  { %v993_v52 = vmul.f32 %v4485_v45, %v991_v51  ;;  %v882_v54 = vpop.permute.xlu0 %881 }
 0x9f0   :  { %v884_v55 = vmul.f32 %v4487_v46, %v882_v54 }
 0x9f1   :  { %995 = vrot.lane.b32.xlu1 %v993_v52, %s4648_s18 }
 0x9f2   :  { %886 = vrot.lane.b32.xlu0 %v884_v55, %s4648_s18 }
 0xa63   :  { %v996_v57 = vpop.permute.xlu1 %995 }
 0xa64   :  { %v998_v59 = vadd.f32 %v996_v57, %v988_v56  ;;  %v887_v60 = vpop.permute.xlu0 %886 }
 0xa65   :  { %v889_v61 = vadd.f32 %v887_v60, %v879_v58 }
 0xa66   :  { %4488 = vtanh.f32 %v998_v59 }
 0xa67   :  { %4490 = vtanh.f32 %v889_v61 }
 0xa70   :  { %v4489_v62 = vpop.eup %4488 }
 0xa71   :  { %v4491_v63 = vpop.eup %4490  ;;  %1001 = vrot.lane.b32.xlu1 %v4489_v62, %s4649_s4 }
 0xa72   :  { %892 = vrot.lane.b32.xlu0 %v4491_v63, %s4649_s4 }
 0xae3   :  { %v1002_v0 = vpop.permute.xlu1 %1001 }
 0xae4   :  { %v1004_v1 = vmul.f32 %v4485_v45, %v1002_v0  ;;  %v893_v3 = vpop.permute.xlu0 %892 }
 0xae5   :  { %v4946_v5 = vmul.f32 %v4487_v46, %v893_v3 }
 0xae6   :  { %1006 = vrot.lane.b32.xlu0 %v1004_v1, %s4650_s27  ;;  %v195_v1 = vadd.f32 %v4898_v12, %v4731_v10 }
 0xae7   :  { %1009 = vrot.lane.b32.xlu1 %v4946_v5, %s4647_s17 }
 0xb58   :  { %v1007_v50 = vpop.permute.xlu0 %1006 }
 0xb59   :  { %4081 = vmatmul.mubr.msk.f32.vlgmr.msra.gmra.mrb[18].mxu0 %vm54_vm0, %v1007_v50  ;;  %v1010_v53 = vpop.permute.xlu1 %1009 }
 0xb5a   :  { %v1012_v6 = vsel %vm54_vm0, %v1007_v50, %v1010_v53  ;;  %4337 = vmatpush3.bf16.msra.mxu0 %v4750_v31  ;;  %4091 = vmatprep.mubr.msk.f32.mxu0 %vm4645_vm1, %v4646_v4 }
 0xb5b   :  { %4074 = vmatmul.mubr.msk.f32.vlgmr.msra.gmra.mrb[12].mxu1 %vm367_vm2, %v1012_v6  ;;  %4338 = vmatprep.subr.bf16.mxu0 %v4644_v2 }
 0xb5c   :  { %4343 = vmatpush3.bf16.msra.mxu1 %v4716_v8  ;;  %4098 = vmatprep.mubr.msk.f32.mxu1 %vm4645_vm1, %v4646_v4 }
 0xb5d   :  { %4344 = vmatprep.subr.bf16.mxu1 %v4644_v2 }
 0xb5e   :  { %4340 = vmatpush3.bf16.msra.mxu0 %v4756_v33 }
 0xb5f   :  { %4350 = vmatprep.subr.bf16.mxu0 %v4644_v2 }
 0xc2c   :  { %v1190_v11 = vpop.f32.mrb[18].mxu0 }
 0xc2d   :  { %v1194_v24 = vadd.f32 %v1190_v11, %v190_v9  ;;  %v4082_v25 = vpop.f32.mrb[19].mxu0 }
 0xc2e   :  { %v1082_v26 = vpop.f32.mrb[12].mxu1 }
 0xc2f   :  { %v3758_v29 = vmul.f32 -1.442695, %v1194_v24  ;;  %v1083_v30 = vadd.f32 %v4783_v39, %v1082_v26  ;;  %v4075_v32 = vpop.f32.mrb[13].mxu1 }
 0xc31   :  { %4492 = vpow2.f32 %v3758_v29  ;;  %v3755_v34 = vmul.f32 -1.442695, %v1083_v30 }
 0xc33   :  { %4494 = vpow2.f32 %v3755_v34 }
 0xc3b   :  { %v4493_v35 = vpop.eup %4492 }
 0xc3c   :  { %v1198_v36 = vadd.f32 1.0, %v4493_v35 }
 0xc3d   :  { %v4495_v37 = vpop.eup %4494 }
 0xc3e   :  { %4496 = vrcp.f32 %v1198_v36  ;;  %v1089_v38 = vadd.f32 1.0, %v4495_v37 }
 0xc40   :  { %4498 = vrcp.f32 %v1089_v38 }
 0xc48   :  { %v4497_v40 = vpop.eup %4496 }
 0xc49   :  { %v1201_v41 = vmul.f32 2.0, %v4497_v40  ;;  %v1203_v48 = vmul.f32 %v4497_v40, %v998_v59 }
 0xc4a   :  { %v4499_v13 = vpop.eup %4498 }
 0xc4b   :  { %v3759_v42 = vadd.f32 -1.0, %v1201_v41  ;;  %v1092_v43 = vmul.f32 2.0, %v4499_v13  ;;  %v1094_v52 = vmul.f32 %v4499_v13, %v889_v61 }
 0xc4d   :  { %1205 = vrot.lane.b32.xlu1 %v3759_v42, %s4647_s17  ;;  %v3756_v44 = vadd.f32 -1.0, %v1092_v43 }
 0xc4f   :  { %1096 = vrot.lane.b32.xlu0 %v3756_v44, %s4647_s17 }
 0xcbf   :  { %v1206_v45 = vpop.permute.xlu1 %1205 }
 0xcc0   :  { %v1208_v46 = vmul.f32 %v4497_v40, %v1206_v45 }
 0xcc1   :  { %v1097_v20 = vpop.permute.xlu0 %1096 }
 0xcc2   :  { %v1099_v47 = vmul.f32 %v4499_v13, %v1097_v20  ;;  %1210 = vrot.lane.b32.xlu1 %v1208_v46, %s4648_s18 }
 0xcc4   :  { %1101 = vrot.lane.b32.xlu0 %v1099_v47, %s4648_s18 }
 0xd34   :  { %v1211_v49 = vpop.permute.xlu1 %1210 }
 0xd35   :  { %v1213_v51 = vadd.f32 %v1211_v49, %v1203_v48 }
 0xd36   :  { %v1102_v54 = vpop.permute.xlu0 %1101 }
 0xd37   :  { %4500 = vtanh.f32 %v1213_v51  ;;  %v1104_v55 = vadd.f32 %v1102_v54, %v1094_v52 }
 0xd39   :  { %4502 = vtanh.f32 %v1104_v55 }
 0xd41   :  { %v4501_v56 = vpop.eup %4500 }
 0xd42   :  { %1216 = vrot.lane.b32.xlu1 %v4501_v56, %s4649_s4 }
 0xd43   :  { %v4503_v57 = vpop.eup %4502 }
 0xd44   :  { %1107 = vrot.lane.b32.xlu0 %v4503_v57, %s4649_s4 }
 0xdb4   :  { %v1217_v58 = vpop.permute.xlu1 %1216 }
 0xdb5   :  { %v1219_v60 = vmul.f32 %v4497_v40, %v1217_v58 }
 0xdb6   :  { %v1108_v62 = vpop.permute.xlu0 %1107 }
 0xdb7   :  { %v4973_v63 = vmul.f32 %v4499_v13, %v1108_v62  ;;  %1221 = vrot.lane.b32.xlu0 %v1219_v60, %s4650_s27  ;;  %v200_v60 = vadd.f32 %v4731_v10, %v4904_v16 }
 0xdb9   :  { %1224 = vrot.lane.b32.xlu1 %v4973_v63, %s4647_s17 }
 0xe29   :  { %v1222_v59 = vpop.permute.xlu0 %1221 }
 0xe2a   :  { %4099 = vmatmul.mubr.msk.f32.vlgmr.msra.gmra.mrb[14].mxu1 %vm54_vm0, %v1222_v59 }
 0xe2b   :  { %v1225_v61 = vpop.permute.xlu1 %1224  ;;  %4346 = vmatpush3.bf16.msra.mxu1 %v4750_v31  ;;  %4109 = vmatprep.mubr.msk.f32.mxu1 %vm4645_vm1, %v4646_v4 }
 0xe2c   :  { %v1227_v0 = vsel %vm54_vm0, %v1222_v59, %v1225_v61  ;;  %4347 = vmatprep.subr.bf16.mxu1 %v4644_v2 }
 0xe2d   :  { %4092 = vmatmul.mubr.msk.f32.vlgmr.msra.gmra.mrb[20].mxu0 %vm367_vm2, %v1227_v0 }
 0xe2e   :  { %4352 = vmatpush3.bf16.msra.mxu0 %v4716_v8  ;;  %4116 = vmatprep.mubr.msk.f32.mxu0 %vm4645_vm1, %v4646_v4 }
 0xe2f   :  { %4349 = vmatpush3.bf16.msra.mxu1 %v4756_v33  ;;  %4353 = vmatprep.subr.bf16.mxu0 %v4644_v2 }
 0xe30   :  { %4359 = vmatprep.subr.bf16.mxu1 %v4644_v2 }
 0xefd   :  { %v1405_v3 = vpop.f32.mrb[14].mxu1 }
 0xefe   :  { %v1409_v50 = vadd.f32 %v1405_v3, %v195_v1  ;;  %v4100_v53 = vpop.f32.mrb[15].mxu1 }
 0xf00   :  { %v3764_v6 = vmul.f32 -1.442695, %v1409_v50  ;;  %v1297_v9 = vpop.f32.mrb[20].mxu0 }
 0xf01   :  { %v1298_v11 = vadd.f32 %v4783_v39, %v1297_v9  ;;  %v4093_v24 = vpop.f32.mrb[21].mxu0 }
 0xf02   :  { %4504 = vpow2.f32 %v3764_v6 }
 0xf03   :  { %v3761_v25 = vmul.f32 -1.442695, %v1298_v11 }
 0xf05   :  { %4506 = vpow2.f32 %v3761_v25 }
 0xf0c   :  { %v4505_v26 = vpop.eup %4504 }
 0xf0d   :  { %v1413_v29 = vadd.f32 1.0, %v4505_v26 }
 0xf0f   :  { %v4507_v30 = vpop.eup %4506  ;;  %4508 = vrcp.f32 %v1413_v29 }
 0xf10   :  { %v1304_v32 = vadd.f32 1.0, %v4507_v30 }
 0xf12   :  { %4510 = vrcp.f32 %v1304_v32 }
 0xf19   :  { %v4509_v34 = vpop.eup %4508 }
 0xf1a   :  { %v1416_v35 = vmul.f32 2.0, %v4509_v34  ;;  %v1418_v43 = vmul.f32 %v4509_v34, %v1213_v51 }
 0xf1c   :  { %v4511_v12 = vpop.eup %4510  ;;  %v3765_v36 = vadd.f32 -1.0, %v1416_v35 }
 0xf1d   :  { %v1307_v37 = vmul.f32 2.0, %v4511_v12  ;;  %v1309_v46 = vmul.f32 %v4511_v12, %v1104_v55 }
 0xf1e   :  { %1420 = vrot.lane.b32.xlu1 %v3765_v36, %s4647_s17 }
 0xf1f   :  { %v3762_v38 = vadd.f32 -1.0, %v1307_v37 }
 0xf21   :  { %1311 = vrot.lane.b32.xlu0 %v3762_v38, %s4647_s17 }
 0xf90   :  { %v1421_v40 = vpop.permute.xlu1 %1420 }
 0xf91   :  { %v1423_v41 = vmul.f32 %v4509_v34, %v1421_v40 }
 0xf93   :  { %v1312_v13 = vpop.permute.xlu0 %1311  ;;  %1425 = vrot.lane.b32.xlu1 %v1423_v41, %s4648_s18 }
 0xf94   :  { %v1314_v42 = vmul.f32 %v4511_v12, %v1312_v13 }
 0xf96   :  { %1316 = vrot.lane.b32.xlu0 %v1314_v42, %s4648_s18 }
0x1005   :  { %v1426_v44 = vpop.permute.xlu1 %1425 }
0x1006   :  { %v1428_v45 = vadd.f32 %v1426_v44, %v1418_v43 }
0x1008   :  { %4512 = vtanh.f32 %v1428_v45  ;;  %v1317_v20 = vpop.permute.xlu0 %1316 }
0x1009   :  { %v1319_v47 = vadd.f32 %v1317_v20, %v1309_v46 }
0x100b   :  { %4514 = vtanh.f32 %v1319_v47 }
0x1012   :  { %v4513_v48 = vpop.eup %4512 }
0x1013   :  { %1431 = vrot.lane.b32.xlu1 %v4513_v48, %s4649_s4 }
0x1015   :  { %v4515_v49 = vpop.eup %4514 }
0x1016   :  { %1322 = vrot.lane.b32.xlu0 %v4515_v49, %s4649_s4 }
0x1085   :  { %v1432_v52 = vpop.permute.xlu1 %1431 }
0x1086   :  { %v1434_v54 = vmul.f32 %v4509_v34, %v1432_v52 }
0x1088   :  { %v1323_v56 = vpop.permute.xlu0 %1322  ;;  %1436 = vrot.lane.b32.xlu0 %v1434_v54, %s4650_s27  ;;  %v205_v54 = vadd.f32 %v4902_v15, %v4731_v10 }
0x1089   :  { %v5001_v57 = vmul.f32 %v4511_v12, %v1323_v56 }
0x108b   :  { %1439 = vrot.lane.b32.xlu1 %v5001_v57, %s4647_s17 }
0x10fa   :  { %v1437_v51 = vpop.permute.xlu0 %1436 }
0x10fb   :  { %4117 = vmatmul.mubr.msk.f32.vlgmr.msra.gmra.mrb[22].mxu0 %vm54_vm0, %v1437_v51 }
0x10fc   :  { %4355 = vmatpush3.bf16.msra.mxu0 %v4750_v31  ;;  %4127 = vmatprep.mubr.msk.f32.mxu0 %vm4645_vm1, %v4646_v4 }
0x10fd   :  { %v1440_v55 = vpop.permute.xlu1 %1439  ;;  %4356 = vmatprep.subr.bf16.mxu0 %v4644_v2 }
0x10fe   :  { %v1442_v58 = vsel %vm54_vm0, %v1437_v51, %v1440_v55 }
0x10ff   :  { %4110 = vmatmul.mubr.msk.f32.vlgmr.msra.gmra.mrb[16].mxu1 %vm367_vm2, %v1442_v58 }
0x1100   :  { %4361 = vmatpush3.bf16.msra.mxu1 %v4716_v8  ;;  %4134 = vmatprep.mubr.msk.f32.mxu1 %vm4645_vm1, %v4646_v4 }
0x1101   :  { %4358 = vmatpush3.bf16.msra.mxu0 %v4756_v33  ;;  %4362 = vmatprep.subr.bf16.mxu1 %v4644_v2 }
0x1102   :  { %4368 = vmatprep.subr.bf16.mxu0 %v4644_v2 }
0x11ce   :  { %v1620_v62 = vpop.f32.mrb[22].mxu0 }
0x11cf   :  { %v1624_v59 = vadd.f32 %v1620_v62, %v200_v60  ;;  %v4118_v61 = vpop.f32.mrb[23].mxu0 }
0x11d1   :  { %v3770_v0 = vmul.f32 -1.442695, %v1624_v59 }
0x11d2   :  { %v1512_v1 = vpop.f32.mrb[16].mxu1 }
0x11d3   :  { %4516 = vpow2.f32 %v3770_v0  ;;  %v1513_v3 = vadd.f32 %v4783_v39, %v1512_v1  ;;  %v4111_v50 = vpop.f32.mrb[17].mxu1 }
0x11d5   :  { %v3767_v53 = vmul.f32 -1.442695, %v1513_v3 }
0x11d7   :  { %4518 = vpow2.f32 %v3767_v53 }
0x11dd   :  { %v4517_v6 = vpop.eup %4516 }
0x11de   :  { %v1628_v9 = vadd.f32 1.0, %v4517_v6 }
0x11e0   :  { %4520 = vrcp.f32 %v1628_v9 }
0x11e1   :  { %v4519_v11 = vpop.eup %4518 }
0x11e2   :  { %v1519_v24 = vadd.f32 1.0, %v4519_v11 }
0x11e4   :  { %4522 = vrcp.f32 %v1519_v24 }
0x11ea   :  { %v4521_v25 = vpop.eup %4520 }
0x11eb   :  { %v1631_v26 = vmul.f32 2.0, %v4521_v25  ;;  %v1633_v37 = vmul.f32 %v4521_v25, %v1428_v45 }
0x11ed   :  { %v3771_v16 = vadd.f32 -1.0, %v1631_v26 }
0x11ee   :  { %v4523_v29 = vpop.eup %4522 }
0x11ef   :  { %1635 = vrot.lane.b32.xlu1 %v3771_v16, %s4647_s17  ;;  %v1522_v30 = vmul.f32 2.0, %v4523_v29  ;;  %v1524_v41 = vmul.f32 %v4523_v29, %v1319_v47 }
0x11f1   :  { %v3768_v32 = vadd.f32 -1.0, %v1522_v30 }
0x11f3   :  { %1526 = vrot.lane.b32.xlu0 %v3768_v32, %s4647_s17 }
0x1261   :  { %v1636_v34 = vpop.permute.xlu1 %1635 }
0x1262   :  { %v1638_v35 = vmul.f32 %v4521_v25, %v1636_v34 }
0x1264   :  { %1640 = vrot.lane.b32.xlu1 %v1638_v35, %s4648_s18 }
0x1265   :  { %v1527_v12 = vpop.permute.xlu0 %1526 }
0x1266   :  { %v1529_v36 = vmul.f32 %v4523_v29, %v1527_v12 }
0x1268   :  { %1531 = vrot.lane.b32.xlu0 %v1529_v36, %s4648_s18 }
0x12d6   :  { %v1641_v38 = vpop.permute.xlu1 %1640 }
0x12d7   :  { %v1643_v40 = vadd.f32 %v1641_v38, %v1633_v37 }
0x12d9   :  { %4524 = vtanh.f32 %v1643_v40 }
0x12da   :  { %v1532_v13 = vpop.permute.xlu0 %1531 }
0x12db   :  { %v1534_v42 = vadd.f32 %v1532_v13, %v1524_v41 }
0x12dd   :  { %4526 = vtanh.f32 %v1534_v42 }
0x12e3   :  { %v4525_v43 = vpop.eup %4524 }
0x12e4   :  { %1646 = vrot.lane.b32.xlu1 %v4525_v43, %s4649_s4 }
0x12e7   :  { %v4527_v44 = vpop.eup %4526 }
0x12e8   :  { %1537 = vrot.lane.b32.xlu0 %v4527_v44, %s4649_s4 }
0x1356   :  { %v1647_v46 = vpop.permute.xlu1 %1646 }
0x1357   :  { %v1649_v20 = vmul.f32 %v4521_v25, %v1647_v46  ;;  %v5075_v46 = vld [vmem:[%s5321_s3] ss:$0 sm:$0xff] }
0x1359   :  { %1651 = vrot.lane.b32.xlu0 %v1649_v20, %s4650_s27  ;;  %v210_v20 = vadd.f32 %v5075_v46, %v4908_v18 }
0x135a   :  { %v1538_v48 = vpop.permute.xlu0 %1537 }
0x135b   :  { %v5028_v49 = vmul.f32 %v4523_v29, %v1538_v48 }
0x135d   :  { %1654 = vrot.lane.b32.xlu1 %v5028_v49, %s4647_s17 }
0x13cb   :  { %v1652_v45 = vpop.permute.xlu0 %1651 }
0x13cc   :  { %4135 = vmatmul.mubr.msk.f32.vlgmr.msra.gmra.mrb[18].mxu1 %vm54_vm0, %v1652_v45 }
0x13cd   :  { %4364 = vmatpush3.bf16.msra.mxu1 %v4750_v31  ;;  %4145 = vmatprep.mubr.msk.f32.mxu1 %vm4645_vm1, %v4646_v4 }
0x13ce   :  { %4365 = vmatprep.subr.bf16.mxu1 %v4644_v2 }
0x13cf   :  { %v1655_v47 = vpop.permute.xlu1 %1654 }
0x13d0   :  { %v1657_v52 = vsel %vm54_vm0, %v1652_v45, %v1655_v47 }
0x13d1   :  { %4128 = vmatmul.mubr.msk.f32.vlgmr.msra.gmra.mrb[24].mxu0 %vm367_vm2, %v1657_v52  ;;  %4367 = vmatpush3.bf16.msra.mxu1 %v4756_v33 }
0x13d2   :  { %4370 = vmatpush3.bf16.msra.mxu0 %v4716_v8  ;;  %4152 = vmatprep.mubr.msk.f32.mxu0 %vm4645_vm1, %v4646_v4 }
0x13d3   :  { %4377 = vmatprep.subr.bf16.mxu1 %v4644_v2  ;;  %4371 = vmatprep.subr.bf16.mxu0 %v4644_v2 }
0x149f   :  { %v1835_v56 = vpop.f32.mrb[18].mxu1 }
0x14a0   :  { %v1839_v51 = vadd.f32 %v1835_v56, %v205_v54  ;;  %v4136_v55 = vpop.f32.mrb[19].mxu1 }
0x14a2   :  { %v3776_v58 = vmul.f32 -1.442695, %v1839_v51 }
0x14a4   :  { %4528 = vpow2.f32 %v3776_v58  ;;  %v1727_v60 = vpop.f32.mrb[24].mxu0 }
0x14a5   :  { %v1728_v62 = vadd.f32 %v4783_v39, %v1727_v60  ;;  %v4129_v59 = vpop.f32.mrb[25].mxu0 }
0x14a7   :  { %v3773_v61 = vmul.f32 -1.442695, %v1728_v62 }
0x14a9   :  { %4530 = vpow2.f32 %v3773_v61 }
0x14ae   :  { %v4529_v0 = vpop.eup %4528 }
0x14af   :  { %v1843_v1 = vadd.f32 1.0, %v4529_v0 }
0x14b1   :  { %4532 = vrcp.f32 %v1843_v1 }
0x14b3   :  { %v4531_v3 = vpop.eup %4530 }
0x14b4   :  { %v1734_v50 = vadd.f32 1.0, %v4531_v3 }
0x14b6   :  { %4534 = vrcp.f32 %v1734_v50 }
0x14bb   :  { %v4533_v53 = vpop.eup %4532 }
0x14bc   :  { %v1846_v6 = vmul.f32 2.0, %v4533_v53  ;;  %v1848_v29 = vmul.f32 %v4533_v53, %v1643_v40 }
0x14be   :  { %v3777_v10 = vadd.f32 -1.0, %v1846_v6 }
0x14c0   :  { %v4535_v15 = vpop.eup %4534  ;;  %1850 = vrot.lane.b32.xlu1 %v3777_v10, %s4647_s17 }
0x14c1   :  { %v1737_v9 = vmul.f32 2.0, %v4535_v15  ;;  %v1739_v34 = vmul.f32 %v4535_v15, %v1534_v42 }
0x14c3   :  { %v3774_v11 = vadd.f32 -1.0, %v1737_v9 }
0x14c5   :  { %1741 = vrot.lane.b32.xlu0 %v3774_v11, %s4647_s17 }
0x1532   :  { %v1851_v24 = vpop.permute.xlu1 %1850 }
0x1533   :  { %v1853_v25 = vmul.f32 %v4533_v53, %v1851_v24 }
0x1535   :  { %1855 = vrot.lane.b32.xlu1 %v1853_v25, %s4648_s18 }
0x1537   :  { %v1742_v26 = vpop.permute.xlu0 %1741 }
0x1538   :  { %v1744_v16 = vmul.f32 %v4535_v15, %v1742_v26 }
0x153a   :  { %1746 = vrot.lane.b32.xlu0 %v1744_v16, %s4648_s18 }
0x15a7   :  { %v1856_v30 = vpop.permute.xlu1 %1855 }
0x15a8   :  { %v1858_v32 = vadd.f32 %v1856_v30, %v1848_v29 }
0x15aa   :  { %4536 = vtanh.f32 %v1858_v32 }
0x15ac   :  { %v1747_v35 = vpop.permute.xlu0 %1746 }
0x15ad   :  { %v1749_v12 = vadd.f32 %v1747_v35, %v1739_v34 }
0x15af   :  { %4538 = vtanh.f32 %v1749_v12 }
0x15b4   :  { %v4537_v36 = vpop.eup %4536 }
0x15b5   :  { %1861 = vrot.lane.b32.xlu1 %v4537_v36, %s4649_s4 }
0x15b9   :  { %v4539_v37 = vpop.eup %4538 }
0x15ba   :  { %1752 = vrot.lane.b32.xlu0 %v4539_v37, %s4649_s4 }
0x1627   :  { %v1862_v38 = vpop.permute.xlu1 %1861 }
0x1628   :  { %v1864_v41 = vmul.f32 %v4533_v53, %v1862_v38  ;;  %v215_v38 = vadd.f32 %v5075_v46, %v4906_v17 }
0x162a   :  { %1866 = vrot.lane.b32.xlu0 %v1864_v41, %s4650_s27 }
0x162c   :  { %v1753_v13 = vpop.permute.xlu0 %1752 }
0x162d   :  { %v5055_v43 = vmul.f32 %v4535_v15, %v1753_v13 }
0x162f   :  { %1869 = vrot.lane.b32.xlu1 %v5055_v43, %s4647_s17 }
0x169c   :  { %v1867_v40 = vpop.permute.xlu0 %1866 }
0x169d   :  { %4153 = vmatmul.mubr.msk.f32.vlgmr.msra.gmra.mrb[26].mxu0 %vm54_vm0, %v1867_v40 }
0x169e   :  { %4373 = vmatpush3.bf16.msra.mxu0 %v4750_v31  ;;  %4163 = vmatprep.mubr.msk.f32.mxu0 %vm4645_vm1, %v4646_v4 }
0x169f   :  { %4374 = vmatprep.subr.bf16.mxu0 %v4644_v2 }
0x16a1   :  { %v1870_v42 = vpop.permute.xlu1 %1869 }
0x16a2   :  { %v1872_v44 = vsel %vm54_vm0, %v1867_v40, %v1870_v42  ;;  %4376 = vmatpush3.bf16.msra.mxu0 %v4756_v33 }
0x16a3   :  { %4146 = vmatmul.mubr.msk.f32.vlgmr.msra.gmra.mrb[20].mxu1 %vm367_vm2, %v1872_v44  ;;  %4386 = vmatprep.subr.bf16.mxu0 %v4644_v2 }
0x16a4   :  { %4379 = vmatpush3.bf16.msra.mxu1 %v4716_v8  ;;  %4170 = vmatprep.mubr.msk.f32.mxu1 %vm4645_vm1, %v4646_v4 }
0x16a5   :  { %4380 = vmatprep.subr.bf16.mxu1 %v4644_v2 }
0x1770   :  { %v2050_v48 = vpop.f32.mrb[26].mxu0 }
0x1771   :  { %v2054_v45 = vadd.f32 %v2050_v48, %v210_v20  ;;  %v4154_v47 = vpop.f32.mrb[27].mxu0  ;;  %v5109_v20 = vld [vmem:[%s5323_s5] ss:$0 sm:$0xff] }
0x1773   :  { %v3782_v52 = vmul.f32 -1.442695, %v2054_v45 }
0x1775   :  { %4540 = vpow2.f32 %v3782_v52 }
0x1776   :  { %v1942_v54 = vpop.f32.mrb[20].mxu1 }
0x1777   :  { %v1943_v56 = vadd.f32 %v4783_v39, %v1942_v54  ;;  %v4147_v51 = vpop.f32.mrb[21].mxu1 }
0x1779   :  { %v3779_v55 = vmul.f32 -1.442695, %v1943_v56 }
0x177b   :  { %4542 = vpow2.f32 %v3779_v55 }
0x177f   :  { %v4541_v58 = vpop.eup %4540 }
0x1780   :  { %v2058_v60 = vadd.f32 1.0, %v4541_v58 }
0x1782   :  { %4544 = vrcp.f32 %v2058_v60 }
0x1785   :  { %v4543_v62 = vpop.eup %4542 }
0x1786   :  { %v1949_v59 = vadd.f32 1.0, %v4543_v62 }
0x1788   :  { %4546 = vrcp.f32 %v1949_v59 }
0x178c   :  { %v4545_v61 = vpop.eup %4544 }
0x178d   :  { %v2061_v0 = vmul.f32 2.0, %v4545_v61  ;;  %v2063_v15 = vmul.f32 %v4545_v61, %v1858_v32 }
0x178f   :  { %v3783_v18 = vadd.f32 -1.0, %v2061_v0 }
0x1791   :  { %2065 = vrot.lane.b32.xlu1 %v3783_v18, %s4647_s17 }
0x1792   :  { %v4547_v1 = vpop.eup %4546 }
0x1793   :  { %v1952_v3 = vmul.f32 2.0, %v4547_v1  ;;  %v1954_v24 = vmul.f32 %v4547_v1, %v1749_v12 }
0x1795   :  { %v3780_v50 = vadd.f32 -1.0, %v1952_v3 }
0x1797   :  { %1956 = vrot.lane.b32.xlu0 %v3780_v50, %s4647_s17 }
0x1803   :  { %v2066_v39 = vpop.permute.xlu1 %2065 }
0x1804   :  { %v2068_v53 = vmul.f32 %v4545_v61, %v2066_v39 }
0x1806   :  { %2070 = vrot.lane.b32.xlu1 %v2068_v53, %s4648_s18 }
0x1809   :  { %v1957_v6 = vpop.permute.xlu0 %1956 }
0x180a   :  { %v1959_v10 = vmul.f32 %v4547_v1, %v1957_v6 }
0x180c   :  { %1961 = vrot.lane.b32.xlu0 %v1959_v10, %s4648_s18 }
0x1878   :  { %v2071_v9 = vpop.permute.xlu1 %2070 }
0x1879   :  { %v2073_v11 = vadd.f32 %v2071_v9, %v2063_v15 }
0x187b   :  { %4548 = vtanh.f32 %v2073_v11 }
0x187e   :  { %v1962_v25 = vpop.permute.xlu0 %1961 }
0x187f   :  { %v1964_v26 = vadd.f32 %v1962_v25, %v1954_v24 }
0x1881   :  { %4550 = vtanh.f32 %v1964_v26 }
0x1885   :  { %v4549_v16 = vpop.eup %4548 }
0x1886   :  { %2076 = vrot.lane.b32.xlu1 %v4549_v16, %s4649_s4 }
0x188b   :  { %v4551_v29 = vpop.eup %4550 }
0x188c   :  { %1967 = vrot.lane.b32.xlu0 %v4551_v29, %s4649_s4 }
0x18f8   :  { %v2077_v30 = vpop.permute.xlu1 %2076 }
0x18f9   :  { %v2079_v34 = vmul.f32 %v4545_v61, %v2077_v30 }
0x18fb   :  { %2081 = vrot.lane.b32.xlu0 %v2079_v34, %s4650_s27  ;;  %v220_v34 = vadd.f32 %v5075_v46, %v4912_v21 }
0x18fe   :  { %v1968_v35 = vpop.permute.xlu0 %1967 }
0x18ff   :  { %v5087_v36 = vmul.f32 %v4547_v1, %v1968_v35 }
0x1901   :  { %2084 = vrot.lane.b32.xlu1 %v5087_v36, %s4647_s17 }
0x196d   :  { %v2082_v32 = vpop.permute.xlu0 %2081 }
0x196e   :  { %4171 = vmatmul.mubr.msk.f32.vlgmr.msra.gmra.mrb[22].mxu1 %vm54_vm0, %v2082_v32 }
0x196f   :  { %4382 = vmatpush3.bf16.msra.mxu1 %v4750_v31  ;;  %4181 = vmatprep.mubr.msk.f32.mxu1 %vm4645_vm1, %v4646_v4 }
0x1970   :  { %4383 = vmatprep.subr.bf16.mxu1 %v4644_v2 }
0x1973   :  { %v2085_v12 = vpop.permute.xlu1 %2084  ;;  %4385 = vmatpush3.bf16.msra.mxu1 %v4756_v33 }
0x1974   :  { %v2087_v37 = vsel %vm54_vm0, %v2082_v32, %v2085_v12  ;;  %4395 = vmatprep.subr.bf16.mxu1 %v4644_v2 }
0x1975   :  { %4164 = vmatmul.mubr.msk.f32.vlgmr.msra.gmra.mrb[28].mxu0 %vm367_vm2, %v2087_v37 }
0x1976   :  { %4388 = vmatpush3.bf16.msra.mxu0 %v4716_v8  ;;  %4188 = vmatprep.mubr.msk.f32.mxu0 %vm4645_vm1, %v4646_v4 }
0x1977   :  { %4389 = vmatprep.subr.bf16.mxu0 %v4644_v2 }
0x1a41   :  { %v2265_v41 = vpop.f32.mrb[22].mxu1 }
0x1a42   :  { %v2269_v13 = vadd.f32 %v2265_v41, %v215_v38  ;;  %v4172_v40 = vpop.f32.mrb[23].mxu1 }
0x1a44   :  { %v3788_v42 = vmul.f32 -1.442695, %v2269_v13 }
0x1a46   :  { %4552 = vpow2.f32 %v3788_v42 }
0x1a48   :  { %v2157_v44 = vpop.f32.mrb[28].mxu0 }
0x1a49   :  { %v2158_v48 = vadd.f32 %v5109_v20, %v2157_v44  ;;  %v4165_v45 = vpop.f32.mrb[29].mxu0 }
0x1a4b   :  { %v3785_v47 = vmul.f32 -1.442695, %v2158_v48 }
0x1a4d   :  { %4554 = vpow2.f32 %v3785_v47 }
0x1a50   :  { %v4553_v52 = vpop.eup %4552 }
0x1a51   :  { %v2273_v54 = vadd.f32 1.0, %v4553_v52 }
0x1a53   :  { %4556 = vrcp.f32 %v2273_v54 }
0x1a57   :  { %v4555_v17 = vpop.eup %4554 }
0x1a58   :  { %v2164_v56 = vadd.f32 1.0, %v4555_v17 }
0x1a5a   :  { %4558 = vrcp.f32 %v2164_v56 }
0x1a5d   :  { %v4557_v51 = vpop.eup %4556 }
0x1a5e   :  { %v2276_v55 = vmul.f32 2.0, %v4557_v51  ;;  %v2278_v3 = vmul.f32 %v4557_v51, %v2073_v11 }
0x1a60   :  { %v3789_v58 = vadd.f32 -1.0, %v2276_v55 }
0x1a62   :  { %2280 = vrot.lane.b32.xlu1 %v3789_v58, %s4647_s17 }
0x1a64   :  { %v4559_v60 = vpop.eup %4558 }
0x1a65   :  { %v2167_v62 = vmul.f32 2.0, %v4559_v60  ;;  %v2169_v53 = vmul.f32 %v4559_v60, %v1964_v26 }
0x1a67   :  { %v3786_v59 = vadd.f32 -1.0, %v2167_v62 }
0x1a69   :  { %2171 = vrot.lane.b32.xlu0 %v3786_v59, %s4647_s17 }
0x1ad4   :  { %v2281_v61 = vpop.permute.xlu1 %2280 }
0x1ad5   :  { %v2283_v0 = vmul.f32 %v4557_v51, %v2281_v61 }
0x1ad7   :  { %2285 = vrot.lane.b32.xlu1 %v2283_v0, %s4648_s18 }
0x1adb   :  { %v2172_v18 = vpop.permute.xlu0 %2171 }
0x1adc   :  { %v2174_v1 = vmul.f32 %v4559_v60, %v2172_v18 }
0x1ade   :  { %2176 = vrot.lane.b32.xlu0 %v2174_v1, %s4648_s18 }
0x1b49   :  { %v2286_v50 = vpop.permute.xlu1 %2285 }
0x1b4a   :  { %v2288_v39 = vadd.f32 %v2286_v50, %v2278_v3 }
0x1b4c   :  { %4560 = vtanh.f32 %v2288_v39 }
0x1b50   :  { %v2177_v6 = vpop.permute.xlu0 %2176 }
0x1b51   :  { %v2179_v10 = vadd.f32 %v2177_v6, %v2169_v53 }
0x1b53   :  { %4562 = vtanh.f32 %v2179_v10 }
0x1b56   :  { %v4561_v15 = vpop.eup %4560 }
0x1b57   :  { %2291 = vrot.lane.b32.xlu1 %v4561_v15, %s4649_s4 }
0x1b5d   :  { %v4563_v9 = vpop.eup %4562 }
0x1b5e   :  { %2182 = vrot.lane.b32.xlu0 %v4563_v9, %s4649_s4 }
0x1bc9   :  { %v2292_v24 = vpop.permute.xlu1 %2291 }
0x1bca   :  { %v2294_v25 = vmul.f32 %v4557_v51, %v2292_v24 }
0x1bcc   :  { %2296 = vrot.lane.b32.xlu0 %v2294_v25, %s4650_s27  ;;  %v225_v25 = vadd.f32 %v5075_v46, %v4910_v19 }
0x1bd0   :  { %v2183_v16 = vpop.permute.xlu0 %2182 }
0x1bd1   :  { %v5119_v29 = vmul.f32 %v4559_v60, %v2183_v16 }
0x1bd3   :  { %2299 = vrot.lane.b32.xlu1 %v5119_v29, %s4647_s17 }
0x1c3e   :  { %v2297_v11 = vpop.permute.xlu0 %2296 }
0x1c3f   :  { %4189 = vmatmul.mubr.msk.f32.vlgmr.msra.gmra.mrb[30].mxu0 %vm54_vm0, %v2297_v11 }
0x1c40   :  { %4391 = vmatpush3.bf16.msra.mxu0 %v4750_v31  ;;  %4199 = vmatprep.mubr.msk.f32.mxu0 %vm4645_vm1, %v4646_v4 }
0x1c41   :  { %4392 = vmatprep.subr.bf16.mxu0 %v4644_v2 }
0x1c44   :  { %4394 = vmatpush3.bf16.msra.mxu0 %v4756_v33 }
0x1c45   :  { %v2300_v26 = vpop.permute.xlu1 %2299  ;;  %4404 = vmatprep.subr.bf16.mxu0 %v4644_v2 }
0x1c46   :  { %v2302_v30 = vsel %vm54_vm0, %v2297_v11, %v2300_v26 }
0x1c47   :  { %4182 = vmatmul.mubr.msk.f32.vlgmr.msra.gmra.mrb[24].mxu1 %vm367_vm2, %v2302_v30 }
0x1c48   :  { %4397 = vmatpush3.bf16.msra.mxu1 %v4716_v8  ;;  %4206 = vmatprep.mubr.msk.f32.mxu1 %vm4645_vm1, %v4646_v4 }
0x1c49   :  { %4398 = vmatprep.subr.bf16.mxu1 %v4644_v2 }
0x1d12   :  { %v2480_v35 = vpop.f32.mrb[30].mxu0 }
0x1d13   :  { %v2484_v32 = vadd.f32 %v2480_v35, %v220_v34  ;;  %v4190_v12 = vpop.f32.mrb[31].mxu0 }
0x1d15   :  { %v3794_v37 = vmul.f32 -1.442695, %v2484_v32 }
0x1d17   :  { %4564 = vpow2.f32 %v3794_v37 }
0x1d1a   :  { %v2372_v38 = vpop.f32.mrb[24].mxu1 }
0x1d1b   :  { %v2373_v41 = vadd.f32 %v5109_v20, %v2372_v38  ;;  %v4183_v13 = vpop.f32.mrb[25].mxu1 }
0x1d1d   :  { %v3791_v40 = vmul.f32 -1.442695, %v2373_v41 }
0x1d1f   :  { %4566 = vpow2.f32 %v3791_v40 }
0x1d21   :  { %v4565_v42 = vpop.eup %4564 }
0x1d22   :  { %v2488_v44 = vadd.f32 1.0, %v4565_v42 }
0x1d24   :  { %4568 = vrcp.f32 %v2488_v44 }
0x1d29   :  { %v4567_v48 = vpop.eup %4566 }
0x1d2a   :  { %v2379_v45 = vadd.f32 1.0, %v4567_v48 }
0x1d2c   :  { %4570 = vrcp.f32 %v2379_v45 }
0x1d2e   :  { %v4569_v47 = vpop.eup %4568 }
0x1d2f   :  { %v2491_v52 = vmul.f32 2.0, %v4569_v47  ;;  %v2493_v62 = vmul.f32 %v4569_v47, %v2288_v39 }
0x1d31   :  { %v3795_v21 = vadd.f32 -1.0, %v2491_v52 }
0x1d33   :  { %2495 = vrot.lane.b32.xlu1 %v3795_v21, %s4647_s17 }
0x1d36   :  { %v4571_v54 = vpop.eup %4570 }
0x1d37   :  { %v2382_v17 = vmul.f32 2.0, %v4571_v54  ;;  %v2384_v0 = vmul.f32 %v4571_v54, %v2179_v10 }
0x1d39   :  { %v3792_v56 = vadd.f32 -1.0, %v2382_v17 }
0x1d3b   :  { %2386 = vrot.lane.b32.xlu0 %v3792_v56, %s4647_s17 }
0x1da5   :  { %v2496_v51 = vpop.permute.xlu1 %2495 }
0x1da6   :  { %v2498_v55 = vmul.f32 %v4569_v47, %v2496_v51 }
0x1da8   :  { %2500 = vrot.lane.b32.xlu1 %v2498_v55, %s4648_s18 }
0x1dad   :  { %v2387_v58 = vpop.permute.xlu0 %2386 }
0x1dae   :  { %v2389_v60 = vmul.f32 %v4571_v54, %v2387_v58 }
0x1db0   :  { %2391 = vrot.lane.b32.xlu0 %v2389_v60, %s4648_s18 }
0x1e1a   :  { %v2501_v59 = vpop.permute.xlu1 %2500 }
0x1e1b   :  { %v2503_v61 = vadd.f32 %v2501_v59, %v2493_v62 }
0x1e1d   :  { %4572 = vtanh.f32 %v2503_v61 }
0x1e22   :  { %v2392_v18 = vpop.permute.xlu0 %2391 }
0x1e23   :  { %v2394_v1 = vadd.f32 %v2392_v18, %v2384_v0 }
0x1e25   :  { %4574 = vtanh.f32 %v2394_v1 }
0x1e27   :  { %v4573_v3 = vpop.eup %4572 }
0x1e28   :  { %2506 = vrot.lane.b32.xlu1 %v4573_v3, %s4649_s4 }
0x1e2f   :  { %v4575_v50 = vpop.eup %4574 }
0x1e30   :  { %2397 = vrot.lane.b32.xlu0 %v4575_v50, %s4649_s4 }
0x1e9a   :  { %v2507_v53 = vpop.permute.xlu1 %2506 }
0x1e9b   :  { %v2509_v6 = vmul.f32 %v4569_v47, %v2507_v53 }
0x1e9d   :  { %2511 = vrot.lane.b32.xlu0 %v2509_v6, %s4650_s27  ;;  %v230_v6 = vadd.f32 %v5075_v46, %v4916_v23 }
0x1ea2   :  { %v2398_v15 = vpop.permute.xlu0 %2397 }
0x1ea3   :  { %v5146_v9 = vmul.f32 %v4571_v54, %v2398_v15 }
0x1ea5   :  { %2514 = vrot.lane.b32.xlu1 %v5146_v9, %s4647_s17 }
0x1f0f   :  { %v2512_v39 = vpop.permute.xlu0 %2511 }
0x1f10   :  { %4207 = vmatmul.mubr.msk.f32.vlgmr.msra.gmra.mrb[26].mxu1 %vm54_vm0, %v2512_v39 }
0x1f11   :  { %4400 = vmatpush3.bf16.msra.mxu1 %v4750_v31  ;;  %4217 = vmatprep.mubr.msk.f32.mxu1 %vm4645_vm1, %v4646_v4 }
0x1f12   :  { %4401 = vmatprep.subr.bf16.mxu1 %v4644_v2 }
0x1f15   :  { %4403 = vmatpush3.bf16.msra.mxu1 %v4756_v33 }
0x1f16   :  { %4413 = vmatprep.subr.bf16.mxu1 %v4644_v2 }
0x1f17   :  { %v2515_v10 = vpop.permute.xlu1 %2514 }
0x1f18   :  { %v2517_v24 = vsel %vm54_vm0, %v2512_v39, %v2515_v10 }
0x1f19   :  { %4200 = vmatmul.mubr.msk.f32.vlgmr.msra.gmra.mrb[32].mxu0 %vm367_vm2, %v2517_v24 }
0x1f1a   :  { %4406 = vmatpush3.bf16.msra.mxu0 %v4716_v8  ;;  %4224 = vmatprep.mubr.msk.f32.mxu0 %vm4645_vm1, %v4646_v4 }
0x1f1b   :  { %4407 = vmatprep.subr.bf16.mxu0 %v4644_v2 }
0x1fe3   :  { %v2695_v16 = vpop.f32.mrb[26].mxu1 }
0x1fe4   :  { %v2699_v11 = vadd.f32 %v2695_v16, %v225_v25  ;;  %v4208_v26 = vpop.f32.mrb[27].mxu1 }
0x1fe6   :  { %v3800_v30 = vmul.f32 -1.442695, %v2699_v11 }
0x1fe8   :  { %4576 = vpow2.f32 %v3800_v30 }
0x1fec   :  { %v2587_v34 = vpop.f32.mrb[32].mxu0 }
0x1fed   :  { %v2588_v35 = vadd.f32 %v5109_v20, %v2587_v34  ;;  %v4201_v32 = vpop.f32.mrb[33].mxu0 }
0x1fef   :  { %v3797_v12 = vmul.f32 -1.442695, %v2588_v35 }
0x1ff1   :  { %4578 = vpow2.f32 %v3797_v12 }
0x1ff2   :  { %v4577_v37 = vpop.eup %4576 }
0x1ff3   :  { %v2703_v38 = vadd.f32 1.0, %v4577_v37 }
0x1ff5   :  { %4580 = vrcp.f32 %v2703_v38 }
0x1ffb   :  { %v4579_v41 = vpop.eup %4578 }
0x1ffc   :  { %v2594_v13 = vadd.f32 1.0, %v4579_v41 }
0x1ffe   :  { %4582 = vrcp.f32 %v2594_v13 }
0x1fff   :  { %v4581_v40 = vpop.eup %4580 }
0x2000   :  { %v2706_v42 = vmul.f32 2.0, %v4581_v40  ;;  %v2708_v17 = vmul.f32 %v4581_v40, %v2503_v61 }
0x2002   :  { %v3801_v19 = vadd.f32 -1.0, %v2706_v42 }
0x2004   :  { %2710 = vrot.lane.b32.xlu1 %v3801_v19, %s4647_s17 }
0x2008   :  { %v4583_v44 = vpop.eup %4582 }
0x2009   :  { %v2597_v48 = vmul.f32 2.0, %v4583_v44  ;;  %v2599_v55 = vmul.f32 %v4583_v44, %v2394_v1 }
0x200b   :  { %v3798_v45 = vadd.f32 -1.0, %v2597_v48 }
0x200d   :  { %2601 = vrot.lane.b32.xlu0 %v3798_v45, %s4647_s17 }
0x2076   :  { %v2711_v47 = vpop.permute.xlu1 %2710 }
0x2077   :  { %v2713_v52 = vmul.f32 %v4581_v40, %v2711_v47 }
0x2079   :  { %2715 = vrot.lane.b32.xlu1 %v2713_v52, %s4648_s18 }
0x207f   :  { %v2602_v21 = vpop.permute.xlu0 %2601 }
0x2080   :  { %v2604_v54 = vmul.f32 %v4583_v44, %v2602_v21 }
0x2082   :  { %2606 = vrot.lane.b32.xlu0 %v2604_v54, %s4648_s18 }
0x20eb   :  { %v2716_v56 = vpop.permute.xlu1 %2715 }
0x20ec   :  { %v2718_v51 = vadd.f32 %v2716_v56, %v2708_v17 }
0x20ee   :  { %4584 = vtanh.f32 %v2718_v51 }
0x20f4   :  { %v2607_v58 = vpop.permute.xlu0 %2606 }
0x20f5   :  { %v2609_v60 = vadd.f32 %v2607_v58, %v2599_v55 }
0x20f7   :  { %4586 = vtanh.f32 %v2609_v60 }
0x20f8   :  { %v4585_v62 = vpop.eup %4584 }
0x20f9   :  { %2721 = vrot.lane.b32.xlu1 %v4585_v62, %s4649_s4 }
0x2101   :  { %v4587_v59 = vpop.eup %4586 }
0x2102   :  { %2612 = vrot.lane.b32.xlu0 %v4587_v59, %s4649_s4 }
0x216b   :  { %v2722_v0 = vpop.permute.xlu1 %2721 }
0x216c   :  { %v2724_v18 = vmul.f32 %v4581_v40, %v2722_v0 }
0x216e   :  { %2726 = vrot.lane.b32.xlu0 %v2724_v18, %s4650_s27  ;;  %v235_v18 = vadd.f32 %v5075_v46, %v4914_v22 }
0x2174   :  { %v2613_v3 = vpop.permute.xlu0 %2612 }
0x2175   :  { %v5173_v50 = vmul.f32 %v4583_v44, %v2613_v3 }
0x2177   :  { %2729 = vrot.lane.b32.xlu1 %v5173_v50, %s4647_s17 }
0x21e0   :  { %v2727_v61 = vpop.permute.xlu0 %2726 }
0x21e1   :  { %4225 = vmatmul.mubr.msk.f32.vlgmr.msra.gmra.mrb[34].mxu0 %vm54_vm0, %v2727_v61 }
0x21e2   :  { %4409 = vmatpush3.bf16.msra.mxu0 %v4750_v31  ;;  %4235 = vmatprep.mubr.msk.f32.mxu0 %vm4645_vm1, %v4646_v4 }
0x21e3   :  { %4410 = vmatprep.subr.bf16.mxu0 %v4644_v2 }
0x21e6   :  { %4412 = vmatpush3.bf16.msra.mxu0 %v4756_v33 }
0x21e7   :  { %4422 = vmatprep.subr.bf16.mxu0 %v4644_v2 }
0x21e9   :  { %v2730_v1 = vpop.permute.xlu1 %2729 }
0x21ea   :  { %v2732_v53 = vsel %vm54_vm0, %v2727_v61, %v2730_v1 }
0x21eb   :  { %4218 = vmatmul.mubr.msk.f32.vlgmr.msra.gmra.mrb[28].mxu1 %vm367_vm2, %v2732_v53 }
0x21ec   :  { %4415 = vmatpush3.bf16.msra.mxu1 %v4716_v8  ;;  %4242 = vmatprep.mubr.msk.f32.mxu1 %vm4645_vm1, %v4646_v4 }
0x21ed   :  { %4416 = vmatprep.subr.bf16.mxu1 %v4644_v2 }
0x22b4   :  { %v2910_v15 = vpop.f32.mrb[34].mxu0 }
0x22b5   :  { %v2914_v39 = vadd.f32 %v2910_v15, %v230_v6  ;;  %v4226_v10 = vpop.f32.mrb[35].mxu0 }
0x22b7   :  { %v3806_v24 = vmul.f32 -1.442695, %v2914_v39 }
0x22b9   :  { %4588 = vpow2.f32 %v3806_v24 }
0x22be   :  { %v2802_v25 = vpop.f32.mrb[28].mxu1 }
0x22bf   :  { %v2803_v16 = vadd.f32 %v5109_v20, %v2802_v25  ;;  %v4219_v11 = vpop.f32.mrb[29].mxu1 }
0x22c1   :  { %v3803_v26 = vmul.f32 -1.442695, %v2803_v16 }
0x22c3   :  { %v4589_v30 = vpop.eup %4588  ;;  %4590 = vpow2.f32 %v3803_v26 }
0x22c4   :  { %v2918_v34 = vadd.f32 1.0, %v4589_v30 }
0x22c6   :  { %4592 = vrcp.f32 %v2918_v34 }
0x22cd   :  { %v4591_v35 = vpop.eup %4590 }
0x22ce   :  { %v2809_v32 = vadd.f32 1.0, %v4591_v35 }
0x22d0   :  { %v4593_v12 = vpop.eup %4592  ;;  %4594 = vrcp.f32 %v2809_v32 }
0x22d1   :  { %v2921_v37 = vmul.f32 2.0, %v4593_v12  ;;  %v2923_v48 = vmul.f32 %v4593_v12, %v2718_v51 }
0x22d3   :  { %v3807_v23 = vadd.f32 -1.0, %v2921_v37 }
0x22d5   :  { %2925 = vrot.lane.b32.xlu1 %v3807_v23, %s4647_s17 }
0x22da   :  { %v4595_v38 = vpop.eup %4594 }
0x22db   :  { %v2812_v41 = vmul.f32 2.0, %v4595_v38  ;;  %v2814_v52 = vmul.f32 %v4595_v38, %v2609_v60 }
0x22dd   :  { %v3804_v13 = vadd.f32 -1.0, %v2812_v41 }
0x22df   :  { %2816 = vrot.lane.b32.xlu0 %v3804_v13, %s4647_s17 }
0x2347   :  { %v2926_v40 = vpop.permute.xlu1 %2925 }
0x2348   :  { %v2928_v42 = vmul.f32 %v4593_v12, %v2926_v40 }
0x234a   :  { %2930 = vrot.lane.b32.xlu1 %v2928_v42, %s4648_s18 }
0x2351   :  { %v2817_v19 = vpop.permute.xlu0 %2816 }
0x2352   :  { %v2819_v44 = vmul.f32 %v4595_v38, %v2817_v19 }
0x2354   :  { %2821 = vrot.lane.b32.xlu0 %v2819_v44, %s4648_s18 }
0x23bc   :  { %v2931_v45 = vpop.permute.xlu1 %2930 }
0x23bd   :  { %v2933_v47 = vadd.f32 %v2931_v45, %v2923_v48 }
0x23bf   :  { %4596 = vtanh.f32 %v2933_v47 }
0x23c6   :  { %v2822_v21 = vpop.permute.xlu0 %2821 }
0x23c7   :  { %v2824_v54 = vadd.f32 %v2822_v21, %v2814_v52 }
0x23c9   :  { %v4597_v17 = vpop.eup %4596  ;;  %4598 = vtanh.f32 %v2824_v54 }
0x23ca   :  { %2936 = vrot.lane.b32.xlu1 %v4597_v17, %s4649_s4 }
0x23d3   :  { %v4599_v56 = vpop.eup %4598 }
0x23d4   :  { %2827 = vrot.lane.b32.xlu0 %v4599_v56, %s4649_s4 }
0x243c   :  { %v2937_v55 = vpop.permute.xlu1 %2936 }
0x243d   :  { %v2939_v58 = vmul.f32 %v4593_v12, %v2937_v55 }
0x243f   :  { %2941 = vrot.lane.b32.xlu0 %v2939_v58, %s4650_s27  ;;  %v240_v58 = vadd.f32 %v5075_v46, %v4933_v28 }
0x2446   :  { %v2828_v62 = vpop.permute.xlu0 %2827 }
0x2447   :  { %v5200_v59 = vmul.f32 %v4595_v38, %v2828_v62 }
0x2449   :  { %2944 = vrot.lane.b32.xlu1 %v5200_v59, %s4647_s17 }
0x24b1   :  { %v2942_v51 = vpop.permute.xlu0 %2941 }
0x24b2   :  { %4243 = vmatmul.mubr.msk.f32.vlgmr.msra.gmra.mrb[30].mxu1 %vm54_vm0, %v2942_v51 }
0x24b3   :  { %4418 = vmatpush3.bf16.msra.mxu1 %v4750_v31  ;;  %4253 = vmatprep.mubr.msk.f32.mxu1 %vm4645_vm1, %v4646_v4 }
0x24b4   :  { %4419 = vmatprep.subr.bf16.mxu1 %v4644_v2 }
0x24b7   :  { %4421 = vmatpush3.bf16.msra.mxu1 %v4756_v33 }
0x24b8   :  { %4431 = vmatprep.subr.bf16.mxu1 %v4644_v2 }
0x24bb   :  { %v2945_v60 = vpop.permute.xlu1 %2944 }
0x24bc   :  { %v2947_v0 = vsel %vm54_vm0, %v2942_v51, %v2945_v60 }
0x24bd   :  { %4236 = vmatmul.mubr.msk.f32.vlgmr.msra.gmra.mrb[36].mxu0 %vm367_vm2, %v2947_v0 }
0x24be   :  { %4424 = vmatpush3.bf16.msra.mxu0 %v4716_v8  ;;  %4260 = vmatprep.mubr.msk.f32.mxu0 %vm4645_vm1, %v4646_v4 }
0x24bf   :  { %4425 = vmatprep.subr.bf16.mxu0 %v4644_v2 }
0x2585   :  { %v3125_v3 = vpop.f32.mrb[30].mxu1 }
0x2586   :  { %v3129_v61 = vadd.f32 %v3125_v3, %v235_v18  ;;  %v4244_v1 = vpop.f32.mrb[31].mxu1 }
0x2588   :  { %v3812_v53 = vmul.f32 -1.442695, %v3129_v61 }
0x258a   :  { %4600 = vpow2.f32 %v3812_v53 }
0x2590   :  { %v3017_v6 = vpop.f32.mrb[36].mxu0 }
0x2591   :  { %v3018_v15 = vadd.f32 %v5109_v20, %v3017_v6  ;;  %v4237_v39 = vpop.f32.mrb[37].mxu0 }
0x2593   :  { %v3809_v10 = vmul.f32 -1.442695, %v3018_v15 }
0x2594   :  { %v4601_v24 = vpop.eup %4600 }
0x2595   :  { %v3133_v25 = vadd.f32 1.0, %v4601_v24  ;;  %4602 = vpow2.f32 %v3809_v10 }
0x2597   :  { %4604 = vrcp.f32 %v3133_v25 }
0x259f   :  { %v4603_v16 = vpop.eup %4602 }
0x25a0   :  { %v3024_v11 = vadd.f32 1.0, %v4603_v16 }
0x25a1   :  { %v4605_v26 = vpop.eup %4604 }
0x25a2   :  { %4606 = vrcp.f32 %v3024_v11  ;;  %v3136_v30 = vmul.f32 2.0, %v4605_v26  ;;  %v3138_v41 = vmul.f32 %v4605_v26, %v2933_v47 }
0x25a4   :  { %v3813_v22 = vadd.f32 -1.0, %v3136_v30 }
0x25a6   :  { %3140 = vrot.lane.b32.xlu1 %v3813_v22, %s4647_s17 }
0x25ac   :  { %v4607_v34 = vpop.eup %4606 }
0x25ad   :  { %v3027_v35 = vmul.f32 2.0, %v4607_v34  ;;  %v3029_v42 = vmul.f32 %v4607_v34, %v2824_v54 }
0x25af   :  { %v3810_v32 = vadd.f32 -1.0, %v3027_v35 }
0x25b1   :  { %3031 = vrot.lane.b32.xlu0 %v3810_v32, %s4647_s17 }
0x2618   :  { %v3141_v12 = vpop.permute.xlu1 %3140 }
0x2619   :  { %v3143_v37 = vmul.f32 %v4605_v26, %v3141_v12 }
0x261b   :  { %3145 = vrot.lane.b32.xlu1 %v3143_v37, %s4648_s18 }
0x2623   :  { %v3032_v23 = vpop.permute.xlu0 %3031 }
0x2624   :  { %v3034_v38 = vmul.f32 %v4607_v34, %v3032_v23 }
0x2626   :  { %3036 = vrot.lane.b32.xlu0 %v3034_v38, %s4648_s18 }
0x268d   :  { %v3146_v13 = vpop.permute.xlu1 %3145 }
0x268e   :  { %v3148_v40 = vadd.f32 %v3146_v13, %v3138_v41 }
0x2690   :  { %4608 = vtanh.f32 %v3148_v40 }
0x2698   :  { %v3037_v19 = vpop.permute.xlu0 %3036 }
0x2699   :  { %v3039_v44 = vadd.f32 %v3037_v19, %v3029_v42 }
0x269a   :  { %v4609_v48 = vpop.eup %4608 }
0x269b   :  { %4610 = vtanh.f32 %v3039_v44  ;;  %3151 = vrot.lane.b32.xlu1 %v4609_v48, %s4649_s4 }
0x26a5   :  { %v4611_v45 = vpop.eup %4610 }
0x26a6   :  { %3042 = vrot.lane.b32.xlu0 %v4611_v45, %s4649_s4 }
0x270d   :  { %v3152_v52 = vpop.permute.xlu1 %3151 }
0x270e   :  { %v3154_v21 = vmul.f32 %v4605_v26, %v3152_v52  ;;  %v245_v52 = vadd.f32 %v5075_v46, %v4931_v27 }
0x2710   :  { %3156 = vrot.lane.b32.xlu0 %v3154_v21, %s4650_s27 }
0x2718   :  { %v3043_v17 = vpop.permute.xlu0 %3042 }
0x2719   :  { %v5227_v56 = vmul.f32 %v4607_v34, %v3043_v17 }
0x271b   :  { %3159 = vrot.lane.b32.xlu1 %v5227_v56, %s4647_s17 }
0x2782   :  { %v3157_v47 = vpop.permute.xlu0 %3156 }
0x2783   :  { %4261 = vmatmul.mubr.msk.f32.vlgmr.msra.gmra.mrb[38].mxu0 %vm54_vm0, %v3157_v47 }
0x2784   :  { %4427 = vmatpush3.bf16.msra.mxu0 %v4750_v31  ;;  %4271 = vmatprep.mubr.msk.f32.mxu0 %vm4645_vm1, %v4646_v4 }
0x2785   :  { %4428 = vmatprep.subr.bf16.mxu0 %v4644_v2 }
0x2788   :  { %4430 = vmatpush3.bf16.msra.mxu0 %v4756_v33 }
0x278d   :  { %v3160_v54 = vpop.permute.xlu1 %3159 }
0x278e   :  { %v3162_v55 = vsel %vm54_vm0, %v3157_v47, %v3160_v54 }
0x278f   :  { %4254 = vmatmul.mubr.msk.f32.vlgmr.msra.gmra.mrb[32].mxu1 %vm367_vm2, %v3162_v55 }
0x2790   :  { %4433 = vmatpush3.bf16.msra.mxu1 %v4716_v8  ;;  %4278 = vmatprep.mubr.msk.f32.mxu1 %vm4645_vm1, %v4646_v4 }
0x2791   :  { %4434 = vmatprep.subr.bf16.mxu1 %v4644_v2 }
0x2856   :  { %v3340_v62 = vpop.f32.mrb[38].mxu0 }
0x2857   :  { %v3344_v51 = vadd.f32 %v3340_v62, %v240_v58  ;;  %v4262_v60 = vpop.f32.mrb[39].mxu0 }
0x2859   :  { %v3818_v0 = vmul.f32 -1.442695, %v3344_v51 }
0x285b   :  { %4612 = vpow2.f32 %v3818_v0 }
0x2862   :  { %v3232_v18 = vpop.f32.mrb[32].mxu1 }
0x2863   :  { %v3233_v3 = vadd.f32 %v5109_v20, %v3232_v18  ;;  %v4255_v61 = vpop.f32.mrb[33].mxu1 }
0x2865   :  { %v4613_v1 = vpop.eup %4612  ;;  %v3815_v53 = vmul.f32 -1.442695, %v3233_v3 }
0x2866   :  { %v3348_v8 = vadd.f32 1.0, %v4613_v1 }
0x2867   :  { %4614 = vpow2.f32 %v3815_v53 }
0x2868   :  { %4616 = vrcp.f32 %v3348_v8 }
0x2871   :  { %v4615_v6 = vpop.eup %4614 }
0x2872   :  { %v4617_v15 = vpop.eup %4616  ;;  %v3239_v39 = vadd.f32 1.0, %v4615_v6 }
0x2873   :  { %v3351_v10 = vmul.f32 2.0, %v4617_v15  ;;  %v3353_v34 = vmul.f32 %v4617_v15, %v3148_v40 }
0x2874   :  { %4618 = vrcp.f32 %v3239_v39 }
0x2875   :  { %v3819_v28 = vadd.f32 -1.0, %v3351_v10 }
0x2877   :  { %3355 = vrot.lane.b32.xlu1 %v3819_v28, %s4647_s17 }
0x287e   :  { %v4619_v24 = vpop.eup %4618 }
0x287f   :  { %v3242_v25 = vmul.f32 2.0, %v4619_v24  ;;  %v3244_v12 = vmul.f32 %v4619_v24, %v3039_v44 }
0x2881   :  { %v3816_v16 = vadd.f32 -1.0, %v3242_v25 }
0x2883   :  { %3246 = vrot.lane.b32.xlu0 %v3816_v16, %s4647_s17 }
0x28e9   :  { %v3356_v11 = vpop.permute.xlu1 %3355 }
0x28ea   :  { %v3358_v26 = vmul.f32 %v4617_v15, %v3356_v11 }
0x28ec   :  { %3360 = vrot.lane.b32.xlu1 %v3358_v26, %s4648_s18 }
0x28f5   :  { %v3247_v30 = vpop.permute.xlu0 %3246 }
0x28f6   :  { %v3249_v22 = vmul.f32 %v4619_v24, %v3247_v30 }
0x28f8   :  { %3251 = vrot.lane.b32.xlu0 %v3249_v22, %s4648_s18 }
0x295e   :  { %v3361_v35 = vpop.permute.xlu1 %3360 }
0x295f   :  { %v3363_v32 = vadd.f32 %v3361_v35, %v3353_v34 }
0x2961   :  { %4620 = vtanh.f32 %v3363_v32 }
0x296a   :  { %v3252_v37 = vpop.permute.xlu0 %3251 }
0x296b   :  { %v4621_v23 = vpop.eup %4620  ;;  %v3254_v38 = vadd.f32 %v3252_v37, %v3244_v12 }
0x296c   :  { %3366 = vrot.lane.b32.xlu1 %v4621_v23, %s4649_s4 }
0x296d   :  { %4622 = vtanh.f32 %v3254_v38 }
0x2977   :  { %v4623_v41 = vpop.eup %4622 }
0x2978   :  { %3257 = vrot.lane.b32.xlu0 %v4623_v41, %s4649_s4 }
0x29de   :  { %v3367_v13 = vpop.permute.xlu1 %3366 }
0x29df   :  { %v3369_v42 = vmul.f32 %v4617_v15, %v3367_v13 }
0x29e1   :  { %3371 = vrot.lane.b32.xlu0 %v3369_v42, %s4650_s27  ;;  %v4651_v42 = vmov 63  }
0x29e2   :  { %4448 = vset.pattern.permute.xlu1 %v4651_v42  ;;  %4449 = vset.pattern.permute.xlu0 %v4651_v42 }
0x29ea   :  { %v3258_v19 = vpop.permute.xlu0 %3257 }
0x29eb   :  { %v5253_v48 = vmul.f32 %v4619_v24, %v3258_v19 }
0x29ed   :  { %3374 = vrot.lane.b32.xlu1 %v5253_v48, %s4647_s17 }
0x2a53   :  { %v3372_v40 = vpop.permute.xlu0 %3371 }
0x2a54   :  { %4279 = vmatmul.mubr.msk.f32.vlgmr.msra.gmra.mrb[34].mxu1 %vm54_vm0, %v3372_v40 }
0x2a55   :  { %4436 = vmatpush3.bf16.msra.mxu1 %v4750_v31  ;;  %4289 = vmatprep.mubr.msk.f32.mxu1 %vm4645_vm1, %v4646_v4 }
0x2a56   :  { %4437 = vmatprep.subr.bf16.mxu1 %v4644_v2 }
0x2a59   :  { %4439 = vmatpush3.bf16.msra.mxu1 %v4756_v33 }
0x2a5f   :  { %v3375_v44 = vpop.permute.xlu1 %3374 }
0x2a60   :  { %v3377_v45 = vsel %vm54_vm0, %v3372_v40, %v3375_v44 }
0x2a61   :  { %4272 = vmatmul.mubr.msk.f32.vlgmr.msra.gmra.mrb[40].mxu0 %vm367_vm2, %v3377_v45 }
0x2b27   :  { %v3555_v21 = vpop.f32.mrb[34].mxu1 }
0x2b28   :  { %v3559_v17 = vadd.f32 %v3555_v21, %v245_v52  ;;  %v4280_v47 = vpop.f32.mrb[35].mxu1 }
0x2b2a   :  { %v3824_v54 = vmul.f32 -1.442695, %v3559_v17 }
0x2b2c   :  { %4624 = vpow2.f32 %v3824_v54 }
0x2b34   :  { %v3447_v31 = vpop.f32.mrb[40].mxu0 }
0x2b35   :  { %v3448_v4 = vadd.f32 %v5109_v20, %v3447_v31  ;;  %v4273_v55 = vpop.f32.mrb[41].mxu0 }
0x2b36   :  { %v4625_v2 = vpop.eup %4624 }
0x2b37   :  { %v3563_v58 = vadd.f32 1.0, %v4625_v2  ;;  %v3821_v33 = vmul.f32 -1.442695, %v3448_v4 }
0x2b39   :  { %4626 = vrcp.f32 %v3563_v58 }
0x2b3a   :  { %4628 = vpow2.f32 %v3821_v33 }
0x2b43   :  { %v4627_v62 = vpop.eup %4626 }
0x2b44   :  { %v4629_v51 = vpop.eup %4628  ;;  %v3566_v60 = vmul.f32 2.0, %v4627_v62  ;;  %v3568_v6 = vmul.f32 %v4627_v62, %v3363_v32 }
0x2b45   :  { %v3454_v0 = vadd.f32 1.0, %v4629_v51 }
0x2b46   :  { %v3825_v18 = vadd.f32 -1.0, %v3566_v60 }
0x2b47   :  { %4630 = vrcp.f32 %v3454_v0 }
0x2b48   :  { %3570 = vrot.lane.b32.xlu1 %v3825_v18, %s4647_s17 }
0x2b51   :  { %v4631_v27 = vpop.eup %4630 }
0x2b52   :  { %v3457_v46 = vmul.f32 2.0, %v4631_v27  ;;  %v3459_v28 = vmul.f32 %v4631_v27, %v3254_v38 }
0x2b54   :  { %v3822_v3 = vadd.f32 -1.0, %v3457_v46 }
0x2b56   :  { %3461 = vrot.lane.b32.xlu0 %v3822_v3, %s4647_s17 }
0x2bba   :  { %v3571_v61 = vpop.permute.xlu1 %3570 }
0x2bbb   :  { %v3573_v1 = vmul.f32 %v4627_v62, %v3571_v61 }
0x2bbd   :  { %3575 = vrot.lane.b32.xlu1 %v3573_v1, %s4648_s18 }
0x2bc8   :  { %v3462_v53 = vpop.permute.xlu0 %3461 }
0x2bc9   :  { %v3464_v8 = vmul.f32 %v4631_v27, %v3462_v53 }
0x2bcb   :  { %3466 = vrot.lane.b32.xlu0 %v3464_v8, %s4648_s18 }
0x2c2f   :  { %v3576_v15 = vpop.permute.xlu1 %3575 }
0x2c30   :  { %v3578_v39 = vadd.f32 %v3576_v15, %v3568_v6 }
0x2c32   :  { %4632 = vtanh.f32 %v3578_v39 }
0x2c3c   :  { %v4633_v10 = vpop.eup %4632 }
0x2c3d   :  { %v3467_v24 = vpop.permute.xlu0 %3466  ;;  %3581 = vrot.lane.b32.xlu1 %v4633_v10, %s4649_s4 }
0x2c3e   :  { %v3469_v25 = vadd.f32 %v3467_v24, %v3459_v28 }
0x2c40   :  { %4634 = vtanh.f32 %v3469_v25 }
0x2c4a   :  { %v4635_v16 = vpop.eup %4634 }
0x2c4b   :  { %3472 = vrot.lane.b32.xlu0 %v4635_v16, %s4649_s4 }
0x2caf   :  { %v3582_v11 = vpop.permute.xlu1 %3581 }
0x2cb0   :  { %v3584_v26 = vmul.f32 %v4627_v62, %v3582_v11 }
0x2cb2   :  { %3586 = vrot.lane.b32.xlu0 %v3584_v26, %s4650_s27  ;;  %v256_v26 = vld [vmem:[%s5324_s6 + $0x8] sm:$0xff] }
0x2cbd   :  { %v3473_v30 = vpop.permute.xlu0 %3472 }
0x2cbe   :  { %v3475_v22 = vmul.f32 %v4631_v27, %v3473_v30 }
0x2cc0   :  { %3589 = vrot.lane.b32.xlu1 %v3475_v22, %s4647_s17 }
0x2d24   :  { %v3587_v34 = vpop.permute.xlu0 %3586 }
0x2d32   :  { %v3590_v35 = vpop.permute.xlu1 %3589 }
0x2d33   :  { %v3592_v32 = vsel %vm54_vm0, %v3587_v34, %v3590_v35 }
0x2d34   :  { %4290 = vmatmul.mubr.msk.f32.vlgmr.msra.gmra.mrb[36].mxu1 %vm367_vm2, %v3592_v32 }
0x2e07   :  { %v3662_v12 = vpop.f32.mrb[36].mxu1 }
0x2e08   :  { %v3663_v37 = vadd.f32 %v5109_v20, %v3662_v12  ;;  %v4291_v23 = vpop.f32.mrb[37].mxu1 }
0x2e0a   :  { %v3827_v38 = vmul.f32 -1.442695, %v3663_v37 }
0x2e0c   :  { %4636 = vpow2.f32 %v3827_v38 }
0x2e16   :  { %v4637_v41 = vpop.eup %4636 }
0x2e17   :  { %v3669_v13 = vadd.f32 1.0, %v4637_v41 }
0x2e19   :  { %4638 = vrcp.f32 %v3669_v13 }
0x2e23   :  { %v4639_v19 = vpop.eup %4638 }
0x2e24   :  { %v3672_v40 = vmul.f32 2.0, %v4639_v19  ;;  %v3674_v20 = vmul.f32 %v4639_v19, %v3469_v25 }
0x2e26   :  { %v3828_v44 = vadd.f32 -1.0, %v3672_v40 }
0x2e28   :  { %3676 = vrot.lane.b32.xlu0 %v3828_v44, %s4647_s17 }
0x2e9a   :  { %v3677_v45 = vpop.permute.xlu0 %3676 }
0x2e9b   :  { %v3679_v52 = vmul.f32 %v4639_v19, %v3677_v45 }
0x2e9d   :  { %3681 = vrot.lane.b32.xlu1 %v3679_v52, %s4648_s18 }
0x2ea1   :  { %468 = vperm.xlu1 %4448, %v4809_v14  }
0x2ea5   :  { %898 = vperm.xlu1 %4448, %v4946_v5  }
0x2ea9   :  { %1113 = vperm.xlu1 %4448, %v4973_v63   ;;  %v471_v63 = vlaneseq }
0x2ead   :  { %1543 = vperm.xlu1 %4448, %v5028_v49   ;;  %v5296_v49 = vshrl.u32 %v471_v63, 7 }
0x2eaf   :  { %v1118_v4 = vsub.s32 3, %v5296_v49  ;;  %v1333_v33 = vsub.s32 4, %v5296_v49  ;;  %v1548_v0 = vsub.s32 5, %v5296_v49  ;;  %v1763_v1 = vsub.s32 6, %v5296_v49 }
0x2eb0   :  { %v1978_v15 = vsub.s32 7, %v5296_v49 }
0x2eb1   :  { %1973 = vperm.xlu1 %4448, %v5087_v36   ;;  %v473_v36 = vsub.s32 0, %v5296_v49 }
0x2eb5   :  { %2403 = vperm.xlu1 %4448, %v5146_v9  }
0x2eb9   :  { %2833 = vperm.xlu1 %4448, %v5200_v59   ;;  %v903_v59 = vsub.s32 2, %v5296_v49 }
0x2ebb   :  { %v2624_v41 = vrot.slane %v256_v26, %v903_v59 }
0x2ebd   :  { %3263 = vperm.xlu1 %4448, %v5253_v48  }
0x2f0f   :  { %v3682_v21 = vpop.permute.xlu1 %3681 }
0x2f10   :  { %v3684_v17 = vadd.f32 %v3682_v21, %v3674_v20  ;;  %v3054_v20 = vrot.slane %v256_v26, %v1333_v33 }
0x2f12   :  { %4640 = vtanh.f32 %v3684_v17 }
0x2f1c   :  { %v4641_v47 = vpop.eup %4640 }
0x2f1d   :  { %3687 = vrot.lane.b32.xlu0 %v4641_v47, %s4649_s4  ;;  %v3269_v47 = vrot.slane %v256_v26, %v1548_v0 }
0x2f21   :  { %683 = vperm.xlu0 %4449, %v4893_v7   ;;  %v688_v7 = vsub.s32 1, %v5296_v49 }
0x2f23   :  { %v2409_v32 = vrot.slane %v256_v26, %v688_v7 }
0x2f25   :  { %1328 = vperm.xlu0 %4449, %v5001_v57   ;;  %v255_v57 = vld [vmem:[%s5324_s6] sm:$0xff] }
0x2f26   :  { %v904_v31 = vrot.slane %v255_v57, %v903_v59  ;;  %v1119_v58 = vrot.slane %v255_v57, %v1118_v4  ;;  %v1334_v18 = vrot.slane %v255_v57, %v1333_v33  ;;  %v1549_v3 = vrot.slane %v255_v57, %v1548_v0 }
0x2f27   :  { %v1764_v39 = vrot.slane %v255_v57, %v1763_v1  ;;  %v1979_v24 = vrot.slane %v255_v57, %v1978_v15 }
0x2f29   :  { %1758 = vperm.xlu0 %4449, %v5055_v43   ;;  %v469_v43 = vpop.permute.xlu1 %468 }
0x2f2d   :  { %2188 = vperm.xlu0 %4449, %v5119_v29   ;;  %v689_v29 = vrot.slane %v255_v57, %v688_v7  ;;  %v899_v48 = vpop.permute.xlu1 %898 }
0x2f2e   :  { %v905_v2 = vmul.f32 %v904_v31, %v899_v48 }
0x2f31   :  { %2618 = vperm.xlu0 %4449, %v5173_v50   ;;  %v474_v50 = vrot.slane %v255_v57, %v473_v36  ;;  %v1114_v62 = vpop.permute.xlu1 %1113 }
0x2f32   :  { %v1120_v60 = vmul.f32 %v1119_v58, %v1114_v62 }
0x2f33   :  { %v475_v54 = vmul.f32 %v474_v50, %v469_v43  ;;  %v3699_v43 = vrot.slane %v256_v26, %v1978_v15 }
0x2f35   :  { %3048 = vperm.xlu0 %4449, %v5227_v56   ;;  %v1544_v53 = vpop.permute.xlu1 %1543 }
0x2f36   :  { %v1550_v6 = vmul.f32 %v1549_v3, %v1544_v53 }
0x2f39   :  { %3478 = vperm.xlu0 %4449, %v3475_v22   ;;  %v1974_v16 = vpop.permute.xlu1 %1973  ;;  %v2194_v22 = vrot.slane %v256_v26, %v473_v36  ;;  %v3484_v36 = vrot.slane %v256_v26, %v1763_v1 }
0x2f3a   :  { %v1980_v30 = vmul.f32 %v1979_v24, %v1974_v16 }
0x2f3d   :  { %v2404_v37 = vpop.permute.xlu1 %2403 }
0x2f3e   :  { %v2410_v38 = vmul.f32 %v2409_v32, %v2404_v37 }
0x2f41   :  { %v2834_v44 = vpop.permute.xlu1 %2833 }
0x2f8f   :  { %v3688_v14 = vpop.permute.xlu0 %3687 }
0x2f90   :  { %v3690_v5 = vmul.f32 %v4639_v19, %v3688_v14  ;;  %v2839_v19 = vrot.slane %v256_v26, %v1118_v4 }
0x2f92   :  { %3693 = vperm.xlu1 %4448, %v3690_v5   ;;  %v2840_v52 = vmul.f32 %v2839_v19, %v2834_v44  ;;  %v3264_v5 = vpop.permute.xlu1 %3263 }
0x2f93   :  { %v3270_v49 = vmul.f32 %v3269_v47, %v3264_v5 }
0x2fa0   :  { %v684_v9 = vpop.permute.xlu0 %683 }
0x2fa1   :  { %v690_v56 = vmul.f32 %v689_v29, %v684_v9 }
0x2fa3   :  { %v691_v55 = vadd.f32 %v690_v56, %v475_v54  ;;  %v3829_v56 = vld [vmem:[%s5325_s7] ss:$0 sm:$0xff] }
0x2fa4   :  { %v1329_v27 = vpop.permute.xlu0 %1328 }
0x2fa5   :  { %v906_v51 = vadd.f32 %v905_v2, %v691_v55  ;;  %v1335_v61 = vmul.f32 %v1334_v18, %v1329_v27 }
0x2fa7   :  { %v1121_v46 = vadd.f32 %v1120_v60, %v906_v51 }
0x2fa8   :  { %v1759_v10 = vpop.permute.xlu0 %1758 }
0x2fa9   :  { %v1336_v8 = vadd.f32 %v1335_v61, %v1121_v46  ;;  %v1765_v25 = vmul.f32 %v1764_v39, %v1759_v10 }
0x2fab   :  { %v1551_v28 = vadd.f32 %v1550_v6, %v1336_v8 }
0x2fac   :  { %v2189_v34 = vpop.permute.xlu0 %2188 }
0x2fad   :  { %v1766_v11 = vadd.f32 %v1765_v25, %v1551_v28  ;;  %v2195_v12 = vmul.f32 %v2194_v22, %v2189_v34 }
0x2faf   :  { %v1981_v35 = vadd.f32 %v1980_v30, %v1766_v11 }
0x2fb0   :  { %v2619_v13 = vpop.permute.xlu0 %2618 }
0x2fb1   :  { %v2196_v23 = vadd.f32 %v2195_v12, %v1981_v35  ;;  %v2625_v40 = vmul.f32 %v2624_v41, %v2619_v13 }
0x2fb3   :  { %v2411_v42 = vadd.f32 %v2410_v38, %v2196_v23 }
0x2fb4   :  { %v3049_v21 = vpop.permute.xlu0 %3048 }
0x2fb5   :  { %v2626_v45 = vadd.f32 %v2625_v40, %v2411_v42  ;;  %v3055_v14 = vmul.f32 %v3054_v20, %v3049_v21 }
0x2fb7   :  { %v2841_v17 = vadd.f32 %v2840_v52, %v2626_v45 }
0x2fb8   :  { %v3479_v7 = vpop.permute.xlu0 %3478 }
0x2fb9   :  { %v3056_v63 = vadd.f32 %v3055_v14, %v2841_v17  ;;  %v3485_v29 = vmul.f32 %v3484_v36, %v3479_v7 }
0x2fbb   :  { %v3271_v57 = vadd.f32 %v3270_v49, %v3056_v63 }
0x2fbd   :  { %v3486_v50 = vadd.f32 %v3485_v29, %v3271_v57 }
0x3011   :  { %v3694_v9 = vpop.permute.xlu1 %3693 }
0x3012   :  { %v3700_v59 = vmul.f32 %v3699_v43, %v3694_v9 }
0x3014   :  { %v3701_v48 = vadd.f32 %v3700_v59, %v3486_v50 }
0x3016   :  { %v3709_v54 = vadd.f32 %v3829_v56, %v3701_v48 }
0x3018   :  { %3711 = vst.msk [vmem:[%s5326_s8] sm:$0xff] %vm3710_vm3, %v3709_v54 }

</bundles_post_ra>
